<compile_context>
chip_gen: v7x
topology: tpu7x:2x2x1
jax: 0.10.0
libtpu: 0.0.40
codegen_flags: <defaults>
</compile_context>

<pallas_src>
import functools

import jax
import jax.numpy as jnp
from jax import lax
from jax.experimental import pallas as pl
from jax.experimental.pallas import tpu as pltpu

LN_EPS = 1e-5


def _layer_norm(v, g, b):
    mu = jnp.mean(v, axis=-1, keepdims=True)
    var = jnp.mean((v - mu) ** 2, axis=-1, keepdims=True)
    return (v - mu) * lax.rsqrt(var + LN_EPS) * g + b


# ----------------------------------------------------------------------------
# Single fused kernel: embedding+PE -> N encoder layers -> mask -> fc1/fc2.
# Activations live as a flat (B*L, E) f32 value the whole time (no grid).
# ----------------------------------------------------------------------------
def fused_forward_kernel(
        # inputs
        x_ref,                      # (B, V, 1)  raw mutation scores
        emb_ref,                    # (V, E)     embedding table
        pe_ref,                     # (B, E)     positional-encoding rows pe[:B]
        wqkv_ref,                   # (NL, E, 3E) fused Q/K/V projection
        wo_ref,                     # (NL, E, E)
        bo_ref,                     # (NL, 1, E)
        ln1g_ref, ln1b_ref,         # (NL, 1, E)
        w1_ref,                     # (NL, E, H)
        b1_ref,                     # (NL, 1, H)
        w2_ref,                     # (NL, H, E)
        b2_ref,                     # (NL, 1, E)
        ln2g_ref, ln2b_ref,         # (NL, 1, E)
        fc1w_hbm_ref,               # (V*E, 256) left in HBM (pl.ANY)
        fc1b_ref,                   # (1, 256)
        fc2w_ref,                   # (256, C)
        fc2b_ref,                   # (1, C)
        # outputs
        logits_ref,                 # (B, C)
        emb_out_ref,                # (B, V, E)  masked encoder output
        attn_ref,                   # (B, V, V)  last layer's attention
        # scratch
        fc1w_vmem,                  # (V*E, 256) VMEM landing buffer
        fc1w_sem,                   # DMA semaphore
        *, B, L, E, num_layers):
    # Start prefetching the big fc1 weight; it overlaps with the encoder math
    # below and is waited on right before the classifier head.
    fc1_copy = pltpu.make_async_copy(fc1w_hbm_ref, fc1w_vmem, fc1w_sem)
    fc1_copy.start()

    inv_sqrt_e = 1.0 / (E ** 0.5)

    # Initial activation: h[b*L + l, :] = embedding[l, :] + pe[b, :]
    # (PositionalEncoding in the original indexes pe by the *batch* index.)
    emb = emb_ref[...]                                           # (L, E)
    h = jnp.concatenate([emb + pe_ref[b:b + 1, :] for b in range(B)],
                        axis=0)                                  # (B*L, E)

    for layer in range(num_layers):
        # Fused Q/K/V projection for the whole batch: one 96-lane-wide matmul.
        qkv = jnp.dot(h, wqkv_ref[layer],
                      preferred_element_type=jnp.float32)        # (B*L, 3E)
        q = qkv[:, 0 * E:1 * E]
        k = qkv[:, 1 * E:2 * E]
        v = qkv[:, 2 * E:3 * E]

        # Attention is the only genuinely per-batch part (B=2, unrolled).
        ctx_parts = []
        for b in range(B):
            lo, hi = b * L, (b + 1) * L
            qb, kb, vb = q[lo:hi, :], k[lo:hi, :], v[lo:hi, :]
            energy = lax.dot_general(qb, kb, (((1,), (1,)), ((), ())),
                                     preferred_element_type=jnp.float32)
            scaled = energy * inv_sqrt_e                         # (L, L)
            m = jnp.max(scaled, axis=-1, keepdims=True)
            p = jnp.exp(scaled - m)
            s = jnp.sum(p, axis=-1, keepdims=True)
            attn = p * pl.reciprocal(s, approx=True)
            if layer == num_layers - 1:
                attn_ref[b] = attn        # only the last layer's attn is kept
            ctx_parts.append(
                jnp.dot(attn, vb, preferred_element_type=jnp.float32))
        ctx = jnp.concatenate(ctx_parts, axis=0)                 # (B*L, E)

        # Output projection + residual + LayerNorm.
        o = jnp.dot(ctx, wo_ref[layer], preferred_element_type=jnp.float32)
        o = o + bo_ref[layer] + h
        o = _layer_norm(o, ln1g_ref[layer], ln1b_ref[layer])

        # Position-wise FFN + residual + LayerNorm.
        f = jnp.maximum(
            jnp.dot(o, w1_ref[layer], preferred_element_type=jnp.float32)
            + b1_ref[layer], 0.0)
        f = jnp.dot(f, w2_ref[layer], preferred_element_type=jnp.float32)
        f = f + b2_ref[layer] + o
        h = _layer_norm(f, ln2g_ref[layer], ln2b_ref[layer])

    # ----- MyScoreMutation mask (computed in-kernel from raw scores) --------
    masked = []
    for b in range(B):
        mask_b = (x_ref[b] == 1.0).astype(jnp.float32)           # (L, 1)
        mb = h[b * L:(b + 1) * L, :] * mask_b                    # (L, E)
        emb_out_ref[b] = mb
        masked.append(mb)

    # ----- classifier head: fc1 / ReLU / fc2 --------------------------------
    fc1_copy.wait()                     # fc1_w is now resident in VMEM
    fc1_b = fc1b_ref[...]               # (1, 256)
    hid_rows = []
    for b in range(B):
        # flat[b, l*E + e] = emb_out[b, l, e]; contract against fc1_w in
        # (E x 256) row-blocks to avoid an in-kernel lane-crossing reshape.
        acc = fc1_b
        for l in range(L):
            acc = acc + jnp.dot(masked[b][l:l + 1, :],
                                fc1w_vmem[l * E:(l + 1) * E, :],
                                preferred_element_type=jnp.float32)
        hid_rows.append(jnp.maximum(acc, 0.0))                   # (1, 256)
    hid = jnp.concatenate(hid_rows, axis=0)                      # (B, 256)
    logits_ref[...] = (jnp.dot(hid, fc2w_ref[...],
                               preferred_element_type=jnp.float32)
                       + fc2b_ref[...])


# ----------------------------------------------------------------------------
# Wrapper: one pallas_call for the whole forward pass.
# ----------------------------------------------------------------------------
def model_forward(params, x, cfg):
    """x: (B, n_vocab) float mutation scores. Returns (logits, out_emb, attn)."""
    B = x.shape[0]
    V, E = cfg["n_vocab"], cfg["embed"]
    NL = cfg["num_encoder"]
    C = cfg["num_classes"]

    kernel = functools.partial(fused_forward_kernel,
                               B=B, L=V, E=E, num_layers=NL)

    vmem = pl.BlockSpec(memory_space=pltpu.MemorySpace.VMEM)
    in_specs = [
        vmem,                                   # x (B, V, 1)
        vmem,                                   # embedding
        vmem,                                   # pe rows
        vmem, vmem, vmem,                       # wqkv, wo, bo
        vmem, vmem,                             # ln1 gamma / beta
        vmem, vmem, vmem, vmem,                 # w1, b1, w2, b2
        vmem, vmem,                             # ln2 gamma / beta
        pl.BlockSpec(memory_space=pl.ANY),      # fc1_w stays in HBM (prefetched)
        vmem, vmem, vmem,                       # fc1_b, fc2_w, fc2_b
    ]

    logits, emb_out, attn = pl.pallas_call(
        kernel,
        in_specs=in_specs,
        out_shape=[
            jax.ShapeDtypeStruct((B, C), jnp.float32),
            jax.ShapeDtypeStruct((B, V, E), jnp.float32),
            jax.ShapeDtypeStruct((B, V, V), jnp.float32),
        ],
        scratch_shapes=[
            pltpu.VMEM((V * E, 256), jnp.float32),   # fc1_w landing buffer
            pltpu.SemaphoreType.DMA(()),             # its DMA semaphore
        ],
    )(x[:, :, None],                       # (B, V, 1)
      params["embedding"],
      params["pe"][:B, 0, :],              # (B, E)
      params["wqkv"], params["wo"], params["bo"],
      params["ln1_g"], params["ln1_b"],
      params["w1"], params["b1"], params["w2"], params["b2"],
      params["ln2_g"], params["ln2_b"],
      params["fc1_w"], params["fc1_b"], params["fc2_w"], params["fc2_b"])
    return logits, emb_out, attn


# ----------------------------------------------------------------------------
# Parameter construction (deterministic).
# ----------------------------------------------------------------------------
def make_positional_encoding(pad_size, embed):
    position = jnp.arange(pad_size, dtype=jnp.float32)[:, None]
    div_term = jnp.exp(jnp.arange(0, embed, 2, dtype=jnp.float32)
                       * (-jnp.log(10000.0) / embed))
    pe = jnp.zeros((pad_size, embed), jnp.float32)
    pe = pe.at[:, 0::2].set(jnp.sin(position * div_term))
    pe = pe.at[:, 1::2].set(jnp.cos(position * div_term))
    return pe[None].transpose(1, 0, 2)          # (pad_size, 1, embed)


def init_params(key, cfg):
    V, E, H, C, NL = (cfg["n_vocab"], cfg["embed"], cfg["hidden"],
                      cfg["num_classes"], cfg["num_encoder"])

    def nrm(k, shape, scale=0.05):
        return scale * jax.random.normal(k, shape, jnp.float32)

    keys = jax.random.split(key, 3 + NL)
    params = {
        "embedding": nrm(keys[0], (V, E)),
        "pe": make_positional_encoding(cfg["pad_size"], E),
        "fc1_w": nrm(keys[1], (V * E, 256)),
        "fc1_b": jnp.zeros((1, 256), jnp.float32),
        "fc2_w": nrm(keys[2], (256, C)),
        "fc2_b": jnp.zeros((1, C), jnp.float32),
    }
    wqkv, wo, bo, ln1g, ln1b, w1, b1, w2, b2, ln2g, ln2b = ([] for _ in range(11))
    for i in range(NL):
        ks = jax.random.split(keys[3 + i], 6)
        wqkv.append(jnp.concatenate(
            [nrm(ks[0], (E, E)), nrm(ks[1], (E, E)), nrm(ks[2], (E, E))],
            axis=1))                                     # (E, 3E) fused Q/K/V
        wo.append(nrm(ks[3], (E, E)))
        bo.append(jnp.zeros((1, E), jnp.float32))
        ln1g.append(jnp.ones((1, E), jnp.float32))
        ln1b.append(jnp.zeros((1, E), jnp.float32))
        w1.append(nrm(ks[4], (E, H)))
        b1.append(jnp.zeros((1, H), jnp.float32))
        w2.append(nrm(ks[5], (H, E)))
        b2.append(jnp.zeros((1, E), jnp.float32))
        ln2g.append(jnp.ones((1, E), jnp.float32))
        ln2b.append(jnp.zeros((1, E), jnp.float32))
    params.update(
        wqkv=jnp.stack(wqkv), wo=jnp.stack(wo), bo=jnp.stack(bo),
        ln1_g=jnp.stack(ln1g), ln1_b=jnp.stack(ln1b),
        w1=jnp.stack(w1), b1=jnp.stack(b1), w2=jnp.stack(w2), b2=jnp.stack(b2),
        ln2_g=jnp.stack(ln2g), ln2_b=jnp.stack(ln2b))
    return params


# ----------------------------------------------------------------------------
# Pure-JAX reference (sanity check for the Pallas path).
# ----------------------------------------------------------------------------
def reference_forward(params, x, cfg):
    B = x.shape[0]
    V, E = cfg["n_vocab"], cfg["embed"]
    out = (jnp.broadcast_to(params["embedding"][None], (B, V, E))
           + params["pe"][:B])

    def ln(v, g, b):
        mu = jnp.mean(v, -1, keepdims=True)
        var = jnp.mean((v - mu) ** 2, -1, keepdims=True)
        return (v - mu) * lax.rsqrt(var + LN_EPS) * g + b

    attn = None
    for i in range(cfg["num_encoder"]):
        wqkv = params["wqkv"][i]
        q = out @ wqkv[:, :E]
        k = out @ wqkv[:, E:2 * E]
        v = out @ wqkv[:, 2 * E:]
        energy = jnp.einsum("bqd,bkd->bqk", q, k) / (E ** 0.5)
        attn = jax.nn.softmax(energy, axis=-1)
        o = jnp.einsum("bqk,bkd->bqd", attn, v) @ params["wo"][i] + params["bo"][i]
        o = ln(o + out, params["ln1_g"][i], params["ln1_b"][i])
        f = (jnp.maximum(o @ params["w1"][i] + params["b1"][i], 0.0)
             @ params["w2"][i] + params["b2"][i])
        out = ln(f + o, params["ln2_g"][i], params["ln2_b"][i])

    mask = (x == 1.0).astype(jnp.float32)
    emb = out * mask[:, :, None]
    flat = emb.reshape(B, V * E)
    h = jnp.maximum(flat @ params["fc1_w"] + params["fc1_b"], 0.0)
    logits = h @ params["fc2_w"] + params["fc2_b"]
    return logits, emb, attn


if __name__ == "__main__":
    cfg = dict(n_vocab=16, embed=32, num_head=1, hidden=64, num_encoder=2,
               num_classes=4, pad_size=16, batch=2, dropout=0.0)

    key = jax.random.PRNGKey(0)
    k_param, k_x = jax.random.split(key)
    params = init_params(k_param, cfg)

    # Mutation-score input: values in {0, 1, 2}; the mask picks score == 1.
    x = jax.random.randint(k_x, (cfg["batch"], cfg["n_vocab"]), 0, 3
                           ).astype(jnp.float32)

    fwd = jax.jit(functools.partial(model_forward, cfg=cfg))
    logits, out_emb, attn = fwd(params, x)
    jax.block_until_ready((logits, out_emb, attn))

    # Sanity check against pure-JAX reference (approx reciprocal in softmax
    # introduces ~1e-4 relative error, well within tolerance).
    r_logits, r_emb, r_attn = reference_forward(params, x, cfg)
    assert jnp.allclose(logits, r_logits, atol=1e-2, rtol=1e-2)
    assert jnp.allclose(out_emb, r_emb, atol=1e-2, rtol=1e-2)
    assert jnp.allclose(attn, r_attn, atol=1e-2, rtol=1e-2)
    assert logits.shape == (cfg["batch"], cfg["num_classes"])
    assert out_emb.shape == (cfg["batch"], cfg["n_vocab"], cfg["embed"])
    assert attn.shape == (cfg["batch"], cfg["n_vocab"], cfg["n_vocab"])

    print("KERNEL_OK")
</pallas_src>

<mosaic_0001>
module attributes {stable_mosaic.version = 11 : i64} {
  func.func @fused_forward_kernel(%arg0: memref<2x16x1xf32, #tpu.memory_space<vmem>>, %arg1: memref<16x32xf32, #tpu.memory_space<vmem>>, %arg2: memref<2x32xf32, #tpu.memory_space<vmem>>, %arg3: memref<2x32x96xf32, #tpu.memory_space<vmem>>, %arg4: memref<2x32x32xf32, #tpu.memory_space<vmem>>, %arg5: memref<2x1x32xf32, #tpu.memory_space<vmem>>, %arg6: memref<2x1x32xf32, #tpu.memory_space<vmem>>, %arg7: memref<2x1x32xf32, #tpu.memory_space<vmem>>, %arg8: memref<2x32x64xf32, #tpu.memory_space<vmem>>, %arg9: memref<2x1x64xf32, #tpu.memory_space<vmem>>, %arg10: memref<2x64x32xf32, #tpu.memory_space<vmem>>, %arg11: memref<2x1x32xf32, #tpu.memory_space<vmem>>, %arg12: memref<2x1x32xf32, #tpu.memory_space<vmem>>, %arg13: memref<2x1x32xf32, #tpu.memory_space<vmem>>, %arg14: memref<512x256xf32, #tpu.memory_space<any>>, %arg15: memref<1x256xf32, #tpu.memory_space<vmem>>, %arg16: memref<256x4xf32, #tpu.memory_space<vmem>>, %arg17: memref<1x4xf32, #tpu.memory_space<vmem>>, %arg18: memref<2x4xf32, #tpu.memory_space<vmem>>, %arg19: memref<2x16x32xf32, #tpu.memory_space<vmem>>, %arg20: memref<2x16x16xf32, #tpu.memory_space<vmem>>, %arg21: memref<512x256xf32, #tpu.memory_space<vmem>>, %arg22: memref<!tpu.dma_semaphore, #tpu.memory_space<semaphore_mem>>) attributes {dimension_semantics = [], scalar_prefetch = 0 : i64, scratch_operands = 2 : i64, tpu.core_type = #tpu.core_type<tc>} {
    tpu.enqueue_dma source(%arg14 : memref<512x256xf32, #tpu.memory_space<any>>) target(%arg21 : memref<512x256xf32, #tpu.memory_space<vmem>>) target_semaphore(%arg22 : memref<!tpu.dma_semaphore, #tpu.memory_space<semaphore_mem>>)
    %c0 = arith.constant 0 : index
    %c0_0 = arith.constant 0 : index
    %0 = vector.load %arg1[%c0, %c0_0] : memref<16x32xf32, #tpu.memory_space<vmem>>, vector<16x32xf32>
    %c0_1 = arith.constant 0 : index
    %c0_2 = arith.constant 0 : index
    %1 = vector.load %arg2[%c0_1, %c0_2] : memref<2x32xf32, #tpu.memory_space<vmem>>, vector<1x32xf32>
    %2 = vector.broadcast %1 : vector<1x32xf32> to vector<16x32xf32>
    %3 = arith.addf %0, %2 : vector<16x32xf32>
    %c1 = arith.constant 1 : index
    %c0_3 = arith.constant 0 : index
    %4 = vector.load %arg2[%c1, %c0_3] : memref<2x32xf32, #tpu.memory_space<vmem>>, vector<1x32xf32>
    %5 = vector.broadcast %4 : vector<1x32xf32> to vector<16x32xf32>
    %6 = arith.addf %0, %5 : vector<16x32xf32>
    %7 = tpu.concatenate %3, %6 in 0 : vector<16x32xf32>, vector<16x32xf32> -> vector<32x32xf32>
    %c0_4 = arith.constant 0 : index
    %c0_5 = arith.constant 0 : index
    %c0_6 = arith.constant 0 : index
    %8 = vector.load %arg3[%c0_4, %c0_5, %c0_6] : memref<2x32x96xf32, #tpu.memory_space<vmem>>, vector<1x32x96xf32>
    %9 = vector.shape_cast %8 : vector<1x32x96xf32> to vector<32x96xf32>
    %cst = arith.constant dense<0.000000e+00> : vector<32x96xf32>
    %10 = tpu.matmul %7, %9, %cst {dimension_numbers = #tpu.dot_dimension_numbers<[1], [0], [0], [1], [0, 0, 1, 1], [], []>} : vector<32x32xf32>, vector<32x96xf32>, vector<32x96xf32> -> vector<32x96xf32>
    %11 = vector.extract_strided_slice %10 {offsets = [0, 0], sizes = [32, 32], strides = [1, 1]} : vector<32x96xf32> to vector<32x32xf32>
    %12 = vector.extract_strided_slice %10 {offsets = [0, 32], sizes = [32, 32], strides = [1, 1]} : vector<32x96xf32> to vector<32x32xf32>
    %13 = vector.extract_strided_slice %10 {offsets = [0, 64], sizes = [32, 32], strides = [1, 1]} : vector<32x96xf32> to vector<32x32xf32>
    %14 = vector.extract_strided_slice %11 {offsets = [0, 0], sizes = [16, 32], strides = [1, 1]} : vector<32x32xf32> to vector<16x32xf32>
    %15 = vector.extract_strided_slice %12 {offsets = [0, 0], sizes = [16, 32], strides = [1, 1]} : vector<32x32xf32> to vector<16x32xf32>
    %16 = vector.extract_strided_slice %13 {offsets = [0, 0], sizes = [16, 32], strides = [1, 1]} : vector<32x32xf32> to vector<16x32xf32>
    %cst_7 = arith.constant dense<0.000000e+00> : vector<16x16xf32>
    %17 = tpu.matmul %14, %15, %cst_7 {dimension_numbers = #tpu.dot_dimension_numbers<[1], [1], [0], [0], [0, 0, 1, 0], [], []>} : vector<16x32xf32>, vector<16x32xf32>, vector<16x16xf32> -> vector<16x16xf32>
    %cst_8 = arith.constant 0.176776692 : f32
    %18 = vector.broadcast %cst_8 : f32 to vector<16x16xf32>
    %19 = arith.mulf %17, %18 : vector<16x16xf32>
    %cst_9 = arith.constant dense<0xFF800000> : vector<16xf32>
    %20 = vector.multi_reduction <maximumf>, %19, %cst_9 [1] : vector<16x16xf32> to vector<16xf32>
    %21 = vector.shape_cast %20 : vector<16xf32> to vector<16x1xf32>
    %22 = vector.broadcast %21 : vector<16x1xf32> to vector<16x16xf32>
    %23 = arith.subf %19, %22 : vector<16x16xf32>
    %24 = math.exp %23 : vector<16x16xf32>
    %cst_10 = arith.constant dense<0.000000e+00> : vector<16xf32>
    %25 = vector.multi_reduction <add>, %24, %cst_10 [1] : vector<16x16xf32> to vector<16xf32>
    %26 = vector.shape_cast %25 : vector<16xf32> to vector<16x1xf32>
    %27 = tpu.reciprocal %26 {approx = true} : vector<16x1xf32> -> vector<16x1xf32>
    %28 = vector.broadcast %27 : vector<16x1xf32> to vector<16x16xf32>
    %29 = arith.mulf %24, %28 : vector<16x16xf32>
    %cst_11 = arith.constant dense<0.000000e+00> : vector<16x32xf32>
    %30 = tpu.matmul %29, %16, %cst_11 {dimension_numbers = #tpu.dot_dimension_numbers<[1], [0], [0], [1], [0, 0, 1, 1], [], []>} : vector<16x16xf32>, vector<16x32xf32>, vector<16x32xf32> -> vector<16x32xf32>
    %31 = vector.extract_strided_slice %11 {offsets = [16, 0], sizes = [16, 32], strides = [1, 1]} : vector<32x32xf32> to vector<16x32xf32>
    %32 = vector.extract_strided_slice %12 {offsets = [16, 0], sizes = [16, 32], strides = [1, 1]} : vector<32x32xf32> to vector<16x32xf32>
    %33 = vector.extract_strided_slice %13 {offsets = [16, 0], sizes = [16, 32], strides = [1, 1]} : vector<32x32xf32> to vector<16x32xf32>
    %cst_12 = arith.constant dense<0.000000e+00> : vector<16x16xf32>
    %34 = tpu.matmul %31, %32, %cst_12 {dimension_numbers = #tpu.dot_dimension_numbers<[1], [1], [0], [0], [0, 0, 1, 0], [], []>} : vector<16x32xf32>, vector<16x32xf32>, vector<16x16xf32> -> vector<16x16xf32>
    %cst_13 = arith.constant 0.176776692 : f32
    %35 = vector.broadcast %cst_13 : f32 to vector<16x16xf32>
    %36 = arith.mulf %34, %35 : vector<16x16xf32>
    %cst_14 = arith.constant dense<0xFF800000> : vector<16xf32>
    %37 = vector.multi_reduction <maximumf>, %36, %cst_14 [1] : vector<16x16xf32> to vector<16xf32>
    %38 = vector.shape_cast %37 : vector<16xf32> to vector<16x1xf32>
    %39 = vector.broadcast %38 : vector<16x1xf32> to vector<16x16xf32>
    %40 = arith.subf %36, %39 : vector<16x16xf32>
    %41 = math.exp %40 : vector<16x16xf32>
    %cst_15 = arith.constant dense<0.000000e+00> : vector<16xf32>
    %42 = vector.multi_reduction <add>, %41, %cst_15 [1] : vector<16x16xf32> to vector<16xf32>
    %43 = vector.shape_cast %42 : vector<16xf32> to vector<16x1xf32>
    %44 = tpu.reciprocal %43 {approx = true} : vector<16x1xf32> -> vector<16x1xf32>
    %45 = vector.broadcast %44 : vector<16x1xf32> to vector<16x16xf32>
    %46 = arith.mulf %41, %45 : vector<16x16xf32>
    %cst_16 = arith.constant dense<0.000000e+00> : vector<16x32xf32>
    %47 = tpu.matmul %46, %33, %cst_16 {dimension_numbers = #tpu.dot_dimension_numbers<[1], [0], [0], [1], [0, 0, 1, 1], [], []>} : vector<16x16xf32>, vector<16x32xf32>, vector<16x32xf32> -> vector<16x32xf32>
    %48 = tpu.concatenate %30, %47 in 0 : vector<16x32xf32>, vector<16x32xf32> -> vector<32x32xf32>
    %c0_17 = arith.constant 0 : index
    %c0_18 = arith.constant 0 : index
    %c0_19 = arith.constant 0 : index
    %49 = vector.load %arg4[%c0_17, %c0_18, %c0_19] : memref<2x32x32xf32, #tpu.memory_space<vmem>>, vector<1x32x32xf32>
    %50 = vector.shape_cast %49 : vector<1x32x32xf32> to vector<32x32xf32>
    %cst_20 = arith.constant dense<0.000000e+00> : vector<32x32xf32>
    %51 = tpu.matmul %48, %50, %cst_20 {dimension_numbers = #tpu.dot_dimension_numbers<[1], [0], [0], [1], [0, 0, 1, 1], [], []>} : vector<32x32xf32>, vector<32x32xf32>, vector<32x32xf32> -> vector<32x32xf32>
    %c0_21 = arith.constant 0 : index
    %c0_22 = arith.constant 0 : index
    %c0_23 = arith.constant 0 : index
    %52 = vector.load %arg5[%c0_21, %c0_22, %c0_23] : memref<2x1x32xf32, #tpu.memory_space<vmem>>, vector<1x1x32xf32>
    %53 = vector.shape_cast %52 : vector<1x1x32xf32> to vector<1x32xf32>
    %54 = vector.broadcast %53 : vector<1x32xf32> to vector<32x32xf32>
    %55 = arith.addf %51, %54 : vector<32x32xf32>
    %56 = arith.addf %55, %7 : vector<32x32xf32>
    %c0_24 = arith.constant 0 : index
    %c0_25 = arith.constant 0 : index
    %c0_26 = arith.constant 0 : index
    %57 = vector.load %arg6[%c0_24, %c0_25, %c0_26] : memref<2x1x32xf32, #tpu.memory_space<vmem>>, vector<1x1x32xf32>
    %58 = vector.shape_cast %57 : vector<1x1x32xf32> to vector<1x32xf32>
    %c0_27 = arith.constant 0 : index
    %c0_28 = arith.constant 0 : index
    %c0_29 = arith.constant 0 : index
    %59 = vector.load %arg7[%c0_27, %c0_28, %c0_29] : memref<2x1x32xf32, #tpu.memory_space<vmem>>, vector<1x1x32xf32>
    %60 = vector.shape_cast %59 : vector<1x1x32xf32> to vector<1x32xf32>
    %cst_30 = arith.constant dense<0.000000e+00> : vector<32xf32>
    %61 = vector.multi_reduction <add>, %56, %cst_30 [1] : vector<32x32xf32> to vector<32xf32>
    %62 = vector.shape_cast %61 : vector<32xf32> to vector<32x1xf32>
    %cst_31 = arith.constant 3.200000e+01 : f32
    %63 = vector.broadcast %cst_31 : f32 to vector<32x1xf32>
    %64 = arith.divf %62, %63 : vector<32x1xf32>
    %65 = vector.broadcast %64 : vector<32x1xf32> to vector<32x32xf32>
    %66 = arith.subf %56, %65 : vector<32x32xf32>
    %67 = arith.mulf %66, %66 : vector<32x32xf32>
    %cst_32 = arith.constant dense<0.000000e+00> : vector<32xf32>
    %68 = vector.multi_reduction <add>, %67, %cst_32 [1] : vector<32x32xf32> to vector<32xf32>
    %69 = vector.shape_cast %68 : vector<32xf32> to vector<32x1xf32>
    %cst_33 = arith.constant 3.200000e+01 : f32
    %70 = vector.broadcast %cst_33 : f32 to vector<32x1xf32>
    %71 = arith.divf %69, %70 : vector<32x1xf32>
    %72 = vector.broadcast %64 : vector<32x1xf32> to vector<32x32xf32>
    %73 = arith.subf %56, %72 : vector<32x32xf32>
    %cst_34 = arith.constant 9.99999974E-6 : f32
    %74 = vector.broadcast %cst_34 : f32 to vector<32x1xf32>
    %75 = arith.addf %71, %74 : vector<32x1xf32>
    %76 = math.rsqrt %75 : vector<32x1xf32>
    %77 = vector.broadcast %76 : vector<32x1xf32> to vector<32x32xf32>
    %78 = arith.mulf %73, %77 : vector<32x32xf32>
    %79 = vector.broadcast %58 : vector<1x32xf32> to vector<32x32xf32>
    %80 = arith.mulf %78, %79 : vector<32x32xf32>
    %81 = vector.broadcast %60 : vector<1x32xf32> to vector<32x32xf32>
    %82 = arith.addf %80, %81 : vector<32x32xf32>
    %c0_35 = arith.constant 0 : index
    %c0_36 = arith.constant 0 : index
    %c0_37 = arith.constant 0 : index
    %83 = vector.load %arg8[%c0_35, %c0_36, %c0_37] : memref<2x32x64xf32, #tpu.memory_space<vmem>>, vector<1x32x64xf32>
    %84 = vector.shape_cast %83 : vector<1x32x64xf32> to vector<32x64xf32>
    %cst_38 = arith.constant dense<0.000000e+00> : vector<32x64xf32>
    %85 = tpu.matmul %82, %84, %cst_38 {dimension_numbers = #tpu.dot_dimension_numbers<[1], [0], [0], [1], [0, 0, 1, 1], [], []>} : vector<32x32xf32>, vector<32x64xf32>, vector<32x64xf32> -> vector<32x64xf32>
    %c0_39 = arith.constant 0 : index
    %c0_40 = arith.constant 0 : index
    %c0_41 = arith.constant 0 : index
    %86 = vector.load %arg9[%c0_39, %c0_40, %c0_41] : memref<2x1x64xf32, #tpu.memory_space<vmem>>, vector<1x1x64xf32>
    %87 = vector.shape_cast %86 : vector<1x1x64xf32> to vector<1x64xf32>
    %88 = vector.broadcast %87 : vector<1x64xf32> to vector<32x64xf32>
    %89 = arith.addf %85, %88 : vector<32x64xf32>
    %cst_42 = arith.constant 0.000000e+00 : f32
    %90 = vector.broadcast %cst_42 : f32 to vector<32x64xf32>
    %91 = arith.maximumf %89, %90 : vector<32x64xf32>
    %c0_43 = arith.constant 0 : index
    %c0_44 = arith.constant 0 : index
    %c0_45 = arith.constant 0 : index
    %92 = vector.load %arg10[%c0_43, %c0_44, %c0_45] : memref<2x64x32xf32, #tpu.memory_space<vmem>>, vector<1x64x32xf32>
    %93 = vector.shape_cast %92 : vector<1x64x32xf32> to vector<64x32xf32>
    %cst_46 = arith.constant dense<0.000000e+00> : vector<32x32xf32>
    %94 = tpu.matmul %91, %93, %cst_46 {dimension_numbers = #tpu.dot_dimension_numbers<[1], [0], [0], [1], [0, 0, 1, 1], [], []>} : vector<32x64xf32>, vector<64x32xf32>, vector<32x32xf32> -> vector<32x32xf32>
    %c0_47 = arith.constant 0 : index
    %c0_48 = arith.constant 0 : index
    %c0_49 = arith.constant 0 : index
    %95 = vector.load %arg11[%c0_47, %c0_48, %c0_49] : memref<2x1x32xf32, #tpu.memory_space<vmem>>, vector<1x1x32xf32>
    %96 = vector.shape_cast %95 : vector<1x1x32xf32> to vector<1x32xf32>
    %97 = vector.broadcast %96 : vector<1x32xf32> to vector<32x32xf32>
    %98 = arith.addf %94, %97 : vector<32x32xf32>
    %99 = arith.addf %98, %82 : vector<32x32xf32>
    %c0_50 = arith.constant 0 : index
    %c0_51 = arith.constant 0 : index
    %c0_52 = arith.constant 0 : index
    %100 = vector.load %arg12[%c0_50, %c0_51, %c0_52] : memref<2x1x32xf32, #tpu.memory_space<vmem>>, vector<1x1x32xf32>
    %101 = vector.shape_cast %100 : vector<1x1x32xf32> to vector<1x32xf32>
    %c0_53 = arith.constant 0 : index
    %c0_54 = arith.constant 0 : index
    %c0_55 = arith.constant 0 : index
    %102 = vector.load %arg13[%c0_53, %c0_54, %c0_55] : memref<2x1x32xf32, #tpu.memory_space<vmem>>, vector<1x1x32xf32>
    %103 = vector.shape_cast %102 : vector<1x1x32xf32> to vector<1x32xf32>
    %cst_56 = arith.constant dense<0.000000e+00> : vector<32xf32>
    %104 = vector.multi_reduction <add>, %99, %cst_56 [1] : vector<32x32xf32> to vector<32xf32>
    %105 = vector.shape_cast %104 : vector<32xf32> to vector<32x1xf32>
    %cst_57 = arith.constant 3.200000e+01 : f32
    %106 = vector.broadcast %cst_57 : f32 to vector<32x1xf32>
    %107 = arith.divf %105, %106 : vector<32x1xf32>
    %108 = vector.broadcast %107 : vector<32x1xf32> to vector<32x32xf32>
    %109 = arith.subf %99, %108 : vector<32x32xf32>
    %110 = arith.mulf %109, %109 : vector<32x32xf32>
    %cst_58 = arith.constant dense<0.000000e+00> : vector<32xf32>
    %111 = vector.multi_reduction <add>, %110, %cst_58 [1] : vector<32x32xf32> to vector<32xf32>
    %112 = vector.shape_cast %111 : vector<32xf32> to vector<32x1xf32>
    %cst_59 = arith.constant 3.200000e+01 : f32
    %113 = vector.broadcast %cst_59 : f32 to vector<32x1xf32>
    %114 = arith.divf %112, %113 : vector<32x1xf32>
    %115 = vector.broadcast %107 : vector<32x1xf32> to vector<32x32xf32>
    %116 = arith.subf %99, %115 : vector<32x32xf32>
    %cst_60 = arith.constant 9.99999974E-6 : f32
    %117 = vector.broadcast %cst_60 : f32 to vector<32x1xf32>
    %118 = arith.addf %114, %117 : vector<32x1xf32>
    %119 = math.rsqrt %118 : vector<32x1xf32>
    %120 = vector.broadcast %119 : vector<32x1xf32> to vector<32x32xf32>
    %121 = arith.mulf %116, %120 : vector<32x32xf32>
    %122 = vector.broadcast %101 : vector<1x32xf32> to vector<32x32xf32>
    %123 = arith.mulf %121, %122 : vector<32x32xf32>
    %124 = vector.broadcast %103 : vector<1x32xf32> to vector<32x32xf32>
    %125 = arith.addf %123, %124 : vector<32x32xf32>
    %c1_61 = arith.constant 1 : index
    %c0_62 = arith.constant 0 : index
    %c0_63 = arith.constant 0 : index
    %126 = vector.load %arg3[%c1_61, %c0_62, %c0_63] : memref<2x32x96xf32, #tpu.memory_space<vmem>>, vector<1x32x96xf32>
    %127 = vector.shape_cast %126 : vector<1x32x96xf32> to vector<32x96xf32>
    %cst_64 = arith.constant dense<0.000000e+00> : vector<32x96xf32>
    %128 = tpu.matmul %125, %127, %cst_64 {dimension_numbers = #tpu.dot_dimension_numbers<[1], [0], [0], [1], [0, 0, 1, 1], [], []>} : vector<32x32xf32>, vector<32x96xf32>, vector<32x96xf32> -> vector<32x96xf32>
    %129 = vector.extract_strided_slice %128 {offsets = [0, 0], sizes = [32, 32], strides = [1, 1]} : vector<32x96xf32> to vector<32x32xf32>
    %130 = vector.extract_strided_slice %128 {offsets = [0, 32], sizes = [32, 32], strides = [1, 1]} : vector<32x96xf32> to vector<32x32xf32>
    %131 = vector.extract_strided_slice %128 {offsets = [0, 64], sizes = [32, 32], strides = [1, 1]} : vector<32x96xf32> to vector<32x32xf32>
    %132 = vector.extract_strided_slice %129 {offsets = [0, 0], sizes = [16, 32], strides = [1, 1]} : vector<32x32xf32> to vector<16x32xf32>
    %133 = vector.extract_strided_slice %130 {offsets = [0, 0], sizes = [16, 32], strides = [1, 1]} : vector<32x32xf32> to vector<16x32xf32>
    %134 = vector.extract_strided_slice %131 {offsets = [0, 0], sizes = [16, 32], strides = [1, 1]} : vector<32x32xf32> to vector<16x32xf32>
    %cst_65 = arith.constant dense<0.000000e+00> : vector<16x16xf32>
    %135 = tpu.matmul %132, %133, %cst_65 {dimension_numbers = #tpu.dot_dimension_numbers<[1], [1], [0], [0], [0, 0, 1, 0], [], []>} : vector<16x32xf32>, vector<16x32xf32>, vector<16x16xf32> -> vector<16x16xf32>
    %cst_66 = arith.constant 0.176776692 : f32
    %136 = vector.broadcast %cst_66 : f32 to vector<16x16xf32>
    %137 = arith.mulf %135, %136 : vector<16x16xf32>
    %cst_67 = arith.constant dense<0xFF800000> : vector<16xf32>
    %138 = vector.multi_reduction <maximumf>, %137, %cst_67 [1] : vector<16x16xf32> to vector<16xf32>
    %139 = vector.shape_cast %138 : vector<16xf32> to vector<16x1xf32>
    %140 = vector.broadcast %139 : vector<16x1xf32> to vector<16x16xf32>
    %141 = arith.subf %137, %140 : vector<16x16xf32>
    %142 = math.exp %141 : vector<16x16xf32>
    %cst_68 = arith.constant dense<0.000000e+00> : vector<16xf32>
    %143 = vector.multi_reduction <add>, %142, %cst_68 [1] : vector<16x16xf32> to vector<16xf32>
    %144 = vector.shape_cast %143 : vector<16xf32> to vector<16x1xf32>
    %145 = tpu.reciprocal %144 {approx = true} : vector<16x1xf32> -> vector<16x1xf32>
    %146 = vector.broadcast %145 : vector<16x1xf32> to vector<16x16xf32>
    %147 = arith.mulf %142, %146 : vector<16x16xf32>
    %c0_69 = arith.constant 0 : index
    %c0_70 = arith.constant 0 : index
    %c0_71 = arith.constant 0 : index
    %148 = vector.load %arg20[%c0_69, %c0_70, %c0_71] : memref<2x16x16xf32, #tpu.memory_space<vmem>>, vector<1x16x16xf32>
    %149 = vector.shape_cast %148 : vector<1x16x16xf32> to vector<16x16xf32>
    %150 = vector.shape_cast %147 : vector<16x16xf32> to vector<1x16x16xf32>
    tpu.vector_store %arg20[%c0_69, %c0_70, %c0_71], %150 {strides = array<i32>} : memref<2x16x16xf32, #tpu.memory_space<vmem>>, vector<1x16x16xf32>,
    %cst_72 = arith.constant dense<0.000000e+00> : vector<16x32xf32>
    %151 = tpu.matmul %147, %134, %cst_72 {dimension_numbers = #tpu.dot_dimension_numbers<[1], [0], [0], [1], [0, 0, 1, 1], [], []>} : vector<16x16xf32>, vector<16x32xf32>, vector<16x32xf32> -> vector<16x32xf32>
    %152 = vector.extract_strided_slice %129 {offsets = [16, 0], sizes = [16, 32], strides = [1, 1]} : vector<32x32xf32> to vector<16x32xf32>
    %153 = vector.extract_strided_slice %130 {offsets = [16, 0], sizes = [16, 32], strides = [1, 1]} : vector<32x32xf32> to vector<16x32xf32>
    %154 = vector.extract_strided_slice %131 {offsets = [16, 0], sizes = [16, 32], strides = [1, 1]} : vector<32x32xf32> to vector<16x32xf32>
    %cst_73 = arith.constant dense<0.000000e+00> : vector<16x16xf32>
    %155 = tpu.matmul %152, %153, %cst_73 {dimension_numbers = #tpu.dot_dimension_numbers<[1], [1], [0], [0], [0, 0, 1, 0], [], []>} : vector<16x32xf32>, vector<16x32xf32>, vector<16x16xf32> -> vector<16x16xf32>
    %cst_74 = arith.constant 0.176776692 : f32
    %156 = vector.broadcast %cst_74 : f32 to vector<16x16xf32>
    %157 = arith.mulf %155, %156 : vector<16x16xf32>
    %cst_75 = arith.constant dense<0xFF800000> : vector<16xf32>
    %158 = vector.multi_reduction <maximumf>, %157, %cst_75 [1] : vector<16x16xf32> to vector<16xf32>
    %159 = vector.shape_cast %158 : vector<16xf32> to vector<16x1xf32>
    %160 = vector.broadcast %159 : vector<16x1xf32> to vector<16x16xf32>
    %161 = arith.subf %157, %160 : vector<16x16xf32>
    %162 = math.exp %161 : vector<16x16xf32>
    %cst_76 = arith.constant dense<0.000000e+00> : vector<16xf32>
    %163 = vector.multi_reduction <add>, %162, %cst_76 [1] : vector<16x16xf32> to vector<16xf32>
    %164 = vector.shape_cast %163 : vector<16xf32> to vector<16x1xf32>
    %165 = tpu.reciprocal %164 {approx = true} : vector<16x1xf32> -> vector<16x1xf32>
    %166 = vector.broadcast %165 : vector<16x1xf32> to vector<16x16xf32>
    %167 = arith.mulf %162, %166 : vector<16x16xf32>
    %c1_77 = arith.constant 1 : index
    %c0_78 = arith.constant 0 : index
    %c0_79 = arith.constant 0 : index
    %168 = vector.load %arg20[%c1_77, %c0_78, %c0_79] : memref<2x16x16xf32, #tpu.memory_space<vmem>>, vector<1x16x16xf32>
    %169 = vector.shape_cast %168 : vector<1x16x16xf32> to vector<16x16xf32>
    %170 = vector.shape_cast %167 : vector<16x16xf32> to vector<1x16x16xf32>
    tpu.vector_store %arg20[%c1_77, %c0_78, %c0_79], %170 {strides = array<i32>} : memref<2x16x16xf32, #tpu.memory_space<vmem>>, vector<1x16x16xf32>,
    %cst_80 = arith.constant dense<0.000000e+00> : vector<16x32xf32>
    %171 = tpu.matmul %167, %154, %cst_80 {dimension_numbers = #tpu.dot_dimension_numbers<[1], [0], [0], [1], [0, 0, 1, 1], [], []>} : vector<16x16xf32>, vector<16x32xf32>, vector<16x32xf32> -> vector<16x32xf32>
    %172 = tpu.concatenate %151, %171 in 0 : vector<16x32xf32>, vector<16x32xf32> -> vector<32x32xf32>
    %c1_81 = arith.constant 1 : index
    %c0_82 = arith.constant 0 : index
    %c0_83 = arith.constant 0 : index
    %173 = vector.load %arg4[%c1_81, %c0_82, %c0_83] : memref<2x32x32xf32, #tpu.memory_space<vmem>>, vector<1x32x32xf32>
    %174 = vector.shape_cast %173 : vector<1x32x32xf32> to vector<32x32xf32>
    %cst_84 = arith.constant dense<0.000000e+00> : vector<32x32xf32>
    %175 = tpu.matmul %172, %174, %cst_84 {dimension_numbers = #tpu.dot_dimension_numbers<[1], [0], [0], [1], [0, 0, 1, 1], [], []>} : vector<32x32xf32>, vector<32x32xf32>, vector<32x32xf32> -> vector<32x32xf32>
    %c1_85 = arith.constant 1 : index
    %c0_86 = arith.constant 0 : index
    %c0_87 = arith.constant 0 : index
    %176 = vector.load %arg5[%c1_85, %c0_86, %c0_87] : memref<2x1x32xf32, #tpu.memory_space<vmem>>, vector<1x1x32xf32>
    %177 = vector.shape_cast %176 : vector<1x1x32xf32> to vector<1x32xf32>
    %178 = vector.broadcast %177 : vector<1x32xf32> to vector<32x32xf32>
    %179 = arith.addf %175, %178 : vector<32x32xf32>
    %180 = arith.addf %179, %125 : vector<32x32xf32>
    %c1_88 = arith.constant 1 : index
    %c0_89 = arith.constant 0 : index
    %c0_90 = arith.constant 0 : index
    %181 = vector.load %arg6[%c1_88, %c0_89, %c0_90] : memref<2x1x32xf32, #tpu.memory_space<vmem>>, vector<1x1x32xf32>
    %182 = vector.shape_cast %181 : vector<1x1x32xf32> to vector<1x32xf32>
    %c1_91 = arith.constant 1 : index
    %c0_92 = arith.constant 0 : index
    %c0_93 = arith.constant 0 : index
    %183 = vector.load %arg7[%c1_91, %c0_92, %c0_93] : memref<2x1x32xf32, #tpu.memory_space<vmem>>, vector<1x1x32xf32>
    %184 = vector.shape_cast %183 : vector<1x1x32xf32> to vector<1x32xf32>
    %cst_94 = arith.constant dense<0.000000e+00> : vector<32xf32>
    %185 = vector.multi_reduction <add>, %180, %cst_94 [1] : vector<32x32xf32> to vector<32xf32>
    %186 = vector.shape_cast %185 : vector<32xf32> to vector<32x1xf32>
    %cst_95 = arith.constant 3.200000e+01 : f32
    %187 = vector.broadcast %cst_95 : f32 to vector<32x1xf32>
    %188 = arith.divf %186, %187 : vector<32x1xf32>
    %189 = vector.broadcast %188 : vector<32x1xf32> to vector<32x32xf32>
    %190 = arith.subf %180, %189 : vector<32x32xf32>
    %191 = arith.mulf %190, %190 : vector<32x32xf32>
    %cst_96 = arith.constant dense<0.000000e+00> : vector<32xf32>
    %192 = vector.multi_reduction <add>, %191, %cst_96 [1] : vector<32x32xf32> to vector<32xf32>
    %193 = vector.shape_cast %192 : vector<32xf32> to vector<32x1xf32>
    %cst_97 = arith.constant 3.200000e+01 : f32
    %194 = vector.broadcast %cst_97 : f32 to vector<32x1xf32>
    %195 = arith.divf %193, %194 : vector<32x1xf32>
    %196 = vector.broadcast %188 : vector<32x1xf32> to vector<32x32xf32>
    %197 = arith.subf %180, %196 : vector<32x32xf32>
    %cst_98 = arith.constant 9.99999974E-6 : f32
    %198 = vector.broadcast %cst_98 : f32 to vector<32x1xf32>
    %199 = arith.addf %195, %198 : vector<32x1xf32>
    %200 = math.rsqrt %199 : vector<32x1xf32>
    %201 = vector.broadcast %200 : vector<32x1xf32> to vector<32x32xf32>
    %202 = arith.mulf %197, %201 : vector<32x32xf32>
    %203 = vector.broadcast %182 : vector<1x32xf32> to vector<32x32xf32>
    %204 = arith.mulf %202, %203 : vector<32x32xf32>
    %205 = vector.broadcast %184 : vector<1x32xf32> to vector<32x32xf32>
    %206 = arith.addf %204, %205 : vector<32x32xf32>
    %c1_99 = arith.constant 1 : index
    %c0_100 = arith.constant 0 : index
    %c0_101 = arith.constant 0 : index
    %207 = vector.load %arg8[%c1_99, %c0_100, %c0_101] : memref<2x32x64xf32, #tpu.memory_space<vmem>>, vector<1x32x64xf32>
    %208 = vector.shape_cast %207 : vector<1x32x64xf32> to vector<32x64xf32>
    %cst_102 = arith.constant dense<0.000000e+00> : vector<32x64xf32>
    %209 = tpu.matmul %206, %208, %cst_102 {dimension_numbers = #tpu.dot_dimension_numbers<[1], [0], [0], [1], [0, 0, 1, 1], [], []>} : vector<32x32xf32>, vector<32x64xf32>, vector<32x64xf32> -> vector<32x64xf32>
    %c1_103 = arith.constant 1 : index
    %c0_104 = arith.constant 0 : index
    %c0_105 = arith.constant 0 : index
    %210 = vector.load %arg9[%c1_103, %c0_104, %c0_105] : memref<2x1x64xf32, #tpu.memory_space<vmem>>, vector<1x1x64xf32>
    %211 = vector.shape_cast %210 : vector<1x1x64xf32> to vector<1x64xf32>
    %212 = vector.broadcast %211 : vector<1x64xf32> to vector<32x64xf32>
    %213 = arith.addf %209, %212 : vector<32x64xf32>
    %cst_106 = arith.constant 0.000000e+00 : f32
    %214 = vector.broadcast %cst_106 : f32 to vector<32x64xf32>
    %215 = arith.maximumf %213, %214 : vector<32x64xf32>
    %c1_107 = arith.constant 1 : index
    %c0_108 = arith.constant 0 : index
    %c0_109 = arith.constant 0 : index
    %216 = vector.load %arg10[%c1_107, %c0_108, %c0_109] : memref<2x64x32xf32, #tpu.memory_space<vmem>>, vector<1x64x32xf32>
    %217 = vector.shape_cast %216 : vector<1x64x32xf32> to vector<64x32xf32>
    %cst_110 = arith.constant dense<0.000000e+00> : vector<32x32xf32>
    %218 = tpu.matmul %215, %217, %cst_110 {dimension_numbers = #tpu.dot_dimension_numbers<[1], [0], [0], [1], [0, 0, 1, 1], [], []>} : vector<32x64xf32>, vector<64x32xf32>, vector<32x32xf32> -> vector<32x32xf32>
    %c1_111 = arith.constant 1 : index
    %c0_112 = arith.constant 0 : index
    %c0_113 = arith.constant 0 : index
    %219 = vector.load %arg11[%c1_111, %c0_112, %c0_113] : memref<2x1x32xf32, #tpu.memory_space<vmem>>, vector<1x1x32xf32>
    %220 = vector.shape_cast %219 : vector<1x1x32xf32> to vector<1x32xf32>
    %221 = vector.broadcast %220 : vector<1x32xf32> to vector<32x32xf32>
    %222 = arith.addf %218, %221 : vector<32x32xf32>
    %223 = arith.addf %222, %206 : vector<32x32xf32>
    %c1_114 = arith.constant 1 : index
    %c0_115 = arith.constant 0 : index
    %c0_116 = arith.constant 0 : index
    %224 = vector.load %arg12[%c1_114, %c0_115, %c0_116] : memref<2x1x32xf32, #tpu.memory_space<vmem>>, vector<1x1x32xf32>
    %225 = vector.shape_cast %224 : vector<1x1x32xf32> to vector<1x32xf32>
    %c1_117 = arith.constant 1 : index
    %c0_118 = arith.constant 0 : index
    %c0_119 = arith.constant 0 : index
    %226 = vector.load %arg13[%c1_117, %c0_118, %c0_119] : memref<2x1x32xf32, #tpu.memory_space<vmem>>, vector<1x1x32xf32>
    %227 = vector.shape_cast %226 : vector<1x1x32xf32> to vector<1x32xf32>
    %cst_120 = arith.constant dense<0.000000e+00> : vector<32xf32>
    %228 = vector.multi_reduction <add>, %223, %cst_120 [1] : vector<32x32xf32> to vector<32xf32>
    %229 = vector.shape_cast %228 : vector<32xf32> to vector<32x1xf32>
    %cst_121 = arith.constant 3.200000e+01 : f32
    %230 = vector.broadcast %cst_121 : f32 to vector<32x1xf32>
    %231 = arith.divf %229, %230 : vector<32x1xf32>
    %232 = vector.broadcast %231 : vector<32x1xf32> to vector<32x32xf32>
    %233 = arith.subf %223, %232 : vector<32x32xf32>
    %234 = arith.mulf %233, %233 : vector<32x32xf32>
    %cst_122 = arith.constant dense<0.000000e+00> : vector<32xf32>
    %235 = vector.multi_reduction <add>, %234, %cst_122 [1] : vector<32x32xf32> to vector<32xf32>
    %236 = vector.shape_cast %235 : vector<32xf32> to vector<32x1xf32>
    %cst_123 = arith.constant 3.200000e+01 : f32
    %237 = vector.broadcast %cst_123 : f32 to vector<32x1xf32>
    %238 = arith.divf %236, %237 : vector<32x1xf32>
    %239 = vector.broadcast %231 : vector<32x1xf32> to vector<32x32xf32>
    %240 = arith.subf %223, %239 : vector<32x32xf32>
    %cst_124 = arith.constant 9.99999974E-6 : f32
    %241 = vector.broadcast %cst_124 : f32 to vector<32x1xf32>
    %242 = arith.addf %238, %241 : vector<32x1xf32>
    %243 = math.rsqrt %242 : vector<32x1xf32>
    %244 = vector.broadcast %243 : vector<32x1xf32> to vector<32x32xf32>
    %245 = arith.mulf %240, %244 : vector<32x32xf32>
    %246 = vector.broadcast %225 : vector<1x32xf32> to vector<32x32xf32>
    %247 = arith.mulf %245, %246 : vector<32x32xf32>
    %248 = vector.broadcast %227 : vector<1x32xf32> to vector<32x32xf32>
    %249 = arith.addf %247, %248 : vector<32x32xf32>
    %c0_125 = arith.constant 0 : index
    %c0_126 = arith.constant 0 : index
    %c0_127 = arith.constant 0 : index
    %250 = vector.load %arg0[%c0_125, %c0_126, %c0_127] : memref<2x16x1xf32, #tpu.memory_space<vmem>>, vector<1x16x1xf32>
    %251 = vector.shape_cast %250 : vector<1x16x1xf32> to vector<16x1xf32>
    %cst_128 = arith.constant 1.000000e+00 : f32
    %252 = vector.broadcast %cst_128 : f32 to vector<16x1xf32>
    %253 = arith.cmpf oeq, %251, %252 : vector<16x1xf32>
    %254 = arith.extui %253 : vector<16x1xi1> to vector<16x1xi32>
    %255 = arith.sitofp %254 : vector<16x1xi32> to vector<16x1xf32>
    %256 = vector.extract_strided_slice %249 {offsets = [0, 0], sizes = [16, 32], strides = [1, 1]} : vector<32x32xf32> to vector<16x32xf32>
    %257 = vector.broadcast %255 : vector<16x1xf32> to vector<16x32xf32>
    %258 = arith.mulf %256, %257 : vector<16x32xf32>
    %c0_129 = arith.constant 0 : index
    %c0_130 = arith.constant 0 : index
    %c0_131 = arith.constant 0 : index
    %259 = vector.load %arg19[%c0_129, %c0_130, %c0_131] : memref<2x16x32xf32, #tpu.memory_space<vmem>>, vector<1x16x32xf32>
    %260 = vector.shape_cast %259 : vector<1x16x32xf32> to vector<16x32xf32>
    %261 = vector.shape_cast %258 : vector<16x32xf32> to vector<1x16x32xf32>
    tpu.vector_store %arg19[%c0_129, %c0_130, %c0_131], %261 {strides = array<i32>} : memref<2x16x32xf32, #tpu.memory_space<vmem>>, vector<1x16x32xf32>,
    %c1_132 = arith.constant 1 : index
    %c0_133 = arith.constant 0 : index
    %c0_134 = arith.constant 0 : index
    %262 = vector.load %arg0[%c1_132, %c0_133, %c0_134] : memref<2x16x1xf32, #tpu.memory_space<vmem>>, vector<1x16x1xf32>
    %263 = vector.shape_cast %262 : vector<1x16x1xf32> to vector<16x1xf32>
    %cst_135 = arith.constant 1.000000e+00 : f32
    %264 = vector.broadcast %cst_135 : f32 to vector<16x1xf32>
    %265 = arith.cmpf oeq, %263, %264 : vector<16x1xf32>
    %266 = arith.extui %265 : vector<16x1xi1> to vector<16x1xi32>
    %267 = arith.sitofp %266 : vector<16x1xi32> to vector<16x1xf32>
    %268 = vector.extract_strided_slice %249 {offsets = [16, 0], sizes = [16, 32], strides = [1, 1]} : vector<32x32xf32> to vector<16x32xf32>
    %269 = vector.broadcast %267 : vector<16x1xf32> to vector<16x32xf32>
    %270 = arith.mulf %268, %269 : vector<16x32xf32>
    %c1_136 = arith.constant 1 : index
    %c0_137 = arith.constant 0 : index
    %c0_138 = arith.constant 0 : index
    %271 = vector.load %arg19[%c1_136, %c0_137, %c0_138] : memref<2x16x32xf32, #tpu.memory_space<vmem>>, vector<1x16x32xf32>
    %272 = vector.shape_cast %271 : vector<1x16x32xf32> to vector<16x32xf32>
    %273 = vector.shape_cast %270 : vector<16x32xf32> to vector<1x16x32xf32>
    tpu.vector_store %arg19[%c1_136, %c0_137, %c0_138], %273 {strides = array<i32>} : memref<2x16x32xf32, #tpu.memory_space<vmem>>, vector<1x16x32xf32>,
    tpu.wait_dma2 semaphore(%arg22 : memref<!tpu.dma_semaphore, #tpu.memory_space<semaphore_mem>>) src(%arg14 : memref<512x256xf32, #tpu.memory_space<any>>) dst(%arg21 : memref<512x256xf32, #tpu.memory_space<vmem>>)
    %c0_139 = arith.constant 0 : index
    %c0_140 = arith.constant 0 : index
    %274 = vector.load %arg15[%c0_139, %c0_140] : memref<1x256xf32, #tpu.memory_space<vmem>>, vector<1x256xf32>
    %275 = vector.extract_strided_slice %258 {offsets = [0, 0], sizes = [1, 32], strides = [1, 1]} : vector<16x32xf32> to vector<1x32xf32>
    %c0_141 = arith.constant 0 : index
    %c0_142 = arith.constant 0 : index
    %276 = vector.load %arg21[%c0_141, %c0_142] : memref<512x256xf32, #tpu.memory_space<vmem>>, vector<32x256xf32>
    %cst_143 = arith.constant dense<0.000000e+00> : vector<1x256xf32>
    %277 = tpu.matmul %275, %276, %cst_143 {dimension_numbers = #tpu.dot_dimension_numbers<[1], [0], [0], [1], [0, 0, 1, 1], [], []>} : vector<1x32xf32>, vector<32x256xf32>, vector<1x256xf32> -> vector<1x256xf32>
    %278 = arith.addf %274, %277 : vector<1x256xf32>
    %279 = vector.extract_strided_slice %258 {offsets = [1, 0], sizes = [1, 32], strides = [1, 1]} : vector<16x32xf32> to vector<1x32xf32>
    %c32 = arith.constant 32 : index
    %c0_144 = arith.constant 0 : index
    %280 = vector.load %arg21[%c32, %c0_144] : memref<512x256xf32, #tpu.memory_space<vmem>>, vector<32x256xf32>
    %cst_145 = arith.constant dense<0.000000e+00> : vector<1x256xf32>
    %281 = tpu.matmul %279, %280, %cst_145 {dimension_numbers = #tpu.dot_dimension_numbers<[1], [0], [0], [1], [0, 0, 1, 1], [], []>} : vector<1x32xf32>, vector<32x256xf32>, vector<1x256xf32> -> vector<1x256xf32>
    %282 = arith.addf %278, %281 : vector<1x256xf32>
    %283 = vector.extract_strided_slice %258 {offsets = [2, 0], sizes = [1, 32], strides = [1, 1]} : vector<16x32xf32> to vector<1x32xf32>
    %c64 = arith.constant 64 : index
    %c0_146 = arith.constant 0 : index
    %284 = vector.load %arg21[%c64, %c0_146] : memref<512x256xf32, #tpu.memory_space<vmem>>, vector<32x256xf32>
    %cst_147 = arith.constant dense<0.000000e+00> : vector<1x256xf32>
    %285 = tpu.matmul %283, %284, %cst_147 {dimension_numbers = #tpu.dot_dimension_numbers<[1], [0], [0], [1], [0, 0, 1, 1], [], []>} : vector<1x32xf32>, vector<32x256xf32>, vector<1x256xf32> -> vector<1x256xf32>
    %286 = arith.addf %282, %285 : vector<1x256xf32>
    %287 = vector.extract_strided_slice %258 {offsets = [3, 0], sizes = [1, 32], strides = [1, 1]} : vector<16x32xf32> to vector<1x32xf32>
    %c96 = arith.constant 96 : index
    %c0_148 = arith.constant 0 : index
    %288 = vector.load %arg21[%c96, %c0_148] : memref<512x256xf32, #tpu.memory_space<vmem>>, vector<32x256xf32>
    %cst_149 = arith.constant dense<0.000000e+00> : vector<1x256xf32>
    %289 = tpu.matmul %287, %288, %cst_149 {dimension_numbers = #tpu.dot_dimension_numbers<[1], [0], [0], [1], [0, 0, 1, 1], [], []>} : vector<1x32xf32>, vector<32x256xf32>, vector<1x256xf32> -> vector<1x256xf32>
    %290 = arith.addf %286, %289 : vector<1x256xf32>
    %291 = vector.extract_strided_slice %258 {offsets = [4, 0], sizes = [1, 32], strides = [1, 1]} : vector<16x32xf32> to vector<1x32xf32>
    %c128 = arith.constant 128 : index
    %c0_150 = arith.constant 0 : index
    %292 = vector.load %arg21[%c128, %c0_150] : memref<512x256xf32, #tpu.memory_space<vmem>>, vector<32x256xf32>
    %cst_151 = arith.constant dense<0.000000e+00> : vector<1x256xf32>
    %293 = tpu.matmul %291, %292, %cst_151 {dimension_numbers = #tpu.dot_dimension_numbers<[1], [0], [0], [1], [0, 0, 1, 1], [], []>} : vector<1x32xf32>, vector<32x256xf32>, vector<1x256xf32> -> vector<1x256xf32>
    %294 = arith.addf %290, %293 : vector<1x256xf32>
    %295 = vector.extract_strided_slice %258 {offsets = [5, 0], sizes = [1, 32], strides = [1, 1]} : vector<16x32xf32> to vector<1x32xf32>
    %c160 = arith.constant 160 : index
    %c0_152 = arith.constant 0 : index
    %296 = vector.load %arg21[%c160, %c0_152] : memref<512x256xf32, #tpu.memory_space<vmem>>, vector<32x256xf32>
    %cst_153 = arith.constant dense<0.000000e+00> : vector<1x256xf32>
    %297 = tpu.matmul %295, %296, %cst_153 {dimension_numbers = #tpu.dot_dimension_numbers<[1], [0], [0], [1], [0, 0, 1, 1], [], []>} : vector<1x32xf32>, vector<32x256xf32>, vector<1x256xf32> -> vector<1x256xf32>
    %298 = arith.addf %294, %297 : vector<1x256xf32>
    %299 = vector.extract_strided_slice %258 {offsets = [6, 0], sizes = [1, 32], strides = [1, 1]} : vector<16x32xf32> to vector<1x32xf32>
    %c192 = arith.constant 192 : index
    %c0_154 = arith.constant 0 : index
    %300 = vector.load %arg21[%c192, %c0_154] : memref<512x256xf32, #tpu.memory_space<vmem>>, vector<32x256xf32>
    %cst_155 = arith.constant dense<0.000000e+00> : vector<1x256xf32>
    %301 = tpu.matmul %299, %300, %cst_155 {dimension_numbers = #tpu.dot_dimension_numbers<[1], [0], [0], [1], [0, 0, 1, 1], [], []>} : vector<1x32xf32>, vector<32x256xf32>, vector<1x256xf32> -> vector<1x256xf32>
    %302 = arith.addf %298, %301 : vector<1x256xf32>
    %303 = vector.extract_strided_slice %258 {offsets = [7, 0], sizes = [1, 32], strides = [1, 1]} : vector<16x32xf32> to vector<1x32xf32>
    %c224 = arith.constant 224 : index
    %c0_156 = arith.constant 0 : index
    %304 = vector.load %arg21[%c224, %c0_156] : memref<512x256xf32, #tpu.memory_space<vmem>>, vector<32x256xf32>
    %cst_157 = arith.constant dense<0.000000e+00> : vector<1x256xf32>
    %305 = tpu.matmul %303, %304, %cst_157 {dimension_numbers = #tpu.dot_dimension_numbers<[1], [0], [0], [1], [0, 0, 1, 1], [], []>} : vector<1x32xf32>, vector<32x256xf32>, vector<1x256xf32> -> vector<1x256xf32>
    %306 = arith.addf %302, %305 : vector<1x256xf32>
    %307 = vector.extract_strided_slice %258 {offsets = [8, 0], sizes = [1, 32], strides = [1, 1]} : vector<16x32xf32> to vector<1x32xf32>
    %c256 = arith.constant 256 : index
    %c0_158 = arith.constant 0 : index
    %308 = vector.load %arg21[%c256, %c0_158] : memref<512x256xf32, #tpu.memory_space<vmem>>, vector<32x256xf32>
    %cst_159 = arith.constant dense<0.000000e+00> : vector<1x256xf32>
    %309 = tpu.matmul %307, %308, %cst_159 {dimension_numbers = #tpu.dot_dimension_numbers<[1], [0], [0], [1], [0, 0, 1, 1], [], []>} : vector<1x32xf32>, vector<32x256xf32>, vector<1x256xf32> -> vector<1x256xf32>
    %310 = arith.addf %306, %309 : vector<1x256xf32>
    %311 = vector.extract_strided_slice %258 {offsets = [9, 0], sizes = [1, 32], strides = [1, 1]} : vector<16x32xf32> to vector<1x32xf32>
    %c288 = arith.constant 288 : index
    %c0_160 = arith.constant 0 : index
    %312 = vector.load %arg21[%c288, %c0_160] : memref<512x256xf32, #tpu.memory_space<vmem>>, vector<32x256xf32>
    %cst_161 = arith.constant dense<0.000000e+00> : vector<1x256xf32>
    %313 = tpu.matmul %311, %312, %cst_161 {dimension_numbers = #tpu.dot_dimension_numbers<[1], [0], [0], [1], [0, 0, 1, 1], [], []>} : vector<1x32xf32>, vector<32x256xf32>, vector<1x256xf32> -> vector<1x256xf32>
    %314 = arith.addf %310, %313 : vector<1x256xf32>
    %315 = vector.extract_strided_slice %258 {offsets = [10, 0], sizes = [1, 32], strides = [1, 1]} : vector<16x32xf32> to vector<1x32xf32>
    %c320 = arith.constant 320 : index
    %c0_162 = arith.constant 0 : index
    %316 = vector.load %arg21[%c320, %c0_162] : memref<512x256xf32, #tpu.memory_space<vmem>>, vector<32x256xf32>
    %cst_163 = arith.constant dense<0.000000e+00> : vector<1x256xf32>
    %317 = tpu.matmul %315, %316, %cst_163 {dimension_numbers = #tpu.dot_dimension_numbers<[1], [0], [0], [1], [0, 0, 1, 1], [], []>} : vector<1x32xf32>, vector<32x256xf32>, vector<1x256xf32> -> vector<1x256xf32>
    %318 = arith.addf %314, %317 : vector<1x256xf32>
    %319 = vector.extract_strided_slice %258 {offsets = [11, 0], sizes = [1, 32], strides = [1, 1]} : vector<16x32xf32> to vector<1x32xf32>
    %c352 = arith.constant 352 : index
    %c0_164 = arith.constant 0 : index
    %320 = vector.load %arg21[%c352, %c0_164] : memref<512x256xf32, #tpu.memory_space<vmem>>, vector<32x256xf32>
    %cst_165 = arith.constant dense<0.000000e+00> : vector<1x256xf32>
    %321 = tpu.matmul %319, %320, %cst_165 {dimension_numbers = #tpu.dot_dimension_numbers<[1], [0], [0], [1], [0, 0, 1, 1], [], []>} : vector<1x32xf32>, vector<32x256xf32>, vector<1x256xf32> -> vector<1x256xf32>
    %322 = arith.addf %318, %321 : vector<1x256xf32>
    %323 = vector.extract_strided_slice %258 {offsets = [12, 0], sizes = [1, 32], strides = [1, 1]} : vector<16x32xf32> to vector<1x32xf32>
    %c384 = arith.constant 384 : index
    %c0_166 = arith.constant 0 : index
    %324 = vector.load %arg21[%c384, %c0_166] : memref<512x256xf32, #tpu.memory_space<vmem>>, vector<32x256xf32>
    %cst_167 = arith.constant dense<0.000000e+00> : vector<1x256xf32>
    %325 = tpu.matmul %323, %324, %cst_167 {dimension_numbers = #tpu.dot_dimension_numbers<[1], [0], [0], [1], [0, 0, 1, 1], [], []>} : vector<1x32xf32>, vector<32x256xf32>, vector<1x256xf32> -> vector<1x256xf32>
    %326 = arith.addf %322, %325 : vector<1x256xf32>
    %327 = vector.extract_strided_slice %258 {offsets = [13, 0], sizes = [1, 32], strides = [1, 1]} : vector<16x32xf32> to vector<1x32xf32>
    %c416 = arith.constant 416 : index
    %c0_168 = arith.constant 0 : index
    %328 = vector.load %arg21[%c416, %c0_168] : memref<512x256xf32, #tpu.memory_space<vmem>>, vector<32x256xf32>
    %cst_169 = arith.constant dense<0.000000e+00> : vector<1x256xf32>
    %329 = tpu.matmul %327, %328, %cst_169 {dimension_numbers = #tpu.dot_dimension_numbers<[1], [0], [0], [1], [0, 0, 1, 1], [], []>} : vector<1x32xf32>, vector<32x256xf32>, vector<1x256xf32> -> vector<1x256xf32>
    %330 = arith.addf %326, %329 : vector<1x256xf32>
    %331 = vector.extract_strided_slice %258 {offsets = [14, 0], sizes = [1, 32], strides = [1, 1]} : vector<16x32xf32> to vector<1x32xf32>
    %c448 = arith.constant 448 : index
    %c0_170 = arith.constant 0 : index
    %332 = vector.load %arg21[%c448, %c0_170] : memref<512x256xf32, #tpu.memory_space<vmem>>, vector<32x256xf32>
    %cst_171 = arith.constant dense<0.000000e+00> : vector<1x256xf32>
    %333 = tpu.matmul %331, %332, %cst_171 {dimension_numbers = #tpu.dot_dimension_numbers<[1], [0], [0], [1], [0, 0, 1, 1], [], []>} : vector<1x32xf32>, vector<32x256xf32>, vector<1x256xf32> -> vector<1x256xf32>
    %334 = arith.addf %330, %333 : vector<1x256xf32>
    %335 = vector.extract_strided_slice %258 {offsets = [15, 0], sizes = [1, 32], strides = [1, 1]} : vector<16x32xf32> to vector<1x32xf32>
    %c480 = arith.constant 480 : index
    %c0_172 = arith.constant 0 : index
    %336 = vector.load %arg21[%c480, %c0_172] : memref<512x256xf32, #tpu.memory_space<vmem>>, vector<32x256xf32>
    %cst_173 = arith.constant dense<0.000000e+00> : vector<1x256xf32>
    %337 = tpu.matmul %335, %336, %cst_173 {dimension_numbers = #tpu.dot_dimension_numbers<[1], [0], [0], [1], [0, 0, 1, 1], [], []>} : vector<1x32xf32>, vector<32x256xf32>, vector<1x256xf32> -> vector<1x256xf32>
    %338 = arith.addf %334, %337 : vector<1x256xf32>
    %cst_174 = arith.constant 0.000000e+00 : f32
    %339 = vector.broadcast %cst_174 : f32 to vector<1x256xf32>
    %340 = arith.maximumf %338, %339 : vector<1x256xf32>
    %341 = vector.extract_strided_slice %270 {offsets = [0, 0], sizes = [1, 32], strides = [1, 1]} : vector<16x32xf32> to vector<1x32xf32>
    %c0_175 = arith.constant 0 : index
    %c0_176 = arith.constant 0 : index
    %342 = vector.load %arg21[%c0_175, %c0_176] : memref<512x256xf32, #tpu.memory_space<vmem>>, vector<32x256xf32>
    %cst_177 = arith.constant dense<0.000000e+00> : vector<1x256xf32>
    %343 = tpu.matmul %341, %342, %cst_177 {dimension_numbers = #tpu.dot_dimension_numbers<[1], [0], [0], [1], [0, 0, 1, 1], [], []>} : vector<1x32xf32>, vector<32x256xf32>, vector<1x256xf32> -> vector<1x256xf32>
    %344 = arith.addf %274, %343 : vector<1x256xf32>
    %345 = vector.extract_strided_slice %270 {offsets = [1, 0], sizes = [1, 32], strides = [1, 1]} : vector<16x32xf32> to vector<1x32xf32>
    %c32_178 = arith.constant 32 : index
    %c0_179 = arith.constant 0 : index
    %346 = vector.load %arg21[%c32_178, %c0_179] : memref<512x256xf32, #tpu.memory_space<vmem>>, vector<32x256xf32>
    %cst_180 = arith.constant dense<0.000000e+00> : vector<1x256xf32>
    %347 = tpu.matmul %345, %346, %cst_180 {dimension_numbers = #tpu.dot_dimension_numbers<[1], [0], [0], [1], [0, 0, 1, 1], [], []>} : vector<1x32xf32>, vector<32x256xf32>, vector<1x256xf32> -> vector<1x256xf32>
    %348 = arith.addf %344, %347 : vector<1x256xf32>
    %349 = vector.extract_strided_slice %270 {offsets = [2, 0], sizes = [1, 32], strides = [1, 1]} : vector<16x32xf32> to vector<1x32xf32>
    %c64_181 = arith.constant 64 : index
    %c0_182 = arith.constant 0 : index
    %350 = vector.load %arg21[%c64_181, %c0_182] : memref<512x256xf32, #tpu.memory_space<vmem>>, vector<32x256xf32>
    %cst_183 = arith.constant dense<0.000000e+00> : vector<1x256xf32>
    %351 = tpu.matmul %349, %350, %cst_183 {dimension_numbers = #tpu.dot_dimension_numbers<[1], [0], [0], [1], [0, 0, 1, 1], [], []>} : vector<1x32xf32>, vector<32x256xf32>, vector<1x256xf32> -> vector<1x256xf32>
    %352 = arith.addf %348, %351 : vector<1x256xf32>
    %353 = vector.extract_strided_slice %270 {offsets = [3, 0], sizes = [1, 32], strides = [1, 1]} : vector<16x32xf32> to vector<1x32xf32>
    %c96_184 = arith.constant 96 : index
    %c0_185 = arith.constant 0 : index
    %354 = vector.load %arg21[%c96_184, %c0_185] : memref<512x256xf32, #tpu.memory_space<vmem>>, vector<32x256xf32>
    %cst_186 = arith.constant dense<0.000000e+00> : vector<1x256xf32>
    %355 = tpu.matmul %353, %354, %cst_186 {dimension_numbers = #tpu.dot_dimension_numbers<[1], [0], [0], [1], [0, 0, 1, 1], [], []>} : vector<1x32xf32>, vector<32x256xf32>, vector<1x256xf32> -> vector<1x256xf32>
    %356 = arith.addf %352, %355 : vector<1x256xf32>
    %357 = vector.extract_strided_slice %270 {offsets = [4, 0], sizes = [1, 32], strides = [1, 1]} : vector<16x32xf32> to vector<1x32xf32>
    %c128_187 = arith.constant 128 : index
    %c0_188 = arith.constant 0 : index
    %358 = vector.load %arg21[%c128_187, %c0_188] : memref<512x256xf32, #tpu.memory_space<vmem>>, vector<32x256xf32>
    %cst_189 = arith.constant dense<0.000000e+00> : vector<1x256xf32>
    %359 = tpu.matmul %357, %358, %cst_189 {dimension_numbers = #tpu.dot_dimension_numbers<[1], [0], [0], [1], [0, 0, 1, 1], [], []>} : vector<1x32xf32>, vector<32x256xf32>, vector<1x256xf32> -> vector<1x256xf32>
    %360 = arith.addf %356, %359 : vector<1x256xf32>
    %361 = vector.extract_strided_slice %270 {offsets = [5, 0], sizes = [1, 32], strides = [1, 1]} : vector<16x32xf32> to vector<1x32xf32>
    %c160_190 = arith.constant 160 : index
    %c0_191 = arith.constant 0 : index
    %362 = vector.load %arg21[%c160_190, %c0_191] : memref<512x256xf32, #tpu.memory_space<vmem>>, vector<32x256xf32>
    %cst_192 = arith.constant dense<0.000000e+00> : vector<1x256xf32>
    %363 = tpu.matmul %361, %362, %cst_192 {dimension_numbers = #tpu.dot_dimension_numbers<[1], [0], [0], [1], [0, 0, 1, 1], [], []>} : vector<1x32xf32>, vector<32x256xf32>, vector<1x256xf32> -> vector<1x256xf32>
    %364 = arith.addf %360, %363 : vector<1x256xf32>
    %365 = vector.extract_strided_slice %270 {offsets = [6, 0], sizes = [1, 32], strides = [1, 1]} : vector<16x32xf32> to vector<1x32xf32>
    %c192_193 = arith.constant 192 : index
    %c0_194 = arith.constant 0 : index
    %366 = vector.load %arg21[%c192_193, %c0_194] : memref<512x256xf32, #tpu.memory_space<vmem>>, vector<32x256xf32>
    %cst_195 = arith.constant dense<0.000000e+00> : vector<1x256xf32>
    %367 = tpu.matmul %365, %366, %cst_195 {dimension_numbers = #tpu.dot_dimension_numbers<[1], [0], [0], [1], [0, 0, 1, 1], [], []>} : vector<1x32xf32>, vector<32x256xf32>, vector<1x256xf32> -> vector<1x256xf32>
    %368 = arith.addf %364, %367 : vector<1x256xf32>
    %369 = vector.extract_strided_slice %270 {offsets = [7, 0], sizes = [1, 32], strides = [1, 1]} : vector<16x32xf32> to vector<1x32xf32>
    %c224_196 = arith.constant 224 : index
    %c0_197 = arith.constant 0 : index
    %370 = vector.load %arg21[%c224_196, %c0_197] : memref<512x256xf32, #tpu.memory_space<vmem>>, vector<32x256xf32>
    %cst_198 = arith.constant dense<0.000000e+00> : vector<1x256xf32>
    %371 = tpu.matmul %369, %370, %cst_198 {dimension_numbers = #tpu.dot_dimension_numbers<[1], [0], [0], [1], [0, 0, 1, 1], [], []>} : vector<1x32xf32>, vector<32x256xf32>, vector<1x256xf32> -> vector<1x256xf32>
    %372 = arith.addf %368, %371 : vector<1x256xf32>
    %373 = vector.extract_strided_slice %270 {offsets = [8, 0], sizes = [1, 32], strides = [1, 1]} : vector<16x32xf32> to vector<1x32xf32>
    %c256_199 = arith.constant 256 : index
    %c0_200 = arith.constant 0 : index
    %374 = vector.load %arg21[%c256_199, %c0_200] : memref<512x256xf32, #tpu.memory_space<vmem>>, vector<32x256xf32>
    %cst_201 = arith.constant dense<0.000000e+00> : vector<1x256xf32>
    %375 = tpu.matmul %373, %374, %cst_201 {dimension_numbers = #tpu.dot_dimension_numbers<[1], [0], [0], [1], [0, 0, 1, 1], [], []>} : vector<1x32xf32>, vector<32x256xf32>, vector<1x256xf32> -> vector<1x256xf32>
    %376 = arith.addf %372, %375 : vector<1x256xf32>
    %377 = vector.extract_strided_slice %270 {offsets = [9, 0], sizes = [1, 32], strides = [1, 1]} : vector<16x32xf32> to vector<1x32xf32>
    %c288_202 = arith.constant 288 : index
    %c0_203 = arith.constant 0 : index
    %378 = vector.load %arg21[%c288_202, %c0_203] : memref<512x256xf32, #tpu.memory_space<vmem>>, vector<32x256xf32>
    %cst_204 = arith.constant dense<0.000000e+00> : vector<1x256xf32>
    %379 = tpu.matmul %377, %378, %cst_204 {dimension_numbers = #tpu.dot_dimension_numbers<[1], [0], [0], [1], [0, 0, 1, 1], [], []>} : vector<1x32xf32>, vector<32x256xf32>, vector<1x256xf32> -> vector<1x256xf32>
    %380 = arith.addf %376, %379 : vector<1x256xf32>
    %381 = vector.extract_strided_slice %270 {offsets = [10, 0], sizes = [1, 32], strides = [1, 1]} : vector<16x32xf32> to vector<1x32xf32>
    %c320_205 = arith.constant 320 : index
    %c0_206 = arith.constant 0 : index
    %382 = vector.load %arg21[%c320_205, %c0_206] : memref<512x256xf32, #tpu.memory_space<vmem>>, vector<32x256xf32>
    %cst_207 = arith.constant dense<0.000000e+00> : vector<1x256xf32>
    %383 = tpu.matmul %381, %382, %cst_207 {dimension_numbers = #tpu.dot_dimension_numbers<[1], [0], [0], [1], [0, 0, 1, 1], [], []>} : vector<1x32xf32>, vector<32x256xf32>, vector<1x256xf32> -> vector<1x256xf32>
    %384 = arith.addf %380, %383 : vector<1x256xf32>
    %385 = vector.extract_strided_slice %270 {offsets = [11, 0], sizes = [1, 32], strides = [1, 1]} : vector<16x32xf32> to vector<1x32xf32>
    %c352_208 = arith.constant 352 : index
    %c0_209 = arith.constant 0 : index
    %386 = vector.load %arg21[%c352_208, %c0_209] : memref<512x256xf32, #tpu.memory_space<vmem>>, vector<32x256xf32>
    %cst_210 = arith.constant dense<0.000000e+00> : vector<1x256xf32>
    %387 = tpu.matmul %385, %386, %cst_210 {dimension_numbers = #tpu.dot_dimension_numbers<[1], [0], [0], [1], [0, 0, 1, 1], [], []>} : vector<1x32xf32>, vector<32x256xf32>, vector<1x256xf32> -> vector<1x256xf32>
    %388 = arith.addf %384, %387 : vector<1x256xf32>
    %389 = vector.extract_strided_slice %270 {offsets = [12, 0], sizes = [1, 32], strides = [1, 1]} : vector<16x32xf32> to vector<1x32xf32>
    %c384_211 = arith.constant 384 : index
    %c0_212 = arith.constant 0 : index
    %390 = vector.load %arg21[%c384_211, %c0_212] : memref<512x256xf32, #tpu.memory_space<vmem>>, vector<32x256xf32>
    %cst_213 = arith.constant dense<0.000000e+00> : vector<1x256xf32>
    %391 = tpu.matmul %389, %390, %cst_213 {dimension_numbers = #tpu.dot_dimension_numbers<[1], [0], [0], [1], [0, 0, 1, 1], [], []>} : vector<1x32xf32>, vector<32x256xf32>, vector<1x256xf32> -> vector<1x256xf32>
    %392 = arith.addf %388, %391 : vector<1x256xf32>
    %393 = vector.extract_strided_slice %270 {offsets = [13, 0], sizes = [1, 32], strides = [1, 1]} : vector<16x32xf32> to vector<1x32xf32>
    %c416_214 = arith.constant 416 : index
    %c0_215 = arith.constant 0 : index
    %394 = vector.load %arg21[%c416_214, %c0_215] : memref<512x256xf32, #tpu.memory_space<vmem>>, vector<32x256xf32>
    %cst_216 = arith.constant dense<0.000000e+00> : vector<1x256xf32>
    %395 = tpu.matmul %393, %394, %cst_216 {dimension_numbers = #tpu.dot_dimension_numbers<[1], [0], [0], [1], [0, 0, 1, 1], [], []>} : vector<1x32xf32>, vector<32x256xf32>, vector<1x256xf32> -> vector<1x256xf32>
    %396 = arith.addf %392, %395 : vector<1x256xf32>
    %397 = vector.extract_strided_slice %270 {offsets = [14, 0], sizes = [1, 32], strides = [1, 1]} : vector<16x32xf32> to vector<1x32xf32>
    %c448_217 = arith.constant 448 : index
    %c0_218 = arith.constant 0 : index
    %398 = vector.load %arg21[%c448_217, %c0_218] : memref<512x256xf32, #tpu.memory_space<vmem>>, vector<32x256xf32>
    %cst_219 = arith.constant dense<0.000000e+00> : vector<1x256xf32>
    %399 = tpu.matmul %397, %398, %cst_219 {dimension_numbers = #tpu.dot_dimension_numbers<[1], [0], [0], [1], [0, 0, 1, 1], [], []>} : vector<1x32xf32>, vector<32x256xf32>, vector<1x256xf32> -> vector<1x256xf32>
    %400 = arith.addf %396, %399 : vector<1x256xf32>
    %401 = vector.extract_strided_slice %270 {offsets = [15, 0], sizes = [1, 32], strides = [1, 1]} : vector<16x32xf32> to vector<1x32xf32>
    %c480_220 = arith.constant 480 : index
    %c0_221 = arith.constant 0 : index
    %402 = vector.load %arg21[%c480_220, %c0_221] : memref<512x256xf32, #tpu.memory_space<vmem>>, vector<32x256xf32>
    %cst_222 = arith.constant dense<0.000000e+00> : vector<1x256xf32>
    %403 = tpu.matmul %401, %402, %cst_222 {dimension_numbers = #tpu.dot_dimension_numbers<[1], [0], [0], [1], [0, 0, 1, 1], [], []>} : vector<1x32xf32>, vector<32x256xf32>, vector<1x256xf32> -> vector<1x256xf32>
    %404 = arith.addf %400, %403 : vector<1x256xf32>
    %cst_223 = arith.constant 0.000000e+00 : f32
    %405 = vector.broadcast %cst_223 : f32 to vector<1x256xf32>
    %406 = arith.maximumf %404, %405 : vector<1x256xf32>
    %407 = tpu.concatenate %340, %406 in 0 : vector<1x256xf32>, vector<1x256xf32> -> vector<2x256xf32>
    %c0_224 = arith.constant 0 : index
    %c0_225 = arith.constant 0 : index
    %408 = vector.load %arg16[%c0_224, %c0_225] : memref<256x4xf32, #tpu.memory_space<vmem>>, vector<256x4xf32>
    %cst_226 = arith.constant dense<0.000000e+00> : vector<2x4xf32>
    %409 = tpu.matmul %407, %408, %cst_226 {dimension_numbers = #tpu.dot_dimension_numbers<[1], [0], [0], [1], [0, 0, 1, 1], [], []>} : vector<2x256xf32>, vector<256x4xf32>, vector<2x4xf32> -> vector<2x4xf32>
    %c0_227 = arith.constant 0 : index
    %c0_228 = arith.constant 0 : index
    %410 = vector.load %arg17[%c0_227, %c0_228] : memref<1x4xf32, #tpu.memory_space<vmem>>, vector<1x4xf32>
    %411 = vector.broadcast %410 : vector<1x4xf32> to vector<2x4xf32>
    %412 = arith.addf %409, %411 : vector<2x4xf32>
    %c0_229 = arith.constant 0 : index
    %c0_230 = arith.constant 0 : index
    %413 = vector.load %arg18[%c0_229, %c0_230] : memref<2x4xf32, #tpu.memory_space<vmem>>, vector<2x4xf32>
    tpu.vector_store %arg18[%c0_229, %c0_230], %412 {strides = array<i32>} : memref<2x4xf32, #tpu.memory_space<vmem>>, vector<2x4xf32>,
    return
  }
}

</mosaic_0001>

<bundles_post_ra>
// kernel: model_forward.1
= control target key start
LH: loop header
LB: loop body
LE: loop exit
PB: predicated region body
PF: predicated region fallthrough
CT: control target
= control target key end

     0   :  { %s7634_s0 = inlined_call_operand.vmem [shape: f32[2,16,1], index: 0, kind: input, shape index: {}]   ;;  %s7635_s1 = inlined_call_operand.vmem [shape: f32[16,32], index: 1, kind: input, shape index: {}]   ;;  %s7636_s2 = inlined_call_operand.vmem [shape: f32[2,32], index: 2, kind: input, shape index: {}]   ;;  %s7637_s3 = inlined_call_operand.vmem [shape: f32[2,32,96], index: 3, kind: input, shape index: {}]   ;;  %s7638_s4 = inlined_call_operand.vmem [shape: f32[2,32,32], index: 4, kind: input, shape index: {}]   ;;  %s7639_s5 = inlined_call_operand.vmem [shape: f32[2,1,32], index: 5, kind: input, shape index: {}]   ;;  %s7640_s6 = inlined_call_operand.vmem [shape: f32[2,1,32], index: 6, kind: input, shape index: {}]   ;;  %s7641_s7 = inlined_call_operand.vmem [shape: f32[2,1,32], index: 7, kind: input, shape index: {}]   ;;  %s7642_s8 = inlined_call_operand.vmem [shape: f32[2,32,64], index: 8, kind: input, shape index: {}]   ;;  %s7643_s9 = inlined_call_operand.vmem [shape: f32[2,1,64], index: 9, kind: input, shape index: {}]   ;;  %s7644_s10 = inlined_call_operand.vmem [shape: f32[2,64,32], index: 10, kind: input, shape index: {}]   ;;  %s7645_s11 = inlined_call_operand.vmem [shape: f32[2,1,32], index: 11, kind: input, shape index: {}]   ;;  %s7646_s12 = inlined_call_operand.vmem [shape: f32[2,1,32], index: 12, kind: input, shape index: {}]   ;;  %s7647_s13 = inlined_call_operand.vmem [shape: f32[2,1,32], index: 13, kind: input, shape index: {}]   ;;  %s7648_s14 = inlined_call_operand.hbm [shape: f32[512,256], index: 14, kind: input, shape index: {}]   ;;  %s7649_s15 = inlined_call_operand.vmem [shape: f32[1,256], index: 15, kind: input, shape index: {}]   ;;  %s7650_s16 = inlined_call_operand.vmem [shape: f32[256,4], index: 16, kind: input, shape index: {}]   ;;  %s7651_s17 = inlined_call_operand.vmem [shape: f32[1,4], index: 17, kind: input, shape index: {}]   ;;  %s7652_s18 = inlined_call_operand.hbm [shape: f32[2,4], index: 18, kind: output, shape index: {0}]   ;;  %s7653_s19 = inlined_call_operand.hbm [shape: f32[2,16,32], index: 19, kind: output, shape index: {1}]   ;;  %s7654_s20 = inlined_call_operand.hbm [shape: f32[2,16,16], index: 20, kind: output, shape index: {2}]  }
   0x1   :  { %7673 = sst [smem:[#allocation27_spill]] %s7634_s0 }
   0x2   :  { %7674 = sst [smem:[#allocation28_spill]] %s7635_s1 }
   0x3   :  { %7675 = sst [smem:[#allocation29_spill]] %s7636_s2 }
   0x4   :  { %7676 = sst [smem:[#allocation30_spill]] %s7637_s3 }
   0x5   :  { %7677 = sst [smem:[#allocation31_spill]] %s7638_s4 }
   0x6   :  { %26 = vsyncpa [#allocation5], 0  ;;  %s7678_s23 = sld [smem:[#allocation30_spill]]  ;;  %s7679_s29 = sld [smem:[#allocation28_spill]]  ;;  %vm93_vm0 = vcmask 261120  }
   0x7   :  { %s7680_s21 = sld [smem:[#allocation29_spill]] }
   0xc   :  { %v89_v0 = vld [vmem:[%s7678_s23] sm:$0xff]  ;;  %v90_v1 = vld [vmem:[%s7678_s23 + $0x8] sm:$0xff]  ;;  %v91_v2 = vld [vmem:[%s7678_s23 + $0x10] sm:$0xff] }
   0xd   :  { %v5893_v3 = vpack.c.bf16 %v90_v1, %v89_v0  ;;  %v92_v4 = vld [vmem:[%s7678_s23 + $0x18] sm:$0xff]  ;;  %v73_v5 = vld [vmem:[%s7679_s29] sm:$0xff] }
   0xe   :  { %v5897_v6 = vpack.c.bf16 %v92_v4, %v91_v2  ;;  %v5431_v7 = vld [vmem:[%s7680_s21] ss:$0 sm:$0xff] }
   0xf   :  { %27 = vsyncpa [#allocation7], 0  ;;  %5894 = vmatprep.subr.bf16.mxu0 %v5893_v3  ;;  %v6656_v8 = vadd.f32 %v5431_v7, %v73_v5  ;;  %v74_v9 = vld [vmem:[%s7679_s29 + $0x8] sm:$0xff]  ;;  %v5432_v10 = vld [vmem:[%s7680_s21 + $0x1] ss:$0 sm:$0xff]  ;;  %s6522_s25 = smov 96  }
  0x10   :  { %5896 = vmatpush3.bf16.msra.mxu0 %v5893_v3  ;;  %v6666_v11 = vadd.f32 %v5431_v7, %v74_v9  ;;  %v6668_v12 = vadd.f32 %v5432_v10, %v73_v5  ;;  %v6670_v13 = vadd.f32 %v5432_v10, %v74_v9  ;;  %vm6687_vm1 = vmpackc.low %vm93_vm0, %vm93_vm0  ;;  %vm282_vm2 = vcmask 130048   ;;  %s6523_s3 = smov 64   ;;  %s7683_s28 = sld [smem:[#allocation31_spill]] }
  0x11   :  { %5898 = vmatprep.subr.bf16.mxu0 %v5897_v6  ;;  %5717 = vmatprep.mubr.msk.f32.mxu0 %vm93_vm0, %v6656_v8  ;;  %vm906_vm3 = vcmask 523264   ;;  %s7684_s29 = sld [smem:[#allocation27_spill]] }
  0x14   :  { %5900 = vmatpush3.bf16.msra.mxu0 %v5897_v6 }
  0x16   :  { %v592_v61 = vld [vmem:[%s7683_s28] sm:$0xff]  ;;  %v593_v62 = vld [vmem:[%s7683_s28 + $0x8] sm:$0xff]  ;;  %v594_v63 = vld [vmem:[%s7683_s28 + $0x10] sm:$0xff] }
  0x17   :  { %5718 = vmatmul.mubr.msk.f32.vlgmr.msra.gmra.mrb[0].mxu0 %vm93_vm0, %v6666_v11  ;;  %v5921_v0 = vpack.c.bf16 %v593_v62, %v592_v61  ;;  %v595_v1 = vld [vmem:[%s7683_s28 + $0x18] sm:$0xff] }
  0x18   :  { %5720 = vmatprep.mubr.msk.f32.mxu0 %vm93_vm0, %v6668_v12  ;;  %v5925_v2 = vpack.c.bf16 %v595_v1, %v594_v63  ;;  %v779_v1 = vld [vmem:[%s7642_s8] sm:$0xff] }
  0x1b   :  { %5721 = vmatmul.mubr.msk.f32.gmra.mrb[2].mxu0 %vm93_vm0, %v6670_v13 }
  0xea   :  { %v5719_v14 = vpop.f32.mrb[0].mxu0 }
  0xeb   :  { %v172_v15 = vpop.f32.mrb[1].mxu0 }
  0xec   :  { %v6678_v16 = vpack.i.bf16 %v5719_v14, %v172_v15  ;;  %5727 = vmatprep.mubr.msk.f32.mxu1 %vm93_vm0, %v172_v15 }
  0xee   :  { %6313 = vrot.lane.b32.xlu0 %v6678_v16, %s6522_s25  ;;  %v5722_v17 = vpop.f32.mrb[2].mxu0 }
  0xef   :  { %v182_v18 = vpop.f32.mrb[3].mxu0 }
  0xf0   :  { %v6327_v19 = vpack.i.bf16 %v5722_v17, %v182_v18  ;;  %5741 = vmatprep.mubr.msk.f32.mxu0 %vm93_vm0, %v182_v18 }
  0xf2   :  { %6318 = vrot.lane.b32.xlu0 %v6327_v19, %s6522_s25 }
 0x160   :  { %v6314_v20 = vpop.permute.xlu0 %6313 }
 0x161   :  { %v6316_v21 = vunpack.i.h.bf16 %v6314_v20  ;;  %v6315_v22 = vunpack.i.l.bf16 %v6314_v20 }
 0x163   :  { %v5901_v24 = vpack.c.bf16 %v6316_v21, %v6315_v22 }
 0x164   :  { %v6319_v25 = vpop.permute.xlu0 %6318 }
 0x165   :  { %v6321_v26 = vunpack.i.h.bf16 %v6319_v25  ;;  %v6320_v27 = vunpack.i.l.bf16 %v6319_v25  ;;  %5903 = vmatprep.subr.msk.bf16.mxu1 %vm6687_vm1, %v5901_v24 }
 0x166   :  { %5906 = vmatpush3.bf16.xpose.msk.msra.mxu1 %vm6687_vm1, %v5901_v24 }
 0x167   :  { %v5911_v28 = vpack.c.bf16 %v6321_v26, %v6320_v27 }
 0x169   :  { %5913 = vmatprep.subr.msk.bf16.mxu0 %vm6687_vm1, %v5911_v28 }
 0x16a   :  { %5916 = vmatpush3.bf16.xpose.msk.msra.mxu0 %vm6687_vm1, %v5911_v28 }
 0x16b   :  { %5922 = vmatprep.subr.bf16.mxu0 %v5921_v0 }
 0x16d   :  { %5728 = vmatmul.mubr.msk.f32.vlgmr.msra.gmra.mrb[0].mxu1 %vm93_vm0, %v5719_v14 }
 0x171   :  { %5742 = vmatmul.mubr.msk.f32.vlgmr.msra.gmra.mrb[4].mxu0 %vm93_vm0, %v5722_v17 }
 0x172   :  { %5924 = vmatpush3.bf16.msra.mxu0 %v5921_v0 }
 0x173   :  { %5926 = vmatprep.subr.bf16.mxu0 %v5925_v2 }
 0x176   :  { %5928 = vmatpush3.bf16.msra.mxu0 %v5925_v2  ;;  %v780_v2 = vld [vmem:[%s7642_s8 + $0x8] sm:$0xff] }
 0x240   :  { %v5729_v29 = vpop.f32.mrb[0].mxu1 }
 0x241   :  { %v271_v30 = vpop.f32.mrb[1].mxu1  ;;  %v281_v32 = vmul.f32 0.17677669, %v5729_v29 }
 0x242   :  { %v280_v31 = vmul.f32 0.17677669, %v271_v30 }
 0x243   :  { %v286_v38 = vsel %vm282_vm2, %v281_v32, -inf }
 0x244   :  { %v5743_v33 = vpop.f32.mrb[4].mxu0  ;;  %v283_v34 = vsel %vm282_vm2, %v280_v31, -inf }
 0x245   :  { %284 = vmax.xlane.f32.xlu1 %v283_v34  ;;  %v472_v35 = vpop.f32.mrb[5].mxu0  ;;  %v482_v37 = vmul.f32 0.17677669, %v5743_v33 }
 0x246   :  { %v481_v36 = vmul.f32 0.17677669, %v472_v35 }
 0x247   :  { %v486_v40 = vsel %vm282_vm2, %v482_v37, -inf }
 0x248   :  { %v483_v39 = vsel %vm282_vm2, %v481_v36, -inf }
 0x249   :  { %287 = vmax.xlane.f32.xlu1 %v286_v38  ;;  %484 = vmax.xlane.f32.xlu0 %v483_v39 }
 0x24d   :  { %487 = vmax.xlane.f32.xlu1 %v486_v40 }
 0x25f   :  { %6328 = vrot.lane.b32.xlu0 %v6327_v19, %s6523_s3 }
 0x2d2   :  { %v285_v41 = vpop.xlane.xlu1 %284 }
 0x2d3   :  { %v289_v42 = vsub.f32 %v280_v31, %v285_v41 }
 0x2d5   :  { %v291_v45 = vmul.f32 1.442695, %v289_v42 }
 0x2d6   :  { %v288_v43 = vpop.xlane.xlu1 %287  ;;  %v485_v47 = vpop.xlane.xlu0 %484 }
 0x2d7   :  { %v290_v44 = vsub.f32 %v281_v32, %v288_v43  ;;  %v489_v50 = vsub.f32 %v481_v36, %v485_v47  ;;  %v5449_v32 = vld [vmem:[%s7639_s5] ss:$0 sm:$0xff] }
 0x2d9   :  { %v293_v46 = vmul.f32 1.442695, %v290_v44  ;;  %v491_v52 = vmul.f32 1.442695, %v489_v50 }
 0x2da   :  { %v488_v48 = vpop.xlane.xlu1 %487  ;;  %v6329_v7 = vpop.permute.xlu0 %6328 }
 0x2db   :  { %6364 = vpow2.f32 %v293_v46  ;;  %v490_v49 = vsub.f32 %v482_v37, %v488_v48  ;;  %v6331_v15 = vunpack.i.h.bf16 %v6329_v7 }
 0x2dc   :  { %6366 = vpow2.f32 %v291_v45 }
 0x2dd   :  { %v493_v51 = vmul.f32 1.442695, %v490_v49 }
 0x2df   :  { %6368 = vpow2.f32 %v493_v51 }
 0x2e0   :  { %6370 = vpow2.f32 %v491_v52 }
 0x2e5   :  { %v6365_v53 = vpop.eup %6364 }
 0x2e6   :  { %v298_v54 = vsel %vm282_vm2, %v6365_v53, 0.0  ;;  %v6367_v55 = vpop.eup %6366 }
 0x2e7   :  { %299 = vadd.xlane.f32.xlu1 %v298_v54  ;;  %v295_v56 = vsel %vm282_vm2, %v6367_v55, 0.0 }
 0x2e9   :  { %v6369_v57 = vpop.eup %6368 }
 0x2ea   :  { %v498_v58 = vsel %vm282_vm2, %v6369_v57, 0.0  ;;  %v6371_v59 = vpop.eup %6370 }
 0x2eb   :  { %296 = vadd.xlane.f32.xlu1 %v295_v56  ;;  %v495_v60 = vsel %vm282_vm2, %v6371_v59, 0.0 }
 0x2ef   :  { %499 = vadd.xlane.f32.xlu1 %v498_v58 }
 0x2f3   :  { %496 = vadd.xlane.f32.xlu1 %v495_v60 }
 0x304   :  { %6323 = vrot.lane.b32.xlu1 %v6678_v16, %s6523_s3  ;;  %v6330_v16 = vunpack.i.l.bf16 %v6329_v7  ;;  %v891_v7 = vld [vmem:[%s7644_s10] sm:$0xff] }
 0x306   :  { %v5917_v21 = vpack.c.bf16 %v6331_v15, %v6330_v16 }
 0x374   :  { %v300_v3 = vpop.xlane.xlu1 %299 }
 0x378   :  { %v297_v4 = vpop.xlane.xlu1 %296 }
 0x379   :  { %6372 = vrcp.f32 %v297_v4  ;;  %v781_v4 = vld [vmem:[%s7642_s8 + $0x10] sm:$0xff] }
 0x37a   :  { %6374 = vrcp.f32 %v300_v3  ;;  %v5929_v3 = vpack.c.bf16 %v780_v2, %v779_v1 }
 0x37c   :  { %v500_v5 = vpop.xlane.xlu1 %499 }
 0x380   :  { %v497_v6 = vpop.xlane.xlu1 %496 }
 0x381   :  { %6376 = vrcp.f32 %v497_v6 }
 0x382   :  { %6378 = vrcp.f32 %v500_v5  ;;  %v782_v5 = vld [vmem:[%s7642_s8 + $0x18] sm:$0xff] }
 0x383   :  { %v6373_v9 = vpop.eup %6372  ;;  %v5933_v6 = vpack.c.bf16 %v782_v5, %v781_v4 }
 0x384   :  { %v6324_v10 = vpop.permute.xlu1 %6323  ;;  %v303_v14 = vmul.f32 %v6373_v9, %v6367_v55  ;;  %v6375_v20 = vpop.eup %6374  ;;  %v892_v9 = vld [vmem:[%s7644_s10 + $0x8] sm:$0xff] }
 0x385   :  { %v6326_v17 = vunpack.i.h.bf16 %v6324_v10  ;;  %v6325_v18 = vunpack.i.l.bf16 %v6324_v10  ;;  %v304_v24 = vmul.f32 %v6375_v20, %v6365_v53  ;;  %v5937_v10 = vpack.c.bf16 %v892_v9, %v891_v7 }
 0x386   :  { %5734 = vmatprep.mubr.msk.f32.mxu1 %vm282_vm2, %v303_v14 }
 0x387   :  { %v5907_v19 = vpack.c.bf16 %v6326_v17, %v6325_v18 }
 0x389   :  { %5908 = vmatprep.subr.bf16.mxu1 %v5907_v19 }
 0x38a   :  { %5910 = vmatpush3.bf16.msra.mxu1 %v5907_v19 }
 0x38b   :  { %v6377_v22 = vpop.eup %6376  ;;  %5918 = vmatprep.subr.bf16.mxu1 %v5917_v21 }
 0x38c   :  { %v6379_v25 = vpop.eup %6378  ;;  %v503_v26 = vmul.f32 %v6377_v22, %v6371_v59 }
 0x38d   :  { %5735 = vmatmul.mubr.msk.f32.vlgmr.msra.gmra.mrb[2].mxu1 %vm282_vm2, %v304_v24  ;;  %v504_v27 = vmul.f32 %v6379_v25, %v6369_v57 }
 0x38e   :  { %5920 = vmatpush3.bf16.msra.mxu1 %v5917_v21  ;;  %5748 = vmatprep.mubr.msk.f32.mxu1 %vm282_vm2, %v503_v26 }
 0x38f   :  { %5930 = vmatprep.subr.bf16.mxu1 %v5929_v3 }
 0x391   :  { %5749 = vmatmul.mubr.msk.f32.vlgmr.msra.gmra.mrb[4].mxu1 %vm282_vm2, %v504_v27 }
 0x392   :  { %5932 = vmatpush3.bf16.msra.mxu1 %v5929_v3 }
 0x393   :  { %5934 = vmatprep.subr.bf16.mxu1 %v5933_v6 }
 0x396   :  { %5936 = vmatpush3.bf16.msra.mxu1 %v5933_v6 }
 0x397   :  { %5938 = vmatprep.subr.bf16.mxu1 %v5937_v10 }
 0x460   :  { %v5736_v28 = vpop.f32.mrb[2].mxu1 }
 0x461   :  { %v383_v29 = vpop.f32.mrb[3].mxu1 }
 0x462   :  { %5759 = vmatprep.mubr.msk.f32.mxu0 %vm93_vm0, %v383_v29 }
 0x463   :  { %5760 = vmatmul.mubr.msk.f32.vlgmr.msra.gmra.mrb[6].mxu0 %vm93_vm0, %v5736_v28  ;;  %v5454_v28 = vld [vmem:[%s7640_s6] ss:$0 sm:$0xff] }
 0x464   :  { %v5750_v30 = vpop.f32.mrb[4].mxu1 }
 0x465   :  { %v583_v31 = vpop.f32.mrb[5].mxu1 }
 0x466   :  { %5762 = vmatprep.mubr.msk.f32.mxu0 %vm93_vm0, %v583_v31 }
 0x467   :  { %5763 = vmatmul.mubr.msk.f32.gmra.mrb[8].mxu0 %vm93_vm0, %v5750_v30 }
 0x536   :  { %v5761_v33 = vpop.f32.mrb[6].mxu0 }
 0x537   :  { %v687_v34 = vadd.f32 %v5761_v33, %v5449_v32  ;;  %v681_v35 = vpop.f32.mrb[7].mxu0 }
 0x538   :  { %v682_v36 = vadd.f32 %v5449_v32, %v681_v35  ;;  %v893_v35 = vld [vmem:[%s7644_s10 + $0x10] sm:$0xff] }
 0x539   :  { %v701_v37 = vadd.f32 %v687_v34, %v6666_v11 }
 0x53a   :  { %v5764_v38 = vpop.f32.mrb[8].mxu0  ;;  %v700_v39 = vadd.f32 %v682_v36, %v6656_v8  ;;  %v894_v36 = vld [vmem:[%s7644_s10 + $0x18] sm:$0xff] }
 0x53b   :  { %v691_v40 = vpop.f32.mrb[9].mxu0  ;;  %v709_v41 = vsel %vm93_vm0, %v701_v37, 0.0  ;;  %v697_v42 = vadd.f32 %v5764_v38, %v5449_v32 }
 0x53c   :  { %v692_v43 = vadd.f32 %v5449_v32, %v691_v40  ;;  %710 = vadd.xlane.f32.xlu0 %v709_v41  ;;  %v706_v44 = vsel %vm93_vm0, %v700_v39, 0.0  ;;  %v5455_v32 = vld [vmem:[%s7641_s7] ss:$0 sm:$0xff]  ;;  %v5941_v41 = vpack.c.bf16 %v894_v36, %v893_v35 }
 0x53d   :  { %707 = vadd.xlane.f32.xlu1 %v706_v44  ;;  %v703_v47 = vadd.f32 %v697_v42, %v6670_v13  ;;  %v896_v44 = vld [vmem:[%s7644_s10 + $0x28] sm:$0xff] }
 0x53e   :  { %v702_v45 = vadd.f32 %v692_v43, %v6668_v12  ;;  %v895_v43 = vld [vmem:[%s7644_s10 + $0x20] sm:$0xff] }
 0x53f   :  { %v715_v11 = vsel %vm93_vm0, %v703_v47, 0.0 }
 0x540   :  { %v712_v46 = vsel %vm93_vm0, %v702_v45, 0.0 }
 0x541   :  { %713 = vadd.xlane.f32.xlu1 %v712_v46 }
 0x545   :  { %716 = vadd.xlane.f32.xlu1 %v715_v11  ;;  %v5945_v11 = vpack.c.bf16 %v896_v44, %v895_v43  ;;  %v5470_v44 = vld [vmem:[%s7678_s23 + $0x30] sm:$0xff] }
 0x5c9   :  { %v711_v8 = vpop.xlane.xlu0 %710 }
 0x5ca   :  { %v720_v48 = vmul.f32 0.03125, %v711_v8  ;;  %v708_v49 = vpop.xlane.xlu1 %707 }
 0x5cb   :  { %v719_v50 = vmul.f32 0.03125, %v708_v49  ;;  %v897_v49 = vld [vmem:[%s7644_s10 + $0x30] sm:$0xff] }
 0x5cc   :  { %v724_v51 = vsub.f32 %v701_v37, %v720_v48 }
 0x5cd   :  { %v723_v52 = vsub.f32 %v700_v39, %v719_v50  ;;  %v898_v50 = vld [vmem:[%s7644_s10 + $0x38] sm:$0xff] }
 0x5ce   :  { %v714_v53 = vpop.xlane.xlu1 %713  ;;  %v728_v54 = vmul.f32 %v724_v51, %v724_v51 }
 0x5cf   :  { %v721_v55 = vmul.f32 0.03125, %v714_v53  ;;  %v727_v56 = vmul.f32 %v723_v52, %v723_v52 }
 0x5d0   :  { %v734_v12 = vsel %vm93_vm0, %v728_v54, 0.0 }
 0x5d1   :  { %v725_v57 = vsub.f32 %v702_v45, %v721_v55  ;;  %735 = vadd.xlane.f32.xlu0 %v734_v12  ;;  %v731_v13 = vsel %vm93_vm0, %v727_v56, 0.0 }
 0x5d2   :  { %732 = vadd.xlane.f32.xlu1 %v731_v13  ;;  %v717_v58 = vpop.xlane.xlu1 %716 }
 0x5d3   :  { %v722_v59 = vmul.f32 0.03125, %v717_v58  ;;  %v729_v60 = vmul.f32 %v725_v57, %v725_v57 }
 0x5d5   :  { %v726_v61 = vsub.f32 %v703_v47, %v722_v59  ;;  %v737_v62 = vsel %vm93_vm0, %v729_v60, 0.0 }
 0x5d6   :  { %738 = vadd.xlane.f32.xlu1 %v737_v62 }
 0x5d7   :  { %v730_v63 = vmul.f32 %v726_v61, %v726_v61 }
 0x5d9   :  { %v740_v0 = vsel %vm93_vm0, %v730_v63, 0.0  ;;  %v5461_v63 = vld [vmem:[%s7645_s11] ss:$0 sm:$0xff] }
 0x5da   :  { %741 = vadd.xlane.f32.xlu0 %v740_v0 }
 0x65e   :  { %v736_v14 = vpop.xlane.xlu0 %735 }
 0x65f   :  { %v744_v15 = vmul.f32 0.03125, %v736_v14  ;;  %v733_v16 = vpop.xlane.xlu1 %732 }
 0x660   :  { %v743_v17 = vmul.f32 0.03125, %v733_v16 }
 0x661   :  { %v748_v18 = vadd.f32 1e-05, %v744_v15 }
 0x662   :  { %v747_v19 = vadd.f32 1e-05, %v743_v17 }
 0x663   :  { %6380 = vrsqrt.f32 %v748_v18  ;;  %v739_v20 = vpop.xlane.xlu1 %738 }
 0x664   :  { %6382 = vrsqrt.f32 %v747_v19  ;;  %v745_v21 = vmul.f32 0.03125, %v739_v20 }
 0x666   :  { %v749_v22 = vadd.f32 1e-05, %v745_v21 }
 0x667   :  { %v742_v24 = vpop.xlane.xlu0 %741 }
 0x668   :  { %6384 = vrsqrt.f32 %v749_v22  ;;  %v746_v25 = vmul.f32 0.03125, %v742_v24 }
 0x66a   :  { %v750_v26 = vadd.f32 1e-05, %v746_v25 }
 0x66c   :  { %6386 = vrsqrt.f32 %v750_v26 }
 0x66d   :  { %v6381_v27 = vpop.eup %6380 }
 0x66e   :  { %v6383_v29 = vpop.eup %6382  ;;  %v756_v30 = vmul.f32 %v6381_v27, %v724_v51  ;;  %v5949_v51 = vpack.c.bf16 %v898_v50, %v897_v49 }
 0x66f   :  { %v755_v31 = vmul.f32 %v6383_v29, %v723_v52  ;;  %v5456_v52 = vld [vmem:[%s7643_s9] ss:$0 sm:$0xff] }
 0x670   :  { %v766_v33 = vmul.f32 %v5454_v28, %v756_v30 }
 0x671   :  { %v765_v34 = vmul.f32 %v5454_v28, %v755_v31 }
 0x672   :  { %v6385_v37 = vpop.eup %6384  ;;  %v776_v40 = vadd.f32 %v5455_v32, %v766_v33 }
 0x673   :  { %v775_v38 = vadd.f32 %v5455_v32, %v765_v34  ;;  %v757_v39 = vmul.f32 %v6385_v37, %v725_v57 }
 0x675   :  { %5773 = vmatprep.mubr.msk.f32.mxu1 %vm93_vm0, %v775_v38  ;;  %v767_v42 = vmul.f32 %v5454_v28, %v757_v39 }
 0x676   :  { %v6387_v45 = vpop.eup %6386  ;;  %5774 = vmatmul.mubr.msk.f32.vlgmr.msra.gmra.mrb[6].mxu1 %vm93_vm0, %v776_v40 }
 0x677   :  { %v777_v46 = vadd.f32 %v5455_v32, %v767_v42  ;;  %v758_v47 = vmul.f32 %v6387_v45, %v726_v61  ;;  %5940 = vmatpush3.bf16.msra.mxu1 %v5937_v10  ;;  %v5469_v42 = vld [vmem:[%s7678_s23 + $0x28] sm:$0xff]  ;;  %v5471_v45 = vld [vmem:[%s7678_s23 + $0x38] sm:$0xff] }
 0x678   :  { %5942 = vmatprep.subr.bf16.mxu1 %v5941_v41 }
 0x679   :  { %5776 = vmatprep.mubr.msk.f32.mxu1 %vm93_vm0, %v777_v46  ;;  %v768_v8 = vmul.f32 %v5454_v28, %v758_v47 }
 0x67b   :  { %v778_v48 = vadd.f32 %v5455_v32, %v768_v8  ;;  %5944 = vmatpush3.bf16.msra.mxu1 %v5941_v41  ;;  %v5468_v41 = vld [vmem:[%s7678_s23 + $0x20] sm:$0xff]  ;;  %s6526_s23 = smov [#allocation2]  }
 0x67c   :  { %5946 = vmatprep.subr.bf16.mxu1 %v5945_v11  ;;  %v5953_v43 = vpack.c.bf16 %v5469_v42, %v5468_v41  ;;  %s69_s21 = sshll.u32 %s6526_s23, 4  ;;  %s70_s21 = int_to_ptr.vmem [resolvable:$true] %s69_s21 }
 0x67d   :  { %5777 = vmatmul.mubr.msk.f32.gmra.mrb[8].mxu1 %vm93_vm0, %v778_v48 }
 0x67f   :  { %5948 = vmatpush3.bf16.msra.mxu1 %v5945_v11 }
 0x680   :  { %5950 = vmatprep.subr.bf16.mxu1 %v5949_v51 }
 0x683   :  { %5952 = vmatpush3.bf16.msra.mxu1 %v5949_v51 }
 0x684   :  { %5954 = vmatprep.subr.bf16.mxu1 %v5953_v43 }
 0x749   :  { %v5775_v53 = vpop.f32.mrb[6].mxu1 }
 0x74a   :  { %v874_v54 = vadd.f32 %v5775_v53, %v5456_v52  ;;  %v868_v55 = vpop.f32.mrb[7].mxu1 }
 0x74b   :  { %v869_v56 = vadd.f32 %v5456_v52, %v868_v55 }
 0x74c   :  { %v888_v57 = vmax.f32 %v874_v54, 0.0 }
 0x74d   :  { %v887_v12 = vmax.f32 %v869_v56, 0.0 }
 0x74f   :  { %5795 = vmatprep.mubr.msk.f32.mxu1 %vm906_vm3, %v887_v12 }
 0x750   :  { %v5778_v13 = vpop.f32.mrb[8].mxu1  ;;  %5796 = vmatmul.mubr.msk.f32.vlgmr.msra.gmra.mrb[10].mxu1 %vm906_vm3, %v888_v57  ;;  %v5466_v57 = vld [vmem:[%s7646_s12] ss:$0 sm:$0xff] }
 0x751   :  { %v884_v58 = vadd.f32 %v5778_v13, %v5456_v52  ;;  %v878_v59 = vpop.f32.mrb[9].mxu1  ;;  %5956 = vmatpush3.bf16.msra.mxu1 %v5953_v43 }
 0x752   :  { %v879_v60 = vadd.f32 %v5456_v52, %v878_v59 }
 0x753   :  { %v890_v62 = vmax.f32 %v884_v58, 0.0 }
 0x754   :  { %v889_v61 = vmax.f32 %v879_v60, 0.0  ;;  %v5467_v60 = vld [vmem:[%s7647_s13] ss:$0 sm:$0xff] }
 0x756   :  { %5798 = vmatprep.mubr.msk.f32.mxu1 %vm906_vm3, %v889_v61 }
 0x757   :  { %5799 = vmatmul.mubr.msk.f32.gmra.mrb[12].mxu1 %vm906_vm3, %v890_v62 }
 0x823   :  { %v5797_v0 = vpop.f32.mrb[10].mxu1 }
 0x824   :  { %v991_v1 = vadd.f32 %v5797_v0, %v5461_v63  ;;  %v985_v2 = vpop.f32.mrb[11].mxu1 }
 0x825   :  { %v986_v3 = vadd.f32 %v5461_v63, %v985_v2 }
 0x826   :  { %v1005_v4 = vadd.f32 %v991_v1, %v776_v40 }
 0x827   :  { %v1004_v5 = vadd.f32 %v986_v3, %v775_v38 }
 0x828   :  { %v1013_v6 = vsel %vm93_vm0, %v1005_v4, 0.0 }
 0x829   :  { %1014 = vadd.xlane.f32.xlu0 %v1013_v6  ;;  %v1010_v7 = vsel %vm93_vm0, %v1004_v5, 0.0 }
 0x82a   :  { %1011 = vadd.xlane.f32.xlu1 %v1010_v7  ;;  %v5800_v9 = vpop.f32.mrb[12].mxu1 }
 0x82b   :  { %v1001_v10 = vadd.f32 %v5800_v9, %v5461_v63  ;;  %v995_v14 = vpop.f32.mrb[13].mxu1 }
 0x82c   :  { %v996_v15 = vadd.f32 %v5461_v63, %v995_v14 }
 0x82d   :  { %v1007_v16 = vadd.f32 %v1001_v10, %v778_v48 }
 0x82e   :  { %v1006_v17 = vadd.f32 %v996_v15, %v777_v46  ;;  %v5957_v46 = vpack.c.bf16 %v5471_v45, %v5470_v44 }
 0x82f   :  { %v1019_v18 = vsel %vm93_vm0, %v1007_v16, 0.0 }
 0x830   :  { %1020 = vadd.xlane.f32.xlu0 %v1019_v18  ;;  %v1016_v19 = vsel %vm93_vm0, %v1006_v17, 0.0  ;;  %5958 = vmatprep.subr.bf16.mxu1 %v5957_v46 }
 0x831   :  { %1017 = vadd.xlane.f32.xlu1 %v1016_v19  ;;  %5960 = vmatpush3.bf16.msra.mxu1 %v5957_v46 }
 0x8b6   :  { %v1015_v20 = vpop.xlane.xlu0 %1014 }
 0x8b7   :  { %v1023_v21 = vmul.f32 0.03125, %v1015_v20  ;;  %v1012_v22 = vpop.xlane.xlu1 %1011 }
 0x8b8   :  { %v1022_v24 = vmul.f32 0.03125, %v1012_v22 }
 0x8b9   :  { %v1027_v25 = vsub.f32 %v1005_v4, %v1023_v21 }
 0x8ba   :  { %v1026_v26 = vsub.f32 %v1004_v5, %v1022_v24 }
 0x8bb   :  { %v1031_v27 = vmul.f32 %v1027_v25, %v1027_v25 }
 0x8bc   :  { %v1030_v28 = vmul.f32 %v1026_v26, %v1026_v26 }
 0x8bd   :  { %v1021_v29 = vpop.xlane.xlu0 %1020  ;;  %v1037_v30 = vsel %vm93_vm0, %v1031_v27, 0.0 }
 0x8be   :  { %v1025_v31 = vmul.f32 0.03125, %v1021_v29  ;;  %1038 = vadd.xlane.f32.xlu0 %v1037_v30  ;;  %v1018_v32 = vpop.xlane.xlu1 %1017  ;;  %v1034_v33 = vsel %vm93_vm0, %v1030_v28, 0.0 }
 0x8bf   :  { %v1024_v34 = vmul.f32 0.03125, %v1018_v32  ;;  %1035 = vadd.xlane.f32.xlu1 %v1034_v33 }
 0x8c0   :  { %v1029_v35 = vsub.f32 %v1007_v16, %v1025_v31 }
 0x8c1   :  { %v1028_v36 = vsub.f32 %v1006_v17, %v1024_v34 }
 0x8c2   :  { %v1033_v37 = vmul.f32 %v1029_v35, %v1029_v35 }
 0x8c3   :  { %v1032_v38 = vmul.f32 %v1028_v36, %v1028_v36 }
 0x8c4   :  { %v1043_v39 = vsel %vm93_vm0, %v1033_v37, 0.0 }
 0x8c5   :  { %1044 = vadd.xlane.f32.xlu0 %v1043_v39  ;;  %v1040_v40 = vsel %vm93_vm0, %v1032_v38, 0.0 }
 0x8c6   :  { %1041 = vadd.xlane.f32.xlu1 %v1040_v40 }
 0x94b   :  { %v1039_v47 = vpop.xlane.xlu0 %1038 }
 0x94c   :  { %v1047_v11 = vmul.f32 0.03125, %v1039_v47  ;;  %v1036_v8 = vpop.xlane.xlu1 %1035 }
 0x94d   :  { %v1046_v48 = vmul.f32 0.03125, %v1036_v8 }
 0x94e   :  { %v1051_v49 = vadd.f32 1e-05, %v1047_v11 }
 0x94f   :  { %v1050_v50 = vadd.f32 1e-05, %v1046_v48 }
 0x950   :  { %6388 = vrsqrt.f32 %v1051_v49 }
 0x951   :  { %6390 = vrsqrt.f32 %v1050_v50 }
 0x952   :  { %v1045_v51 = vpop.xlane.xlu0 %1044 }
 0x953   :  { %v1049_v52 = vmul.f32 0.03125, %v1045_v51  ;;  %v1042_v53 = vpop.xlane.xlu1 %1041 }
 0x954   :  { %v1048_v54 = vmul.f32 0.03125, %v1042_v53 }
 0x955   :  { %v1053_v55 = vadd.f32 1e-05, %v1049_v52 }
 0x956   :  { %v1052_v56 = vadd.f32 1e-05, %v1048_v54 }
 0x957   :  { %6392 = vrsqrt.f32 %v1053_v55 }
 0x958   :  { %6394 = vrsqrt.f32 %v1052_v56 }
 0x95a   :  { %v6389_v12 = vpop.eup %6388 }
 0x95b   :  { %v6391_v13 = vpop.eup %6390  ;;  %v1059_v58 = vmul.f32 %v6389_v12, %v1027_v25  ;;  %v5488_v12 = vld [vmem:[%s7683_s28 + $0x20] sm:$0xff] }
 0x95c   :  { %v1058_v59 = vmul.f32 %v6391_v13, %v1026_v26  ;;  %v5490_v13 = vld [vmem:[%s7683_s28 + $0x30] sm:$0xff] }
 0x95d   :  { %v1069_v61 = vmul.f32 %v5466_v57, %v1059_v58 }
 0x95e   :  { %v1068_v62 = vmul.f32 %v5466_v57, %v1058_v59  ;;  %v5491_v59 = vld [vmem:[%s7683_s28 + $0x38] sm:$0xff] }
 0x95f   :  { %v6831_v1 = vadd.f32 %v5467_v60, %v1069_v61 }
 0x960   :  { %v6829_v63 = vadd.f32 %v5467_v60, %v1068_v62 }
 0x961   :  { %v6393_v0 = vpop.eup %6392 }
 0x962   :  { %v6395_v2 = vpop.eup %6394  ;;  %5809 = vmatprep.mubr.msk.f32.mxu1 %vm93_vm0, %v6829_v63  ;;  %v1061_v3 = vmul.f32 %v6393_v0, %v1029_v35 }
 0x963   :  { %5810 = vmatmul.mubr.msk.f32.vlgmr.msra.gmra.mrb[14].mxu1 %vm93_vm0, %v6831_v1  ;;  %v1060_v4 = vmul.f32 %v6395_v2, %v1028_v36 }
 0x964   :  { %v1071_v5 = vmul.f32 %v5466_v57, %v1061_v3 }
 0x965   :  { %v1070_v6 = vmul.f32 %v5466_v57, %v1060_v4  ;;  %v5489_v57 = vld [vmem:[%s7683_s28 + $0x28] sm:$0xff] }
 0x966   :  { %v6839_v9 = vadd.f32 %v5467_v60, %v1071_v5  ;;  %v5981_v58 = vpack.c.bf16 %v5489_v57, %v5488_v12 }
 0x967   :  { %v6837_v7 = vadd.f32 %v5467_v60, %v1070_v6  ;;  %v5985_v60 = vpack.c.bf16 %v5491_v59, %v5490_v13  ;;  %v5503_v59 = vld [vmem:[%s7642_s8 + $0x28] sm:$0xff] }
 0x969   :  { %5812 = vmatprep.mubr.msk.f32.mxu1 %vm93_vm0, %v6837_v7 }
 0x96a   :  { %5813 = vmatmul.mubr.msk.f32.gmra.mrb[16].mxu1 %vm93_vm0, %v6839_v9 }
 0xa36   :  { %v5811_v10 = vpop.f32.mrb[14].mxu1 }
 0xa37   :  { %v1165_v14 = vpop.f32.mrb[15].mxu1 }
 0xa38   :  { %v6845_v15 = vpack.i.bf16 %v5811_v10, %v1165_v14  ;;  %5819 = vmatprep.mubr.msk.f32.mxu1 %vm93_vm0, %v1165_v14 }
 0xa3a   :  { %6333 = vrot.lane.b32.xlu1 %v6845_v15, %s6522_s25 }
 0xa3d   :  { %v5814_v16 = vpop.f32.mrb[16].mxu1 }
 0xa3e   :  { %v1175_v17 = vpop.f32.mrb[17].mxu1 }
 0xa3f   :  { %v6347_v18 = vpack.i.bf16 %v5814_v16, %v1175_v17  ;;  %5833 = vmatprep.mubr.msk.f32.mxu0 %vm93_vm0, %v1175_v17 }
 0xa41   :  { %6338 = vrot.lane.b32.xlu0 %v6347_v18, %s6522_s25  ;;  %s6428_s25 = scalar_lea.hbm %s7648_s14, 16384 }
 0xa42   :  { %p6429_p0 = scmp.ne.s32.totalorder %s7648_s14, %s6428_s25  ;;  %p6432_p1 = scmp.lt.u32.totalorder %s6428_s25, %s7648_s14 }
 0xa44   :  { %p6434_p2 = pnand %p6432_p1, %p6429_p0 }
 0xaac   :  { %v6334_v19 = vpop.permute.xlu1 %6333 }
 0xaad   :  { %v6336_v20 = vunpack.i.h.bf16 %v6334_v19  ;;  %v6335_v21 = vunpack.i.l.bf16 %v6334_v19 }
 0xaaf   :  { %v5961_v22 = vpack.c.bf16 %v6336_v20, %v6335_v21 }
 0xab1   :  { %5963 = vmatprep.subr.msk.bf16.mxu1 %vm6687_vm1, %v5961_v22 }
 0xab2   :  { %5966 = vmatpush3.bf16.xpose.msk.msra.mxu1 %vm6687_vm1, %v5961_v22 }
 0xab3   :  { %v6339_v24 = vpop.permute.xlu0 %6338 }
 0xab4   :  { %v6341_v25 = vunpack.i.h.bf16 %v6339_v24  ;;  %v6340_v26 = vunpack.i.l.bf16 %v6339_v24 }
 0xab6   :  { %v5971_v27 = vpack.c.bf16 %v6341_v25, %v6340_v26 }
 0xab8   :  { %5973 = vmatprep.subr.msk.bf16.mxu0 %vm6687_vm1, %v5971_v27 }
 0xab9   :  { %5820 = vmatmul.mubr.msk.f32.vlgmr.msra.gmra.mrb[18].mxu1 %vm93_vm0, %v5811_v10  ;;  %5976 = vmatpush3.bf16.xpose.msk.msra.mxu0 %vm6687_vm1, %v5971_v27 }
 0xaba   :  { %5982 = vmatprep.subr.bf16.mxu0 %v5981_v58 }
 0xac0   :  { %5834 = vmatmul.mubr.msk.f32.vlgmr.msra.gmra.mrb[10].mxu0 %vm93_vm0, %v5814_v16 }
 0xac1   :  { %5984 = vmatpush3.bf16.msra.mxu0 %v5981_v58  ;;  %v5502_v58 = vld [vmem:[%s7642_s8 + $0x20] sm:$0xff] }
 0xac2   :  { %5986 = vmatprep.subr.bf16.mxu0 %v5985_v60 }
 0xac5   :  { %5988 = vmatpush3.bf16.msra.mxu0 %v5985_v60  ;;  %v5989_v60 = vpack.c.bf16 %v5503_v59, %v5502_v58 }
 0xb8c   :  { %v5821_v28 = vpop.f32.mrb[18].mxu1 }
 0xb8d   :  { %v1274_v29 = vmul.f32 0.17677669, %v5821_v28  ;;  %v1264_v30 = vpop.f32.mrb[19].mxu1 }
 0xb8e   :  { %v1273_v31 = vmul.f32 0.17677669, %v1264_v30  ;;  %v5493_v30 = vld [vmem:[%s7639_s5 + $0x1] ss:$0 sm:$0xff] }
 0xb8f   :  { %v1278_v32 = vsel %vm282_vm2, %v1274_v29, -inf }
 0xb90   :  { %1279 = vmax.xlane.f32.xlu0 %v1278_v32  ;;  %v1275_v33 = vsel %vm282_vm2, %v1273_v31, -inf }
 0xb91   :  { %1276 = vmax.xlane.f32.xlu1 %v1275_v33 }
 0xb93   :  { %v5835_v34 = vpop.f32.mrb[10].mxu0 }
 0xb94   :  { %v1476_v35 = vmul.f32 0.17677669, %v5835_v34  ;;  %v1466_v36 = vpop.f32.mrb[11].mxu0 }
 0xb95   :  { %v1475_v37 = vmul.f32 0.17677669, %v1466_v36 }
 0xb96   :  { %v1480_v38 = vsel %vm282_vm2, %v1476_v35, -inf }
 0xb97   :  { %1481 = vmax.xlane.f32.xlu0 %v1480_v38  ;;  %v1477_v23 = vsel %vm282_vm2, %v1475_v37, -inf }
 0xb98   :  { %1478 = vmax.xlane.f32.xlu1 %v1477_v23 }
 0xc1d   :  { %v1280_v39 = vpop.xlane.xlu0 %1279 }
 0xc1e   :  { %v1282_v40 = vsub.f32 %v1274_v29, %v1280_v39  ;;  %v1277_v41 = vpop.xlane.xlu1 %1276 }
 0xc1f   :  { %v1281_v42 = vsub.f32 %v1273_v31, %v1277_v41 }
 0xc20   :  { %v1285_v43 = vmul.f32 1.442695, %v1282_v40 }
 0xc21   :  { %v1283_v44 = vmul.f32 1.442695, %v1281_v42 }
 0xc22   :  { %6396 = vpow2.f32 %v1285_v43 }
 0xc23   :  { %6398 = vpow2.f32 %v1283_v44 }
 0xc24   :  { %v1482_v45 = vpop.xlane.xlu0 %1481 }
 0xc25   :  { %v1484_v46 = vsub.f32 %v1476_v35, %v1482_v45  ;;  %v1479_v47 = vpop.xlane.xlu1 %1478 }
 0xc26   :  { %v1483_v11 = vsub.f32 %v1475_v37, %v1479_v47 }
 0xc27   :  { %v1487_v8 = vmul.f32 1.442695, %v1484_v46 }
 0xc28   :  { %v1485_v48 = vmul.f32 1.442695, %v1483_v11 }
 0xc29   :  { %6400 = vpow2.f32 %v1487_v8 }
 0xc2a   :  { %6402 = vpow2.f32 %v1485_v48 }
 0xc2c   :  { %v6397_v49 = vpop.eup %6396 }
 0xc2d   :  { %v6399_v50 = vpop.eup %6398  ;;  %v1290_v51 = vsel %vm282_vm2, %v6397_v49, 0.0 }
 0xc2e   :  { %1291 = vadd.xlane.f32.xlu0 %v1290_v51  ;;  %v1287_v52 = vsel %vm282_vm2, %v6399_v50, 0.0 }
 0xc2f   :  { %1288 = vadd.xlane.f32.xlu1 %v1287_v52 }
 0xc33   :  { %v6401_v53 = vpop.eup %6400 }
 0xc34   :  { %v6403_v54 = vpop.eup %6402  ;;  %v1492_v55 = vsel %vm282_vm2, %v6401_v53, 0.0 }
 0xc35   :  { %1493 = vadd.xlane.f32.xlu0 %v1492_v55  ;;  %v1489_v56 = vsel %vm282_vm2, %v6403_v54, 0.0 }
 0xc36   :  { %1490 = vadd.xlane.f32.xlu1 %v1489_v56 }
 0xc47   :  { %6343 = vrot.lane.b32.xlu1 %v6845_v15, %s6523_s3 }
 0xc4b   :  { %6348 = vrot.lane.b32.xlu0 %v6347_v18, %s6523_s3 }
 0xcbb   :  { %v1292_v61 = vpop.xlane.xlu0 %1291 }
 0xcbc   :  { %6404 = vrcp.f32 %v1292_v61  ;;  %v1289_v62 = vpop.xlane.xlu1 %1288  ;;  %v5504_v61 = vld [vmem:[%s7642_s8 + $0x30] sm:$0xff] }
 0xcbd   :  { %6406 = vrcp.f32 %v1289_v62  ;;  %v5505_v62 = vld [vmem:[%s7642_s8 + $0x38] sm:$0xff] }
 0xcc2   :  { %v1494_v0 = vpop.xlane.xlu0 %1493 }
 0xcc3   :  { %6408 = vrcp.f32 %v1494_v0  ;;  %v1491_v2 = vpop.xlane.xlu1 %1490  ;;  %v5993_v0 = vpack.c.bf16 %v5505_v62, %v5504_v61 }
 0xcc4   :  { %6410 = vrcp.f32 %v1491_v2  ;;  %v5512_v2 = vld [vmem:[%s7644_s10 + $0x40] sm:$0xff] }
 0xcc6   :  { %v6405_v3 = vpop.eup %6404  ;;  %v6349_v4 = vpop.permute.xlu0 %6348 }
 0xcc7   :  { %v6407_v5 = vpop.eup %6406  ;;  %v1296_v6 = vmul.f32 %v6405_v3, %v6397_v49  ;;  %v6351_v10 = vunpack.i.h.bf16 %v6349_v4  ;;  %v6344_v14 = vpop.permute.xlu1 %6343  ;;  %v6350_v15 = vunpack.i.l.bf16 %v6349_v4  ;;  %v5513_v3 = vld [vmem:[%s7644_s10 + $0x48] sm:$0xff]  ;;  %v5514_v4 = vld [vmem:[%s7644_s10 + $0x50] sm:$0xff] }
 0xcc8   :  { %v6346_v16 = vunpack.i.h.bf16 %v6344_v14  ;;  %v6345_v17 = vunpack.i.l.bf16 %v6344_v14  ;;  %v1295_v18 = vmul.f32 %v6407_v5, %v6399_v50  ;;  %v5997_v5 = vpack.c.bf16 %v5513_v3, %v5512_v2  ;;  %v5516_v14 = vld [vmem:[%s7644_s10 + $0x60] sm:$0xff] }
 0xcc9   :  { %1298 = vst.msk [vmem:[#allocation8 + $0x8] sm:$0xff] %vm282_vm2, %v1296_v6  ;;  %v5977_v20 = vpack.c.bf16 %v6351_v10, %v6350_v15  ;;  %v5517_v15 = vld [vmem:[%s7644_s10 + $0x68] sm:$0xff] }
 0xcca   :  { %v5967_v19 = vpack.c.bf16 %v6346_v16, %v6345_v17  ;;  %1297 = vst.msk [vmem:[#allocation8] sm:$0xff] %vm282_vm2, %v1295_v18  ;;  %5826 = vmatprep.mubr.msk.f32.mxu1 %vm282_vm2, %v1295_v18  ;;  %5998 = vmatprep.subr.bf16.mxu0 %v5997_v5  ;;  %v6005_v16 = vpack.c.bf16 %v5517_v15, %v5516_v14 }
 0xccc   :  { %5968 = vmatprep.subr.bf16.mxu1 %v5967_v19 }
 0xccd   :  { %v6409_v21 = vpop.eup %6408  ;;  %5970 = vmatpush3.bf16.msra.mxu1 %v5967_v19 }
 0xcce   :  { %v6411_v22 = vpop.eup %6410  ;;  %v1498_v24 = vmul.f32 %v6409_v21, %v6401_v53  ;;  %5978 = vmatprep.subr.bf16.mxu1 %v5977_v20 }
 0xccf   :  { %v1497_v25 = vmul.f32 %v6411_v22, %v6403_v54 }
 0xcd0   :  { %1501 = vst.msk [vmem:[#allocation8 + $0x18] sm:$0xff] %vm282_vm2, %v1498_v24  ;;  %5827 = vmatmul.mubr.msk.f32.vlgmr.msra.gmra.mrb[20].mxu1 %vm282_vm2, %v1296_v6  ;;  %v5515_v6 = vld [vmem:[%s7644_s10 + $0x58] sm:$0xff] }
 0xcd1   :  { %5980 = vmatpush3.bf16.msra.mxu1 %v5977_v20  ;;  %1500 = vst.msk [vmem:[#allocation8 + $0x10] sm:$0xff] %vm282_vm2, %v1497_v25  ;;  %5840 = vmatprep.mubr.msk.f32.mxu1 %vm282_vm2, %v1497_v25  ;;  %v6001_v10 = vpack.c.bf16 %v5515_v6, %v5514_v4 }
 0xcd2   :  { %5990 = vmatprep.subr.bf16.mxu1 %v5989_v60 }
 0xcd4   :  { %5841 = vmatmul.mubr.msk.f32.vlgmr.msra.gmra.mrb[22].mxu1 %vm282_vm2, %v1498_v24 }
 0xcd5   :  { %5992 = vmatpush3.bf16.msra.mxu1 %v5989_v60 }
 0xcd6   :  { %5994 = vmatprep.subr.bf16.mxu1 %v5993_v0 }
 0xcd9   :  { %5996 = vmatpush3.bf16.msra.mxu1 %v5993_v0 }
 0xda3   :  { %v5828_v26 = vpop.f32.mrb[20].mxu1 }
 0xda4   :  { %v1377_v27 = vpop.f32.mrb[21].mxu1 }
 0xda5   :  { %5851 = vmatprep.mubr.msk.f32.mxu0 %vm93_vm0, %v1377_v27 }
 0xda6   :  { %5852 = vmatmul.mubr.msk.f32.vlgmr.msra.gmra.mrb[12].mxu0 %vm93_vm0, %v5828_v26 }
 0xda7   :  { %v5842_v28 = vpop.f32.mrb[22].mxu1  ;;  %6000 = vmatpush3.bf16.msra.mxu0 %v5997_v5 }
 0xda8   :  { %v1580_v29 = vpop.f32.mrb[23].mxu1  ;;  %6002 = vmatprep.subr.bf16.mxu0 %v6001_v10 }
 0xda9   :  { %5854 = vmatprep.mubr.msk.f32.mxu0 %vm93_vm0, %v1580_v29 }
 0xdaa   :  { %5855 = vmatmul.mubr.msk.f32.gmra.mrb[14].mxu0 %vm93_vm0, %v5842_v28 }
 0xdab   :  { %6004 = vmatpush3.bf16.msra.mxu0 %v6001_v10 }
 0xdac   :  { %6006 = vmatprep.subr.bf16.mxu0 %v6005_v16 }
 0xdaf   :  { %6008 = vmatpush3.bf16.msra.mxu0 %v6005_v16  ;;  %v6524_v16 = vmov 0  }
 0xdb0   :  { %6352 = vset.pattern.permute.xlu1 %v6524_v16  ;;  %6358 = vset.pattern.permute.xlu0 %v6524_v16 }
 0xe79   :  { %v5853_v31 = vpop.f32.mrb[12].mxu0 }
 0xe7a   :  { %v1686_v32 = vadd.f32 %v5853_v31, %v5493_v30  ;;  %v1680_v33 = vpop.f32.mrb[13].mxu0  ;;  %v5500_v31 = vld [vmem:[%s7640_s6 + $0x1] ss:$0 sm:$0xff] }
 0xe7b   :  { %v1681_v34 = vadd.f32 %v5493_v30, %v1680_v33 }
 0xe7c   :  { %v1700_v35 = vadd.f32 %v1686_v32, %v6831_v1 }
 0xe7d   :  { %v5856_v36 = vpop.f32.mrb[14].mxu0  ;;  %v1699_v37 = vadd.f32 %v1681_v34, %v6829_v63 }
 0xe7e   :  { %v1696_v38 = vadd.f32 %v5856_v36, %v5493_v30  ;;  %v1690_v23 = vpop.f32.mrb[15].mxu0  ;;  %v1710_v39 = vsel %vm93_vm0, %v1700_v35, 0.0 }
 0xe7f   :  { %v1691_v40 = vadd.f32 %v5493_v30, %v1690_v23  ;;  %1711 = vadd.xlane.f32.xlu0 %v1710_v39  ;;  %v1707_v41 = vsel %vm93_vm0, %v1699_v37, 0.0 }
 0xe80   :  { %1708 = vadd.xlane.f32.xlu1 %v1707_v41  ;;  %v1702_v42 = vadd.f32 %v1696_v38, %v6839_v9 }
 0xe81   :  { %v1701_v43 = vadd.f32 %v1691_v40, %v6837_v7 }
 0xe82   :  { %v1716_v44 = vsel %vm93_vm0, %v1702_v42, 0.0 }
 0xe83   :  { %1717 = vadd.xlane.f32.xlu0 %v1716_v44  ;;  %v1713_v1 = vsel %vm93_vm0, %v1701_v43, 0.0 }
 0xe84   :  { %1714 = vadd.xlane.f32.xlu1 %v1713_v1 }
 0xf0c   :  { %v1712_v63 = vpop.xlane.xlu0 %1711 }
 0xf0d   :  { %v1720_v45 = vmul.f32 0.03125, %v1712_v63  ;;  %v1709_v46 = vpop.xlane.xlu1 %1708 }
 0xf0e   :  { %v1719_v47 = vmul.f32 0.03125, %v1709_v46  ;;  %v5519_v46 = vld [vmem:[%s7644_s10 + $0x78] sm:$0xff] }
 0xf0f   :  { %v6908_v11 = vsub.f32 %v1700_v35, %v1720_v45  ;;  %v5501_v35 = vld [vmem:[%s7641_s7 + $0x1] ss:$0 sm:$0xff]  ;;  %v5518_v45 = vld [vmem:[%s7644_s10 + $0x70] sm:$0xff] }
 0xf10   :  { %v6910_v8 = vsub.f32 %v1699_v37, %v1719_v47  ;;  %v1718_v48 = vpop.xlane.xlu0 %1717  ;;  %v6009_v47 = vpack.c.bf16 %v5519_v46, %v5518_v45 }
 0xf11   :  { %v1722_v49 = vmul.f32 0.03125, %v1718_v48  ;;  %v1715_v50 = vpop.xlane.xlu1 %1714  ;;  %v1728_v7 = vmul.f32 %v6908_v11, %v6908_v11 }
 0xf12   :  { %v1721_v9 = vmul.f32 0.03125, %v1715_v50  ;;  %v1727_v51 = vmul.f32 %v6910_v8, %v6910_v8  ;;  %6010 = vmatprep.subr.bf16.mxu0 %v6009_v47 }
 0xf13   :  { %v6916_v52 = vsub.f32 %v1702_v42, %v1722_v49  ;;  %v1734_v53 = vsel %vm93_vm0, %v1728_v7, 0.0  ;;  %6012 = vmatpush3.bf16.msra.mxu0 %v6009_v47 }
 0xf14   :  { %v6919_v54 = vsub.f32 %v1701_v43, %v1721_v9  ;;  %1735 = vadd.xlane.f32.xlu0 %v1734_v53  ;;  %v1731_v55 = vsel %vm93_vm0, %v1727_v51, 0.0 }
 0xf15   :  { %1732 = vadd.xlane.f32.xlu1 %v1731_v55  ;;  %v1730_v56 = vmul.f32 %v6916_v52, %v6916_v52 }
 0xf16   :  { %v1729_v12 = vmul.f32 %v6919_v54, %v6919_v54 }
 0xf17   :  { %v1740_v57 = vsel %vm93_vm0, %v1730_v56, 0.0 }
 0xf18   :  { %1741 = vadd.xlane.f32.xlu0 %v1740_v57  ;;  %v1737_v13 = vsel %vm93_vm0, %v1729_v12, 0.0  ;;  %v5521_v12 = vld [vmem:[%s7645_s11 + $0x1] ss:$0 sm:$0xff] }
 0xf19   :  { %1738 = vadd.xlane.f32.xlu1 %v1737_v13 }
 0xfa1   :  { %v1736_v17 = vpop.xlane.xlu0 %1735 }
 0xfa2   :  { %v1744_v18 = vmul.f32 0.03125, %v1736_v17  ;;  %v1733_v19 = vpop.xlane.xlu1 %1732 }
 0xfa3   :  { %v1743_v20 = vmul.f32 0.03125, %v1733_v19 }
 0xfa4   :  { %v1748_v21 = vadd.f32 1e-05, %v1744_v18 }
 0xfa5   :  { %v1747_v22 = vadd.f32 1e-05, %v1743_v20  ;;  %v1742_v24 = vpop.xlane.xlu0 %1741 }
 0xfa6   :  { %6412 = vrsqrt.f32 %v1748_v21  ;;  %v1746_v25 = vmul.f32 0.03125, %v1742_v24  ;;  %v1739_v26 = vpop.xlane.xlu1 %1738 }
 0xfa7   :  { %6414 = vrsqrt.f32 %v1747_v22  ;;  %v1745_v27 = vmul.f32 0.03125, %v1739_v26 }
 0xfa8   :  { %v1750_v28 = vadd.f32 1e-05, %v1746_v25 }
 0xfa9   :  { %v1749_v29 = vadd.f32 1e-05, %v1745_v27 }
 0xfaa   :  { %6416 = vrsqrt.f32 %v1750_v28 }
 0xfab   :  { %6418 = vrsqrt.f32 %v1749_v29 }
 0xfb0   :  { %v6413_v30 = vpop.eup %6412 }
 0xfb1   :  { %v6415_v32 = vpop.eup %6414  ;;  %v1756_v33 = vmul.f32 %v6413_v30, %v6908_v11  ;;  %v5507_v11 = vld [vmem:[%s7643_s9 + $0x1] ss:$0 sm:$0xff] }
 0xfb2   :  { %v1755_v34 = vmul.f32 %v6415_v32, %v6910_v8 }
 0xfb3   :  { %v1766_v36 = vmul.f32 %v5500_v31, %v1756_v33 }
 0xfb4   :  { %v6417_v37 = vpop.eup %6416  ;;  %v1765_v38 = vmul.f32 %v5500_v31, %v1755_v34 }
 0xfb5   :  { %v6419_v23 = vpop.eup %6418  ;;  %v1758_v39 = vmul.f32 %v6417_v37, %v6916_v52  ;;  %v1776_v42 = vadd.f32 %v5501_v35, %v1766_v36 }
 0xfb6   :  { %v1775_v40 = vadd.f32 %v5501_v35, %v1765_v38  ;;  %v1757_v41 = vmul.f32 %v6419_v23, %v6919_v54  ;;  %v2087_v38 = vld [vmem:[%s7684_s29] sm:$0xff]  ;;  %v2088_v23 = vld [vmem:[%s7684_s29 + $0x8] sm:$0xff] }
 0xfb7   :  { %v1768_v43 = vmul.f32 %v5500_v31, %v1758_v39  ;;  %vm2089_vm4 = vcmp.eq.f32.partialorder %v2087_v38, 1.0  ;;  %vm2090_vm5 = vcmp.eq.f32.partialorder %v2088_v23, 1.0  ;;  %v5532_v39 = vld [vmem:[%s7684_s29 + $0x10] sm:$0xff] }
 0xfb8   :  { %5865 = vmatprep.mubr.msk.f32.mxu1 %vm93_vm0, %v1775_v40  ;;  %v1767_v44 = vmul.f32 %v5500_v31, %v1757_v41  ;;  %v7660_v41 = vmov 0.0   ;;  %vm2112_vm6 = vcmp.eq.f32.partialorder %v5532_v39, 1.0 }
 0xfb9   :  { %5866 = vmatmul.mubr.msk.f32.vlgmr.msra.gmra.mrb[24].mxu1 %vm93_vm0, %v1776_v42  ;;  %v1778_v63 = vadd.f32 %v5501_v35, %v1768_v43  ;;  %v5531_v43 = vsel %vm2090_vm5, 1.0, %v7660_v41 }
 0xfba   :  { %v1777_v1 = vadd.f32 %v5501_v35, %v1767_v44 }
 0xfbc   :  { %5868 = vmatprep.mubr.msk.f32.mxu1 %vm93_vm0, %v1777_v1 }
 0xfbd   :  { %5869 = vmatmul.mubr.msk.f32.gmra.mrb[26].mxu1 %vm93_vm0, %v1778_v63 }
0x108c   :  { %v5867_v8 = vpop.f32.mrb[24].mxu1 }
0x108d   :  { %v1876_v48 = vadd.f32 %v5867_v8, %v5507_v11  ;;  %v1870_v49 = vpop.f32.mrb[25].mxu1 }
0x108e   :  { %v1871_v50 = vadd.f32 %v5507_v11, %v1870_v49 }
0x108f   :  { %v1890_v51 = vmax.f32 %v1876_v48, 0.0 }
0x1090   :  { %v1889_v7 = vmax.f32 %v1871_v50, 0.0  ;;  %v5870_v9 = vpop.f32.mrb[26].mxu1 }
0x1091   :  { %v1886_v52 = vadd.f32 %v5870_v9, %v5507_v11  ;;  %v1880_v53 = vpop.f32.mrb[27].mxu1 }
0x1092   :  { %v1881_v54 = vadd.f32 %v5507_v11, %v1880_v53  ;;  %5887 = vmatprep.mubr.msk.f32.mxu0 %vm906_vm3, %v1889_v7 }
0x1093   :  { %5888 = vmatmul.mubr.msk.f32.vlgmr.msra.gmra.mrb[16].mxu0 %vm906_vm3, %v1890_v51  ;;  %v1892_v56 = vmax.f32 %v1886_v52, 0.0 }
0x1094   :  { %v1891_v55 = vmax.f32 %v1881_v54, 0.0 }
0x1096   :  { %5890 = vmatprep.mubr.msk.f32.mxu0 %vm906_vm3, %v1891_v55 }
0x1097   :  { %5891 = vmatmul.mubr.msk.f32.gmra.mrb[18].mxu0 %vm906_vm3, %v1892_v56 }
0x1166   :  { %v5889_v57 = vpop.f32.mrb[16].mxu0 }
0x1167   :  { %v1994_v13 = vadd.f32 %v5889_v57, %v5521_v12  ;;  %v1988_v58 = vpop.f32.mrb[17].mxu0 }
0x1168   :  { %v1989_v59 = vadd.f32 %v5521_v12, %v1988_v58 }
0x1169   :  { %v2008_v60 = vadd.f32 %v1994_v13, %v1776_v42  ;;  %v5530_v42 = vsel %vm2089_vm4, 1.0, %v7660_v41 }
0x116a   :  { %v5892_v61 = vpop.f32.mrb[18].mxu0  ;;  %v2007_v62 = vadd.f32 %v1989_v59, %v1775_v40  ;;  %v5533_v40 = vld [vmem:[%s7684_s29 + $0x18] sm:$0xff]  ;;  %v6353_v44 = vpack.i.bf16 %v5531_v43, %v5530_v42 }
0x116b   :  { %v2004_v0 = vadd.f32 %v5892_v61, %v5521_v12  ;;  %v1998_v2 = vpop.f32.mrb[19].mxu0  ;;  %v2018_v3 = vsel %vm93_vm0, %v2008_v60, 0.0  ;;  %vm2113_vm7 = vcmp.eq.f32.partialorder %v5533_v40, 1.0 }
0x116c   :  { %v1999_v4 = vadd.f32 %v5521_v12, %v1998_v2  ;;  %2019 = vadd.xlane.f32.xlu0 %v2018_v3  ;;  %v2015_v5 = vsel %vm93_vm0, %v2007_v62, 0.0 }
0x116d   :  { %2016 = vadd.xlane.f32.xlu1 %v2015_v5  ;;  %v2010_v6 = vadd.f32 %v2004_v0, %v1778_v63  ;;  %v5535_v63 = vsel %vm2113_vm7, 1.0, %v7660_v41 }
0x116e   :  { %v2009_v10 = vadd.f32 %v1999_v4, %v1777_v1  ;;  %v5534_v1 = vsel %vm2112_vm6, 1.0, %v7660_v41 }
0x116f   :  { %v2024_v14 = vsel %vm93_vm0, %v2010_v6, 0.0  ;;  %v6359_v45 = vpack.i.bf16 %v5535_v63, %v5534_v1 }
0x1170   :  { %2025 = vadd.xlane.f32.xlu0 %v2024_v14  ;;  %v2021_v15 = vsel %vm93_vm0, %v2009_v10, 0.0 }
0x1171   :  { %2022 = vadd.xlane.f32.xlu1 %v2021_v15 }
0x11f9   :  { %v2020_v17 = vpop.xlane.xlu0 %2019 }
0x11fa   :  { %v2028_v18 = vmul.f32 0.03125, %v2020_v17  ;;  %v2017_v19 = vpop.xlane.xlu1 %2016 }
0x11fb   :  { %v2027_v20 = vmul.f32 0.03125, %v2017_v19 }
0x11fc   :  { %v6992_v21 = vsub.f32 %v2008_v60, %v2028_v18 }
0x11fd   :  { %v6994_v22 = vsub.f32 %v2007_v62, %v2027_v20  ;;  %v2026_v24 = vpop.xlane.xlu0 %2025 }
0x11fe   :  { %v2030_v25 = vmul.f32 0.03125, %v2026_v24  ;;  %v2023_v26 = vpop.xlane.xlu1 %2022  ;;  %v2036_v27 = vmul.f32 %v6992_v21, %v6992_v21 }
0x11ff   :  { %v2029_v28 = vmul.f32 0.03125, %v2023_v26  ;;  %v2035_v29 = vmul.f32 %v6994_v22, %v6994_v22 }
0x1200   :  { %v7000_v30 = vsub.f32 %v2010_v6, %v2030_v25  ;;  %v2042_v31 = vsel %vm93_vm0, %v2036_v27, 0.0 }
0x1201   :  { %v7003_v32 = vsub.f32 %v2009_v10, %v2029_v28  ;;  %2043 = vadd.xlane.f32.xlu0 %v2042_v31  ;;  %v2039_v33 = vsel %vm93_vm0, %v2035_v29, 0.0 }
0x1202   :  { %2040 = vadd.xlane.f32.xlu1 %v2039_v33  ;;  %v2038_v34 = vmul.f32 %v7000_v30, %v7000_v30 }
0x1203   :  { %v2037_v35 = vmul.f32 %v7003_v32, %v7003_v32 }
0x1204   :  { %v2048_v36 = vsel %vm93_vm0, %v2038_v34, 0.0 }
0x1205   :  { %2049 = vadd.xlane.f32.xlu0 %v2048_v36  ;;  %v2045_v37 = vsel %vm93_vm0, %v2037_v35, 0.0 }
0x1206   :  { %2046 = vadd.xlane.f32.xlu1 %v2045_v37 }
0x1217   :  { %6354 = vperm.xlu1 %6352, %v6353_v44  }
0x121b   :  { %6360 = vperm.xlu0 %6358, %v6359_v45  }
0x121c   :  { %6437 = shalt.err (!%p6434_p2)  }
0x121d   :  { %s6438_s26 = scalar_lea.vmem %s70_s21, 16384  ;;  %p6443_p4 = scmp.lt.s32.totalorder %s70_s21, %s70_s21 }
0x121e   :  { %p6439_p3 = scmp.ne.s32.totalorder %s70_s21, %s6438_s26  ;;  %p6444_p5 = scmp.lt.s32.totalorder %s6438_s26, %s6438_s26 }
0x1220   :  { %p6445_p6 = por %p6444_p5, %p6443_p4 }
0x1222   :  { %p6446_p7 = pnand %p6445_p6, %p6439_p3 }
0x1224   :  { %6449 = shalt.err (!%p6446_p7)  }
0x1225   :  { %72 = dma.hbm_to_vmem [thread:$0]  %s7648_s14, 16384, %s70_s21, [#allocation3]  ;;  %v5528_v55 = vld [vmem:[%s7646_s12 + $0x1] ss:$0 sm:$0xff] }
0x1226   :  { %v5529_v13 = vld [vmem:[%s7647_s13 + $0x1] ss:$0 sm:$0xff] }
0x128e   :  { %v2044_v46 = vpop.xlane.xlu0 %2043 }
0x128f   :  { %v2052_v47 = vmul.f32 0.03125, %v2044_v46  ;;  %v2041_v11 = vpop.xlane.xlu1 %2040 }
0x1290   :  { %v2051_v8 = vmul.f32 0.03125, %v2041_v11 }
0x1291   :  { %v2056_v48 = vadd.f32 1e-05, %v2052_v47 }
0x1292   :  { %v2055_v49 = vadd.f32 1e-05, %v2051_v8  ;;  %v2050_v50 = vpop.xlane.xlu0 %2049 }
0x1293   :  { %6420 = vrsqrt.f32 %v2056_v48  ;;  %v2054_v7 = vmul.f32 0.03125, %v2050_v50  ;;  %v2047_v9 = vpop.xlane.xlu1 %2046 }
0x1294   :  { %6422 = vrsqrt.f32 %v2055_v49  ;;  %v2053_v51 = vmul.f32 0.03125, %v2047_v9 }
0x1295   :  { %v2058_v52 = vadd.f32 1e-05, %v2054_v7 }
0x1296   :  { %v2057_v53 = vadd.f32 1e-05, %v2053_v51 }
0x1297   :  { %6424 = vrsqrt.f32 %v2058_v52  ;;  %v6355_v56 = vpop.permute.xlu1 %6354 }
0x1298   :  { %6426 = vrsqrt.f32 %v2057_v53  ;;  %v6357_v60 = vunpack.i.h.bf16 %v6355_v56  ;;  %v6356_v0 = vunpack.i.l.bf16 %v6355_v56 }
0x129a   :  { %v6361_v2 = vpop.permute.xlu0 %6360 }
0x129b   :  { %v6363_v16 = vunpack.i.h.bf16 %v6361_v2  ;;  %v6362_v18 = vunpack.i.l.bf16 %v6361_v2 }
0x129d   :  { %v6421_v54 = vpop.eup %6420 }
0x129e   :  { %v6423_v12 = vpop.eup %6422  ;;  %v2064_v57 = vmul.f32 %v6421_v54, %v6992_v21 }
0x129f   :  { %v2063_v58 = vmul.f32 %v6423_v12, %v6994_v22 }
0x12a0   :  { %v2074_v59 = vmul.f32 %v5528_v55, %v2064_v57 }
0x12a1   :  { %v6425_v61 = vpop.eup %6424  ;;  %v2073_v62 = vmul.f32 %v5528_v55, %v2063_v58 }
0x12a2   :  { %v6427_v3 = vpop.eup %6426  ;;  %v2084_v4 = vadd.f32 %v5529_v13, %v2074_v59  ;;  %v2066_v5 = vmul.f32 %v6425_v61, %v7000_v30 }
0x12a3   :  { %v2083_v6 = vadd.f32 %v5529_v13, %v2073_v62  ;;  %v2065_v10 = vmul.f32 %v6427_v3, %v7003_v32 }
0x12a4   :  { %v7050_v14 = vmul.f32 %v6357_v60, %v2084_v4  ;;  %v2076_v15 = vmul.f32 %v5528_v55, %v2066_v5 }
0x12a5   :  { %v7052_v17 = vmul.f32 %v6356_v0, %v2083_v6  ;;  %v2075_v19 = vmul.f32 %v5528_v55, %v2065_v10 }
0x12a6   :  { %2108 = vst.msk [vmem:[#allocation6 + $0x8] sm:$0xff] %vm93_vm0, %v7050_v14  ;;  %v2086_v20 = vadd.f32 %v5529_v13, %v2076_v15 }
0x12a7   :  { %2107 = vst.msk [vmem:[#allocation6] sm:$0xff] %vm93_vm0, %v7052_v17  ;;  %v2085_v21 = vadd.f32 %v5529_v13, %v2075_v19 }
0x12a8   :  { %v7058_v22 = vmul.f32 %v6363_v16, %v2086_v20 }
0x12a9   :  { %v7060_v24 = vmul.f32 %v6362_v18, %v2085_v21 }
0x12aa   :  { %2132 = vst.msk [vmem:[#allocation6 + $0x18] sm:$0xff] %vm93_vm0, %v7058_v22 }
0x12ab   :  { %2131 = vst.msk [vmem:[#allocation6 + $0x10] sm:$0xff] %vm93_vm0, %v7060_v24 }
0x12ac   :  { %6516 = dma.done.wait [#allocation3], 16384 }
0x12ad   :  { %6517 = vsyncadd [#allocation3], 4294950912  ;;  %2213 = vmatprep.mubr.f32.mxu1 %v7660_v41  ;;  %2415 = vmatprep.mubr.f32.mxu0 %v7660_v41  ;;  %v2139_v25 = vld [vmem:[#allocation2 + $0x8] sm:$0xff]  ;;  %v2141_v26 = vld [vmem:[#allocation2 + $0x18] sm:$0xff]  ;;  %v2348_v60 = vrot.slane %v7052_v17, 2  ;;  %v2247_v18 = vrot.slane %v7052_v17, 1 }
0x12ae   :  { %v2138_v27 = vld [vmem:[#allocation2] sm:$0xff]  ;;  %v7068_v28 = vpack.c.bf16 %v2141_v26, %v2139_v25  ;;  %v2140_v29 = vld [vmem:[#allocation2 + $0x10] sm:$0xff]  ;;  %v2143_v30 = vld [vmem:[#allocation2 + $0x28] sm:$0xff]  ;;  %vm5266_vm8 = vcmask 1040384  }
0x12af   :  { %v2145_v31 = vld [vmem:[#allocation2 + $0x38] sm:$0xff]  ;;  %v7070_v32 = vpack.c.bf16 %v2140_v29, %v2138_v27  ;;  %v2142_v34 = vld [vmem:[#allocation2 + $0x20] sm:$0xff]  ;;  %v2144_v35 = vld [vmem:[#allocation2 + $0x30] sm:$0xff] }
0x12b0   :  { %v7072_v33 = vpack.c.bf16 %v2145_v31, %v2143_v30  ;;  %v2240_v36 = vld [vmem:[#allocation2 + $0x48] sm:$0xff]  ;;  %6014 = vmatprep.subr.bf16.mxu1 %v7068_v28  ;;  %v2242_v37 = vld [vmem:[#allocation2 + $0x58] sm:$0xff]  ;;  %v7076_v38 = vpack.c.bf16 %v2144_v35, %v2142_v34  ;;  %v2340_v40 = vld [vmem:[#allocation2 + $0x80] sm:$0xff] }
0x12b1   :  { %6016 = vmatpush1.bf16.msra.mxu1 %v7070_v32  ;;  %v2341_v23 = vld [vmem:[#allocation2 + $0x88] sm:$0xff]  ;;  %v2343_v39 = vld [vmem:[#allocation2 + $0x98] sm:$0xff]  ;;  %v7079_v42 = vpack.c.bf16 %v2242_v37, %v2240_v36  ;;  %v2239_v43 = vld [vmem:[#allocation2 + $0x40] sm:$0xff] }
0x12b2   :  { %6018 = vmatprep.subr.bf16.mxu1 %v7072_v33  ;;  %v2241_v44 = vld [vmem:[#allocation2 + $0x50] sm:$0xff]  ;;  %v7081_v1 = vpack.c.bf16 %v2343_v39, %v2341_v23  ;;  %v2244_v46 = vld [vmem:[#allocation2 + $0x68] sm:$0xff]  ;;  %v2246_v47 = vld [vmem:[#allocation2 + $0x78] sm:$0xff] }
0x12b3   :  { %v2342_v63 = vld [vmem:[#allocation2 + $0x90] sm:$0xff]  ;;  %v2345_v11 = vld [vmem:[#allocation2 + $0xa8] sm:$0xff]  ;;  %v2347_v8 = vld [vmem:[#allocation2 + $0xb8] sm:$0xff]  ;;  %v7087_v50 = vpack.c.bf16 %v2241_v44, %v2239_v43  ;;  %v7093_v52 = vpack.c.bf16 %v2246_v47, %v2244_v46 }
0x12b4   :  { %v7083_v45 = vpack.c.bf16 %v2342_v63, %v2340_v40  ;;  %6030 = vmatprep.subr.bf16.mxu0 %v7081_v1  ;;  %v2344_v48 = vld [vmem:[#allocation2 + $0xa0] sm:$0xff]  ;;  %v2346_v49 = vld [vmem:[#allocation2 + $0xb0] sm:$0xff]  ;;  %v7090_v51 = vpack.c.bf16 %v2347_v8, %v2345_v11  ;;  %v2442_v54 = vld [vmem:[#allocation2 + $0xc8] sm:$0xff]  ;;  %v2550_v40 = vrot.slane %v7052_v17, 4 }
0x12b5   :  { %6020 = vmatpush1.bf16.msra.mxu1 %v7076_v38  ;;  %v2243_v7 = vld [vmem:[#allocation2 + $0x60] sm:$0xff]  ;;  %v2245_v9 = vld [vmem:[#allocation2 + $0x70] sm:$0xff]  ;;  %v7095_v53 = vpack.c.bf16 %v2346_v49, %v2344_v48  ;;  %v2543_v55 = vld [vmem:[#allocation2 + $0x108] sm:$0xff] }
0x12b6   :  { %6032 = vmatpush1.bf16.msra.mxu0 %v7083_v45  ;;  %6022 = vmatprep.subr.bf16.mxu1 %v7079_v42  ;;  %v2545_v56 = vld [vmem:[#allocation2 + $0x118] sm:$0xff]  ;;  %v2542_v13 = vld [vmem:[#allocation2 + $0x100] sm:$0xff]  ;;  %v2544_v58 = vld [vmem:[#allocation2 + $0x110] sm:$0xff]  ;;  %v7103_v59 = vpack.c.bf16 %v2245_v9, %v2243_v7  ;;  %v2449_v7 = vrot.slane %v7052_v17, 3 }
0x12b7   :  { %6034 = vmatprep.subr.bf16.mxu0 %v7090_v51  ;;  %v2444_v12 = vld [vmem:[#allocation2 + $0xd8] sm:$0xff]  ;;  %v7098_v57 = vpack.c.bf16 %v2545_v56, %v2543_v55  ;;  %v2547_v61 = vld [vmem:[#allocation2 + $0x128] sm:$0xff]  ;;  %v2441_v2 = vld [vmem:[#allocation2 + $0xc0] sm:$0xff]  ;;  %v7111_v4 = vpack.c.bf16 %v2544_v58, %v2542_v13 }
0x12b8   :  { %5536 = vmatmul.mubr.msk.f32.vlgmr.msra.gmra.mrb[28].mxu1 %vm93_vm0, %v7052_v17  ;;  %v2549_v62 = vld [vmem:[#allocation2 + $0x138] sm:$0xff]  ;;  %v7109_v0 = vpack.c.bf16 %v2444_v12, %v2442_v54  ;;  %v2443_v3 = vld [vmem:[#allocation2 + $0xd0] sm:$0xff]  ;;  %v2446_v5 = vld [vmem:[#allocation2 + $0xe8] sm:$0xff] }
0x12b9   :  { %6024 = vmatpush1.bf16.msra.mxu1 %v7087_v50  ;;  %2314 = vmatprep.mubr.f32.mxu1 %v7660_v41  ;;  %v2448_v6 = vld [vmem:[#allocation2 + $0xf8] sm:$0xff]  ;;  %v7114_v10 = vpack.c.bf16 %v2549_v62, %v2547_v61  ;;  %v2546_v15 = vld [vmem:[#allocation2 + $0x120] sm:$0xff]  ;;  %v2548_v16 = vld [vmem:[#allocation2 + $0x130] sm:$0xff]  ;;  %v7118_v21 = vpack.c.bf16 %v2443_v3, %v2441_v2 }
0x12ba   :  { %6026 = vmatprep.subr.bf16.mxu1 %v7093_v52  ;;  %6036 = vmatpush1.bf16.msra.mxu0 %v7095_v53  ;;  %v2745_v19 = vld [vmem:[#allocation2 + $0x188] sm:$0xff]  ;;  %v2747_v20 = vld [vmem:[#allocation2 + $0x198] sm:$0xff]  ;;  %v7123_v25 = vpack.c.bf16 %v2448_v6, %v2446_v5  ;;  %v2445_v26 = vld [vmem:[#allocation2 + $0xe0] sm:$0xff]  ;;  %v7125_v29 = vpack.c.bf16 %v2548_v16, %v2546_v15  ;;  %v2752_v16 = vrot.slane %v7052_v17, 6 }
0x12bb   :  { %6046 = vmatprep.subr.bf16.mxu0 %v7098_v57  ;;  %v2447_v27 = vld [vmem:[#allocation2 + $0xf0] sm:$0xff]  ;;  %v2644_v30 = vld [vmem:[#allocation2 + $0x148] sm:$0xff]  ;;  %v2646_v31 = vld [vmem:[#allocation2 + $0x158] sm:$0xff]  ;;  %v7129_v34 = vpack.c.bf16 %v2747_v20, %v2745_v19 }
0x12bc   :  { %v2744_v35 = vld [vmem:[#allocation2 + $0x180] sm:$0xff]  ;;  %v2746_v36 = vld [vmem:[#allocation2 + $0x190] sm:$0xff]  ;;  %v2749_v37 = vld [vmem:[#allocation2 + $0x1a8] sm:$0xff]  ;;  %v7133_v39 = vpack.c.bf16 %v2447_v27, %v2445_v26  ;;  %v7139_v43 = vpack.c.bf16 %v2646_v31, %v2644_v30 }
0x12bd   :  { %6028 = vmatpush1.bf16.msra.mxu1 %v7103_v59  ;;  %5538 = vmatmul.mubr.msk.f32.vlgmr.msra.gmra.mrb[20].mxu0 %vm93_vm0, %v2348_v60  ;;  %v2751_v23 = vld [vmem:[#allocation2 + $0x1b8] sm:$0xff]  ;;  %v2643_v44 = vld [vmem:[#allocation2 + $0x140] sm:$0xff]  ;;  %v2645_v63 = vld [vmem:[#allocation2 + $0x150] sm:$0xff]  ;;  %v7141_v46 = vpack.c.bf16 %v2746_v36, %v2744_v35 }
0x12be   :  { %6038 = vmatprep.subr.bf16.mxu1 %v7109_v0  ;;  %6048 = vmatpush1.bf16.msra.mxu0 %v7111_v4  ;;  %v2648_v47 = vld [vmem:[#allocation2 + $0x168] sm:$0xff]  ;;  %v2650_v11 = vld [vmem:[#allocation2 + $0x178] sm:$0xff]  ;;  %v7144_v8 = vpack.c.bf16 %v2751_v23, %v2749_v37  ;;  %v2748_v48 = vld [vmem:[#allocation2 + $0x1a0] sm:$0xff]  ;;  %v7148_v55 = vpack.c.bf16 %v2645_v63, %v2643_v44  ;;  %v2651_v37 = vrot.slane %v7052_v17, 5 }
0x12bf   :  { %6050 = vmatprep.subr.bf16.mxu0 %v7114_v10  ;;  %2617 = vmatprep.mubr.f32.mxu0 %v7660_v41  ;;  %v2750_v49 = vld [vmem:[#allocation2 + $0x1b0] sm:$0xff]  ;;  %v2947_v9 = vld [vmem:[#allocation2 + $0x208] sm:$0xff]  ;;  %v2949_v54 = vld [vmem:[#allocation2 + $0x218] sm:$0xff]  ;;  %v7153_v56 = vpack.c.bf16 %v2650_v11, %v2648_v47 }
0x12c0   :  { %5537 = vmatmul.mubr.msk.f32.vlgmr.msra.gmra.mrb[30].mxu1 %vm93_vm0, %v2247_v18  ;;  %v2647_v12 = vld [vmem:[#allocation2 + $0x160] sm:$0xff]  ;;  %v2649_v13 = vld [vmem:[#allocation2 + $0x170] sm:$0xff]  ;;  %v7155_v58 = vpack.c.bf16 %v2750_v49, %v2748_v48  ;;  %v2846_v60 = vld [vmem:[#allocation2 + $0x1c8] sm:$0xff]  ;;  %v7159_v62 = vpack.c.bf16 %v2949_v54, %v2947_v9 }
0x12c1   :  { %6040 = vmatpush1.bf16.msra.mxu1 %v7118_v21  ;;  %2516 = vmatprep.mubr.f32.mxu1 %v7660_v41  ;;  %v2848_v61 = vld [vmem:[#allocation2 + $0x1d8] sm:$0xff]  ;;  %v2946_v2 = vld [vmem:[#allocation2 + $0x200] sm:$0xff]  ;;  %v2948_v3 = vld [vmem:[#allocation2 + $0x210] sm:$0xff]  ;;  %v7163_v15 = vpack.c.bf16 %v2649_v13, %v2647_v12 }
0x12c2   :  { %6042 = vmatprep.subr.bf16.mxu1 %v7123_v25  ;;  %6052 = vmatpush1.bf16.msra.mxu0 %v7125_v29  ;;  %v2951_v5 = vld [vmem:[#allocation2 + $0x228] sm:$0xff]  ;;  %v2953_v6 = vld [vmem:[#allocation2 + $0x238] sm:$0xff]  ;;  %v7169_v18 = vpack.c.bf16 %v2848_v61, %v2846_v60  ;;  %v2845_v19 = vld [vmem:[#allocation2 + $0x1c0] sm:$0xff]  ;;  %v7171_v26 = vpack.c.bf16 %v2948_v3, %v2946_v2 }
0x12c3   :  { %6062 = vmatprep.subr.bf16.mxu0 %v7129_v34  ;;  %v2847_v20 = vld [vmem:[#allocation2 + $0x1d0] sm:$0xff]  ;;  %v2850_v27 = vld [vmem:[#allocation2 + $0x1e8] sm:$0xff]  ;;  %v2852_v30 = vld [vmem:[#allocation2 + $0x1f8] sm:$0xff]  ;;  %v7174_v31 = vpack.c.bf16 %v2953_v6, %v2951_v5 }
0x12c4   :  { %v2950_v35 = vld [vmem:[#allocation2 + $0x220] sm:$0xff]  ;;  %v2952_v36 = vld [vmem:[#allocation2 + $0x230] sm:$0xff]  ;;  %v3149_v23 = vld [vmem:[#allocation2 + $0x288] sm:$0xff]  ;;  %v7178_v44 = vpack.c.bf16 %v2847_v20, %v2845_v19  ;;  %v7183_v63 = vpack.c.bf16 %v2852_v30, %v2850_v27 }
0x12c5   :  { %6044 = vmatpush1.bf16.msra.mxu1 %v7133_v39  ;;  %5540 = vmatmul.mubr.msk.f32.vlgmr.msra.gmra.mrb[22].mxu0 %vm93_vm0, %v2550_v40  ;;  %v3151_v40 = vld [vmem:[#allocation2 + $0x298] sm:$0xff]  ;;  %v2849_v47 = vld [vmem:[#allocation2 + $0x1e0] sm:$0xff]  ;;  %v2851_v11 = vld [vmem:[#allocation2 + $0x1f0] sm:$0xff]  ;;  %v7185_v48 = vpack.c.bf16 %v2952_v36, %v2950_v35  ;;  %v2853_v35 = vrot.slane %v7052_v17, 7 }
0x12c6   :  { %6054 = vmatprep.subr.bf16.mxu1 %v7139_v43  ;;  %6064 = vmatpush1.bf16.msra.mxu0 %v7141_v46  ;;  %v3048_v49 = vld [vmem:[#allocation2 + $0x248] sm:$0xff]  ;;  %v7189_v9 = vpack.c.bf16 %v3151_v40, %v3149_v23  ;;  %v3148_v54 = vld [vmem:[#allocation2 + $0x280] sm:$0xff]  ;;  %v3150_v12 = vld [vmem:[#allocation2 + $0x290] sm:$0xff]  ;;  %v7193_v61 = vpack.c.bf16 %v2851_v11, %v2849_v47 }
0x12c7   :  { %6066 = vmatprep.subr.bf16.mxu0 %v7144_v8  ;;  %2819 = vmatprep.mubr.f32.mxu0 %v7660_v41  ;;  %v3153_v13 = vld [vmem:[#allocation2 + $0x2a8] sm:$0xff]  ;;  %v3155_v60 = vld [vmem:[#allocation2 + $0x2b8] sm:$0xff]  ;;  %v3047_v3 = vld [vmem:[#allocation2 + $0x240] sm:$0xff]  ;;  %v7200_v6 = vpack.c.bf16 %v3150_v12, %v3148_v54 }
0x12c8   :  { %5539 = vmatmul.mubr.msk.f32.vlgmr.msra.gmra.mrb[32].mxu1 %vm93_vm0, %v2449_v7  ;;  %v3050_v7 = vld [vmem:[#allocation2 + $0x258] sm:$0xff]  ;;  %v3049_v5 = vld [vmem:[#allocation2 + $0x250] sm:$0xff]  ;;  %v7203_v20 = vpack.c.bf16 %v3155_v60, %v3153_v13  ;;  %v3152_v27 = vld [vmem:[#allocation2 + $0x2a0] sm:$0xff] }
0x12c9   :  { %6056 = vmatpush1.bf16.msra.mxu1 %v7148_v55  ;;  %2718 = vmatprep.mubr.f32.mxu1 %v7660_v41  ;;  %v7198_v2 = vpack.c.bf16 %v3050_v7, %v3048_v49  ;;  %v3054_v19 = vld [vmem:[#allocation2 + $0x278] sm:$0xff]  ;;  %v3154_v30 = vld [vmem:[#allocation2 + $0x2b0] sm:$0xff]  ;;  %v3351_v36 = vld [vmem:[#allocation2 + $0x308] sm:$0xff]  ;;  %v7207_v23 = vpack.c.bf16 %v3049_v5, %v3047_v3 }
0x12ca   :  { %6058 = vmatprep.subr.bf16.mxu1 %v7153_v56  ;;  %6068 = vmatpush1.bf16.msra.mxu0 %v7155_v58  ;;  %7685 = vst [vmem:[#allocation16_spill] sm:$0xff] %v7203_v20  ;;  %v3051_v47 = vld [vmem:[#allocation2 + $0x260] sm:$0xff]  ;;  %v3053_v11 = vld [vmem:[#allocation2 + $0x270] sm:$0xff]  ;;  %v7215_v49 = vpack.c.bf16 %v3154_v30, %v3152_v27  ;;  %v3250_v17 = vld [vmem:[#allocation2 + $0x2c8] sm:$0xff] }
0x12cb   :  { %6078 = vmatprep.subr.bf16.mxu0 %v7159_v62  ;;  %7686 = vst [vmem:[#allocation17_spill] sm:$0xff] %v7207_v23  ;;  %v3252_v7 = vld [vmem:[#allocation2 + $0x2d8] sm:$0xff]  ;;  %v3350_v12 = vld [vmem:[#allocation2 + $0x300] sm:$0xff]  ;;  %v3352_v13 = vld [vmem:[#allocation2 + $0x310] sm:$0xff]  ;;  %v7223_v5 = vpack.c.bf16 %v3053_v11, %v3051_v47 }
0x12cc   :  { %7688 = vst [vmem:[#allocation19_spill] sm:$0xff] %v7215_v49  ;;  %v3355_v60 = vld [vmem:[#allocation2 + $0x328] sm:$0xff]  ;;  %v3357_v3 = vld [vmem:[#allocation2 + $0x338] sm:$0xff]  ;;  %v3249_v27 = vld [vmem:[#allocation2 + $0x2c0] sm:$0xff] }
0x12cd   :  { %6060 = vmatpush1.bf16.msra.mxu1 %v7163_v15  ;;  %5542 = vmatmul.mubr.msk.f32.vlgmr.msra.gmra.mrb[24].mxu0 %vm93_vm0, %v2752_v16  ;;  %v3052_v16 = vld [vmem:[#allocation2 + $0x268] sm:$0xff]  ;;  %7690 = vst [vmem:[#allocation21_spill] sm:$0xff] %v7223_v5  ;;  %v3251_v30 = vld [vmem:[#allocation2 + $0x2d0] sm:$0xff]  ;;  %v7234_v47 = vpack.c.bf16 %v3357_v3, %v3355_v60  ;;  %v3354_v11 = vld [vmem:[#allocation2 + $0x320] sm:$0xff] }
0x12ce   :  { %6070 = vmatprep.subr.bf16.mxu1 %v7169_v18  ;;  %6080 = vmatpush1.bf16.msra.mxu0 %v7171_v26  ;;  %v7213_v40 = vpack.c.bf16 %v3054_v19, %v3052_v16  ;;  %v3156_v16 = vrot.slane %v7050_v14, 2  ;;  %v7229_v19 = vpack.c.bf16 %v3252_v7, %v3250_v17  ;;  %v7238_v17 = vpack.c.bf16 %v3251_v30, %v3249_v27  ;;  %v3452_v3 = vld [vmem:[#allocation2 + $0x348] sm:$0xff]  ;;  %v3552_v30 = vld [vmem:[#allocation2 + $0x380] sm:$0xff] }
0x12cf   :  { %6082 = vmatprep.subr.bf16.mxu0 %v7174_v31  ;;  %3021 = vmatprep.mubr.f32.mxu0 %v7660_v41  ;;  %7693 = vst [vmem:[#allocation24_spill] sm:$0xff] %v7234_v47 }
0x12d0   :  { %5541 = vmatmul.mubr.msk.f32.vlgmr.msra.gmra.mrb[34].mxu1 %vm93_vm0, %v2651_v37  ;;  %v3353_v37 = vld [vmem:[#allocation2 + $0x318] sm:$0xff]  ;;  %7687 = vst [vmem:[#allocation18_spill] sm:$0xff] %v7213_v40  ;;  %7691 = vst [vmem:[#allocation22_spill] sm:$0xff] %v7229_v19 }
0x12d1   :  { %6072 = vmatpush1.bf16.msra.mxu1 %v7178_v44  ;;  %2920 = vmatprep.mubr.f32.mxu1 %v7660_v41  ;;  %v7219_v54 = vpack.c.bf16 %v3353_v37, %v3351_v36  ;;  %v7231_v36 = vpack.c.bf16 %v3352_v13, %v3350_v12  ;;  %v3256_v37 = vld [vmem:[#allocation2 + $0x2f8] sm:$0xff]  ;;  %7694 = vst [vmem:[#allocation25_spill] sm:$0xff] %v7238_v17  ;;  %v3253_v12 = vld [vmem:[#allocation2 + $0x2e0] sm:$0xff]  ;;  %v3255_v13 = vld [vmem:[#allocation2 + $0x2f0] sm:$0xff] }
0x12d2   :  { %6074 = vmatprep.subr.bf16.mxu1 %v7183_v63  ;;  %6084 = vmatpush1.bf16.msra.mxu0 %v7185_v48 }
0x12d3   :  { %6094 = vmatprep.subr.bf16.mxu0 %v7189_v9  ;;  %7689 = vst [vmem:[#allocation20_spill] sm:$0xff] %v7219_v54  ;;  %7692 = vst [vmem:[#allocation23_spill] sm:$0xff] %v7231_v36 }
0x12d5   :  { %6076 = vmatpush1.bf16.msra.mxu1 %v7193_v61  ;;  %5544 = vmatmul.mubr.msk.f32.vlgmr.msra.gmra.mrb[26].mxu0 %vm93_vm0, %v7050_v14 }
0x12d6   :  { %6086 = vmatprep.subr.bf16.mxu1 %v7198_v2  ;;  %6096 = vmatpush1.bf16.msra.mxu0 %v7200_v6 }
0x12d7   :  { %6098 = vmatprep.subr.bf16.mxu0 %v7203_v20  ;;  %3223 = vmatprep.mubr.f32.mxu0 %v7660_v41  ;;  %v3553_v20 = vld [vmem:[#allocation2 + $0x388] sm:$0xff] }
0x12d8   :  { %5543 = vmatmul.mubr.msk.f32.vlgmr.msra.gmra.mrb[36].mxu1 %vm93_vm0, %v2853_v35  ;;  %v3254_v35 = vld [vmem:[#allocation2 + $0x2e8] sm:$0xff] }
0x12d9   :  { %6088 = vmatpush1.bf16.msra.mxu1 %v7207_v23  ;;  %3122 = vmatprep.mubr.f32.mxu1 %v7660_v41  ;;  %v3356_v41 = vld [vmem:[#allocation2 + $0x330] sm:$0xff]  ;;  %v3055_v23 = vrot.slane %v7050_v14, 1  ;;  %v7243_v7 = vpack.c.bf16 %v3256_v37, %v3254_v35  ;;  %v7253_v35 = vpack.c.bf16 %v3255_v13, %v3253_v12  ;;  %v3556_v13 = vld [vmem:[#allocation2 + $0x3a0] sm:$0xff] }
0x12da   :  { %6090 = vmatprep.subr.bf16.mxu1 %v7213_v40  ;;  %6100 = vmatpush1.bf16.msra.mxu0 %v7215_v49  ;;  %v3555_v40 = vld [vmem:[#allocation2 + $0x398] sm:$0xff]  ;;  %v7245_v60 = vpack.c.bf16 %v3356_v41, %v3354_v11  ;;  %v7696_v49 = vmov 0.0   ;;  %v3358_v41 = vrot.slane %v7050_v14, 4  ;;  %v3453_v37 = vld [vmem:[#allocation2 + $0x350] sm:$0xff] }
0x12db   :  { %6110 = vmatprep.subr.bf16.mxu0 %v7219_v54  ;;  %7695 = vst [vmem:[#allocation26_spill] sm:$0xff] %v7243_v7  ;;  %v3454_v54 = vld [vmem:[#allocation2 + $0x358] sm:$0xff]  ;;  %v7249_v27 = vpack.c.bf16 %v3555_v40, %v3553_v20  ;;  %v3451_v40 = vld [vmem:[#allocation2 + $0x340] sm:$0xff] }
0x12dc   :  { %v7259_v20 = vpack.c.bf16 %v3454_v54, %v3452_v3  ;;  %v3455_v3 = vld [vmem:[#allocation2 + $0x360] sm:$0xff] }
0x12dd   :  { %6092 = vmatpush1.bf16.msra.mxu1 %v7223_v5  ;;  %5546 = vmatmul.mubr.msk.f32.vlgmr.msra.gmra.mrb[28].mxu0 %vm93_vm0, %v3156_v16  ;;  %v3554_v16 = vld [vmem:[#allocation2 + $0x390] sm:$0xff]  ;;  %v3257_v5 = vrot.slane %v7050_v14, 3 }
0x12de   :  { %6102 = vmatprep.subr.bf16.mxu1 %v7229_v19  ;;  %6112 = vmatpush1.bf16.msra.mxu0 %v7231_v36  ;;  %v3557_v19 = vld [vmem:[#allocation2 + $0x3a8] sm:$0xff]  ;;  %v3559_v36 = vld [vmem:[#allocation2 + $0x3b8] sm:$0xff]  ;;  %v7261_v11 = vpack.c.bf16 %v3554_v16, %v3552_v30  ;;  %v3457_v30 = vld [vmem:[#allocation2 + $0x370] sm:$0xff] }
0x12df   :  { %6114 = vmatprep.subr.bf16.mxu0 %v7234_v47  ;;  %3425 = vmatprep.mubr.f32.mxu0 %v7696_v49  ;;  %v7264_v12 = vpack.c.bf16 %v3559_v36, %v3557_v19  ;;  %v3558_v47 = vld [vmem:[#allocation2 + $0x3b0] sm:$0xff]  ;;  %v3654_v36 = vld [vmem:[#allocation2 + $0x3c8] sm:$0xff]  ;;  %v3656_v16 = vld [vmem:[#allocation2 + $0x3d8] sm:$0xff] }
0x12e0   :  { %5545 = vmatmul.mubr.msk.f32.vlgmr.msra.gmra.mrb[38].mxu1 %vm93_vm0, %v3055_v23  ;;  %v3456_v23 = vld [vmem:[#allocation2 + $0x368] sm:$0xff]  ;;  %v7275_v19 = vpack.c.bf16 %v3558_v47, %v3556_v13  ;;  %v7287_v47 = vpack.c.bf16 %v3656_v16, %v3654_v36  ;;  %v3459_v13 = vrot.slane %v7050_v14, 5  ;;  %v3657_v36 = vld [vmem:[#allocation2 + $0x3e0] sm:$0xff]  ;;  %v3659_v16 = vld [vmem:[#allocation2 + $0x3f0] sm:$0xff] }
0x12e1   :  { %6104 = vmatpush1.bf16.msra.mxu1 %v7238_v17  ;;  %3324 = vmatprep.mubr.f32.mxu1 %v7696_v49  ;;  %v3458_v17 = vld [vmem:[#allocation2 + $0x378] sm:$0xff] }
0x12e2   :  { %6106 = vmatprep.subr.bf16.mxu1 %v7243_v7  ;;  %6116 = vmatpush1.bf16.msra.mxu0 %v7245_v60  ;;  %v7268_v7 = vpack.c.bf16 %v3453_v37, %v3451_v40  ;;  %v7273_v54 = vpack.c.bf16 %v3458_v17, %v3456_v23  ;;  %v3560_v17 = vrot.slane %v7050_v14, 6  ;;  %v3653_v40 = vld [vmem:[#allocation2 + $0x3c0] sm:$0xff]  ;;  %v3655_v37 = vld [vmem:[#allocation2 + $0x3d0] sm:$0xff]  ;;  %v3658_v23 = vld [vmem:[#allocation2 + $0x3e8] sm:$0xff] }
0x12e3   :  { %6126 = vmatprep.subr.bf16.mxu0 %v7249_v27 }
0x12e5   :  { %6108 = vmatpush1.bf16.msra.mxu1 %v7253_v35  ;;  %5548 = vmatmul.mubr.msk.f32.vlgmr.msra.gmra.mrb[30].mxu0 %vm93_vm0, %v3358_v41  ;;  %v7281_v41 = vpack.c.bf16 %v3457_v30, %v3455_v3  ;;  %v7292_v3 = vpack.c.bf16 %v3655_v37, %v3653_v40  ;;  %v5294_v40 = vld [vmem:[%s7650_s16 + $0xc8] sm:$0xff] }
0x12e6   :  { %6118 = vmatprep.subr.bf16.mxu1 %v7259_v20  ;;  %6128 = vmatpush1.bf16.msra.mxu0 %v7261_v11 }
0x12e7   :  { %6130 = vmatprep.subr.bf16.mxu0 %v7264_v12  ;;  %3627 = vmatprep.mubr.f32.mxu0 %v7696_v49 }
0x12e8   :  { %5547 = vmatmul.mubr.msk.f32.vlgmr.msra.gmra.mrb[40].mxu1 %vm93_vm0, %v3257_v5  ;;  %v3660_v5 = vld [vmem:[#allocation2 + $0x3f8] sm:$0xff] }
0x12e9   :  { %6120 = vmatpush1.bf16.msra.mxu1 %v7268_v7  ;;  %3526 = vmatprep.mubr.f32.mxu1 %v7696_v49  ;;  %v7297_v30 = vpack.c.bf16 %v3660_v5, %v3658_v23 }
0x12ea   :  { %6122 = vmatprep.subr.bf16.mxu1 %v7273_v54  ;;  %6132 = vmatpush1.bf16.msra.mxu0 %v7275_v19 }
0x12eb   :  { %6142 = vmatprep.subr.bf16.mxu0 %v7068_v28  ;;  %v7303_v28 = vpack.c.bf16 %v3659_v16, %v3657_v36 }
0x12ed   :  { %6124 = vmatpush1.bf16.msra.mxu1 %v7281_v41  ;;  %5550 = vmatmul.mubr.msk.f32.vlgmr.msra.gmra.mrb[32].mxu0 %vm93_vm0, %v3560_v17 }
0x12ee   :  { %6134 = vmatprep.subr.bf16.mxu1 %v7287_v47  ;;  %6144 = vmatpush1.bf16.msra.mxu0 %v7070_v32  ;;  %v3661_v32 = vrot.slane %v7050_v14, 7  ;;  %v3941_v14 = vrot.slane %v7060_v24, 2 }
0x12ef   :  { %6146 = vmatprep.subr.bf16.mxu0 %v7072_v33  ;;  %3822 = vmatprep.mubr.f32.mxu0 %v7696_v49  ;;  %v3848_v33 = vrot.slane %v7060_v24, 1 }
0x12f0   :  { %5549 = vmatmul.mubr.msk.f32.vlgmr.msra.gmra.mrb[42].mxu1 %vm93_vm0, %v3459_v13  ;;  %v5277_v13 = vld [vmem:[%s7650_s16 + $0x40] sm:$0xff] }
0x12f1   :  { %6136 = vmatpush1.bf16.msra.mxu1 %v7292_v3  ;;  %3728 = vmatprep.mubr.f32.mxu1 %v7696_v49 }
0x12f2   :  { %6138 = vmatprep.subr.bf16.mxu1 %v7297_v30  ;;  %6148 = vmatpush1.bf16.msra.mxu0 %v7076_v38  ;;  %v4127_v38 = vrot.slane %v7060_v24, 4 }
0x12f3   :  { %6158 = vmatprep.subr.bf16.mxu0 %v7081_v1  ;;  %v4313_v1 = vrot.slane %v7060_v24, 6 }
0x12f5   :  { %6140 = vmatpush1.bf16.msra.mxu1 %v7303_v28  ;;  %5552 = vmatmul.mubr.msk.f32.vlgmr.msra.gmra.mrb[34].mxu0 %vm93_vm0, %v7060_v24 }
0x12f6   :  { %6150 = vmatprep.subr.bf16.mxu1 %v7079_v42  ;;  %6160 = vmatpush1.bf16.msra.mxu0 %v7083_v45  ;;  %v4034_v42 = vrot.slane %v7060_v24, 3  ;;  %v4220_v45 = vrot.slane %v7060_v24, 5 }
0x12f7   :  { %6162 = vmatprep.subr.bf16.mxu0 %v7090_v51  ;;  %4008 = vmatprep.mubr.f32.mxu0 %v7696_v49  ;;  %v7697_v51 = vld [vmem:[#allocation16_spill] sm:$0xff] }
0x12f8   :  { %5551 = vmatmul.mubr.msk.f32.vlgmr.msra.gmra.mrb[44].mxu1 %vm93_vm0, %v3661_v32  ;;  %v5296_v32 = vld [vmem:[%s7650_s16 + $0xd8] sm:$0xff] }
0x12f9   :  { %6152 = vmatpush1.bf16.msra.mxu1 %v7087_v50  ;;  %3915 = vmatprep.mubr.f32.mxu1 %v7696_v49  ;;  %v4406_v50 = vrot.slane %v7060_v24, 7  ;;  %v4685_v24 = vrot.slane %v7058_v22, 2 }
0x12fa   :  { %6154 = vmatprep.subr.bf16.mxu1 %v7093_v52  ;;  %6164 = vmatpush1.bf16.msra.mxu0 %v7095_v53  ;;  %v7698_v52 = vld [vmem:[#allocation17_spill] sm:$0xff]  ;;  %v7699_v53 = vld [vmem:[#allocation18_spill] sm:$0xff] }
0x12fb   :  { %6174 = vmatprep.subr.bf16.mxu0 %v7098_v57  ;;  %v7700_v57 = vld [vmem:[#allocation19_spill] sm:$0xff] }
0x12fd   :  { %6156 = vmatpush1.bf16.msra.mxu1 %v7103_v59  ;;  %5554 = vmatmul.mubr.msk.f32.vlgmr.msra.gmra.mrb[36].mxu0 %vm93_vm0, %v3941_v14  ;;  %v7701_v59 = vld [vmem:[#allocation20_spill] sm:$0xff] }
0x12fe   :  { %6166 = vmatprep.subr.bf16.mxu1 %v7109_v0  ;;  %6176 = vmatpush1.bf16.msra.mxu0 %v7111_v4  ;;  %v4592_v0 = vrot.slane %v7058_v22, 1  ;;  %v7702_v4 = vld [vmem:[#allocation21_spill] sm:$0xff] }
0x12ff   :  { %6178 = vmatprep.subr.bf16.mxu0 %v7114_v10  ;;  %4194 = vmatprep.mubr.f32.mxu0 %v7696_v49  ;;  %v7703_v10 = vld [vmem:[#allocation22_spill] sm:$0xff] }
0x1300   :  { %5553 = vmatmul.mubr.msk.f32.vlgmr.msra.gmra.mrb[46].mxu1 %vm93_vm0, %v3848_v33 }
0x1301   :  { %6168 = vmatpush1.bf16.msra.mxu1 %v7118_v21  ;;  %4101 = vmatprep.mubr.f32.mxu1 %v7696_v49  ;;  %v7704_v21 = vld [vmem:[#allocation23_spill] sm:$0xff] }
0x1302   :  { %6170 = vmatprep.subr.bf16.mxu1 %v7123_v25  ;;  %6180 = vmatpush1.bf16.msra.mxu0 %v7125_v29  ;;  %v7705_v25 = vld [vmem:[#allocation24_spill] sm:$0xff]  ;;  %v7706_v29 = vld [vmem:[#allocation25_spill] sm:$0xff] }
0x1303   :  { %6190 = vmatprep.subr.bf16.mxu0 %v7129_v34  ;;  %v4871_v34 = vrot.slane %v7058_v22, 4 }
0x1305   :  { %6172 = vmatpush1.bf16.msra.mxu1 %v7133_v39  ;;  %5556 = vmatmul.mubr.msk.f32.vlgmr.msra.gmra.mrb[38].mxu0 %vm93_vm0, %v4127_v38  ;;  %v7707_v39 = vld [vmem:[#allocation26_spill] sm:$0xff] }
0x1306   :  { %6182 = vmatprep.subr.bf16.mxu1 %v7139_v43  ;;  %6192 = vmatpush1.bf16.msra.mxu0 %v7141_v46  ;;  %v4778_v43 = vrot.slane %v7058_v22, 3  ;;  %v5057_v46 = vrot.slane %v7058_v22, 6 }
0x1307   :  { %6194 = vmatprep.subr.bf16.mxu0 %v7144_v8  ;;  %4380 = vmatprep.mubr.f32.mxu0 %v7696_v49  ;;  %v4964_v8 = vrot.slane %v7058_v22, 5 }
0x1308   :  { %5555 = vmatmul.mubr.msk.f32.vlgmr.msra.gmra.mrb[48].mxu1 %vm93_vm0, %v4034_v42  ;;  %v5279_v42 = vld [vmem:[%s7650_s16 + $0x50] sm:$0xff] }
0x1309   :  { %6184 = vmatpush1.bf16.msra.mxu1 %v7148_v55  ;;  %4287 = vmatprep.mubr.f32.mxu1 %v7696_v49  ;;  %v5150_v55 = vrot.slane %v7058_v22, 7 }
0x130a   :  { %6186 = vmatprep.subr.bf16.mxu1 %v7153_v56  ;;  %6196 = vmatpush1.bf16.msra.mxu0 %v7155_v58  ;;  %v5285_v56 = vld [vmem:[%s7650_s16 + $0x80] sm:$0xff]  ;;  %v5286_v58 = vld [vmem:[%s7650_s16 + $0x88] sm:$0xff] }
0x130b   :  { %6206 = vmatprep.subr.bf16.mxu0 %v7159_v62  ;;  %v6269_v62 = vpack.c.bf16 %v5286_v58, %v5285_v56  ;;  %v5284_v56 = vld [vmem:[%s7650_s16 + $0x78] sm:$0xff]  ;;  %v7525_v58 = vld [vmem:[%s7649_s15] sm:$0x3]  ;;  %s6528_s15 = smov [#allocation6]  }
0x130d   :  { %6188 = vmatpush1.bf16.msra.mxu1 %v7163_v15  ;;  %5558 = vmatmul.mubr.msk.f32.vlgmr.msra.gmra.mrb[40].mxu0 %vm93_vm0, %v4313_v1  ;;  %v5269_v15 = vld [vmem:[%s7650_s16] sm:$0xff]  ;;  %v5280_v1 = vld [vmem:[%s7650_s16 + $0x58] sm:$0xff] }
0x130e   :  { %6198 = vmatprep.subr.bf16.mxu1 %v7169_v18  ;;  %6208 = vmatpush1.bf16.msra.mxu0 %v7171_v26  ;;  %v5287_v26 = vld [vmem:[%s7650_s16 + $0x90] sm:$0xff] }
0x130f   :  { %6210 = vmatprep.subr.bf16.mxu0 %v7174_v31  ;;  %4566 = vmatprep.mubr.f32.mxu0 %v7696_v49  ;;  %v5288_v31 = vld [vmem:[%s7650_s16 + $0x98] sm:$0xff] }
0x1310   :  { %5557 = vmatmul.mubr.msk.f32.vlgmr.msra.gmra.mrb[50].mxu1 %vm93_vm0, %v4220_v45  ;;  %v6291_v45 = vpack.c.bf16 %v5280_v1, %v5279_v42 }
0x1311   :  { %6200 = vmatpush1.bf16.msra.mxu1 %v7178_v44  ;;  %4473 = vmatprep.mubr.f32.mxu1 %v7696_v49  ;;  %v6273_v44 = vpack.c.bf16 %v5288_v31, %v5287_v26 }
0x1312   :  { %6202 = vmatprep.subr.bf16.mxu1 %v7183_v63  ;;  %6212 = vmatpush1.bf16.msra.mxu0 %v7185_v48  ;;  %v5271_v63 = vld [vmem:[%s7650_s16 + $0x10] sm:$0xff]  ;;  %v5272_v48 = vld [vmem:[%s7650_s16 + $0x18] sm:$0xff] }
0x1313   :  { %6222 = vmatprep.subr.bf16.mxu0 %v7189_v9  ;;  %v6275_v9 = vpack.c.bf16 %v5272_v48, %v5271_v63 }
0x1315   :  { %6204 = vmatpush1.bf16.msra.mxu1 %v7193_v61  ;;  %5560 = vmatmul.mubr.msk.f32.vlgmr.msra.gmra.mrb[42].mxu0 %vm93_vm0, %v7058_v22  ;;  %v5270_v22 = vld [vmem:[%s7650_s16 + $0x8] sm:$0xff]  ;;  %v5289_v61 = vld [vmem:[%s7650_s16 + $0xa0] sm:$0xff] }
0x1316   :  { %6214 = vmatprep.subr.bf16.mxu1 %v7198_v2  ;;  %6224 = vmatpush1.bf16.msra.mxu0 %v7200_v6  ;;  %v6271_v18 = vpack.c.bf16 %v5270_v22, %v5269_v15  ;;  %v5290_v2 = vld [vmem:[%s7650_s16 + $0xa8] sm:$0xff] }
0x1317   :  { %6226 = vmatprep.subr.bf16.mxu0 %v7697_v51  ;;  %4752 = vmatprep.mubr.f32.mxu0 %v7696_v49  ;;  %v6277_v6 = vpack.c.bf16 %v5290_v2, %v5289_v61  ;;  %v5297_v51 = vld [vmem:[%s7650_s16 + $0xe0] sm:$0xff] }
0x1318   :  { %5559 = vmatmul.mubr.msk.f32.vlgmr.msra.gmra.mrb[52].mxu1 %vm93_vm0, %v4406_v50 }
0x1319   :  { %6216 = vmatpush1.bf16.msra.mxu1 %v7698_v52  ;;  %4659 = vmatprep.mubr.f32.mxu1 %v7696_v49  ;;  %v5298_v52 = vld [vmem:[%s7650_s16 + $0xe8] sm:$0xff] }
0x131a   :  { %6218 = vmatprep.subr.bf16.mxu1 %v7699_v53  ;;  %6228 = vmatpush1.bf16.msra.mxu0 %v7700_v57  ;;  %v6293_v57 = vpack.c.bf16 %v5298_v52, %v5297_v51 }
0x131b   :  { %6238 = vmatprep.subr.bf16.mxu0 %v7701_v59  ;;  %v5281_v59 = vld [vmem:[%s7650_s16 + $0x60] sm:$0xff] }
0x131d   :  { %6220 = vmatpush1.bf16.msra.mxu1 %v7702_v4  ;;  %5562 = vmatmul.mubr.msk.f32.vlgmr.msra.gmra.mrb[44].mxu0 %vm93_vm0, %v4685_v24 }
0x131e   :  { %6230 = vmatprep.subr.bf16.mxu1 %v7703_v10  ;;  %6240 = vmatpush1.bf16.msra.mxu0 %v7704_v21 }
0x131f   :  { %6242 = vmatprep.subr.bf16.mxu0 %v7705_v25  ;;  %4938 = vmatprep.mubr.f32.mxu0 %v7696_v49 }
0x1320   :  { %5561 = vmatmul.mubr.msk.f32.vlgmr.msra.gmra.mrb[54].mxu1 %vm93_vm0, %v4592_v0  ;;  %v5282_v0 = vld [vmem:[%s7650_s16 + $0x68] sm:$0xff] }
0x1321   :  { %6232 = vmatpush1.bf16.msra.mxu1 %v7706_v29  ;;  %4845 = vmatprep.mubr.f32.mxu1 %v7696_v49  ;;  %v6295_v10 = vpack.c.bf16 %v5282_v0, %v5281_v59  ;;  %v5299_v29 = vld [vmem:[%s7650_s16 + $0xf0] sm:$0xff] }
0x1322   :  { %6234 = vmatprep.subr.bf16.mxu1 %v7707_v39  ;;  %6244 = vmatpush1.bf16.msra.mxu0 %v7245_v60 }
0x1323   :  { %6254 = vmatprep.subr.bf16.mxu0 %v7249_v27  ;;  %v5291_v27 = vld [vmem:[%s7650_s16 + $0xb0] sm:$0xff] }
0x1325   :  { %6236 = vmatpush1.bf16.msra.mxu1 %v7253_v35  ;;  %5564 = vmatmul.mubr.msk.f32.vlgmr.msra.gmra.mrb[46].mxu0 %vm93_vm0, %v4871_v34  ;;  %v5292_v35 = vld [vmem:[%s7650_s16 + $0xb8] sm:$0xff] }
0x1326   :  { %6246 = vmatprep.subr.bf16.mxu1 %v7259_v20  ;;  %6256 = vmatpush1.bf16.msra.mxu0 %v7261_v11  ;;  %v6527_v20 = vmov 1966171168   ;;  %v5300_v34 = vld [vmem:[%s7650_s16 + $0xf8] sm:$0xff] }
0x1327   :  { %6258 = vmatprep.subr.bf16.mxu0 %v7264_v12  ;;  %5124 = vmatprep.mubr.f32.mxu0 %v7696_v49  ;;  %v2224_v11 = vunpack.c.l.s4 %v6527_v20  ;;  %v2226_v12 = vlaneseq }
0x1328   :  { %5563 = vmatmul.mubr.msk.f32.vlgmr.msra.gmra.mrb[56].mxu1 %vm93_vm0, %v4778_v43 }
0x1329   :  { %6248 = vmatpush1.bf16.msra.mxu1 %v7268_v7  ;;  %5031 = vmatprep.mubr.f32.mxu1 %v7696_v49  ;;  %v5274_v7 = vld [vmem:[%s7650_s16 + $0x28] sm:$0xff]  ;;  %v2225_v37 = vunpack.c.0.s8 %v2224_v11  ;;  %v7472_v23 = vshrl.u32 %v2226_v12, 7 }
0x132a   :  { %6250 = vmatprep.subr.bf16.mxu1 %v7273_v54  ;;  %6260 = vmatpush1.bf16.msra.mxu0 %v7275_v19  ;;  %v6281_v54 = vpack.c.bf16 %v5292_v35, %v5291_v27  ;;  %v5275_v19 = vld [vmem:[%s7650_s16 + $0x30] sm:$0xff] }
0x132b   :  { %6270 = vmatprep.subr.bf16.mxu0 %v6269_v62  ;;  %v7487_v33 = vsub.s32 %v2225_v37, %v7472_v23 }
0x132d   :  { %6252 = vmatpush1.bf16.msra.mxu1 %v7281_v41  ;;  %5566 = vmatmul.mubr.msk.f32.vlgmr.msra.gmra.mrb[48].mxu0 %vm93_vm0, %v5057_v46  ;;  %v5276_v41 = vld [vmem:[%s7650_s16 + $0x38] sm:$0xff] }
0x132e   :  { %6262 = vmatprep.subr.bf16.mxu1 %v7287_v47  ;;  %6272 = vmatpush3.bf16.msra.mxu0 %v6271_v18  ;;  %v6283_v17 = vpack.c.bf16 %v5276_v41, %v5275_v19  ;;  %v5293_v47 = vld [vmem:[%s7650_s16 + $0xc0] sm:$0xff] }
0x132f   :  { %6274 = vmatprep.subr.bf16.mxu0 %v6273_v44  ;;  %v6285_v5 = vpack.c.bf16 %v5294_v40, %v5293_v47 }
0x1330   :  { %5565 = vmatmul.mubr.msk.f32.vlgmr.msra.gmra.mrb[58].mxu1 %vm93_vm0, %v4964_v8  ;;  %v6297_v8 = vpack.c.bf16 %v5300_v34, %v5299_v29 }
0x1331   :  { %6264 = vmatpush1.bf16.msra.mxu1 %v7292_v3  ;;  %5217 = vmatprep.mubr.f32.mxu1 %v7696_v49  ;;  %v5273_v49 = vld [vmem:[%s7650_s16 + $0x20] sm:$0xff]  ;;  %v5278_v3 = vld [vmem:[%s7650_s16 + $0x48] sm:$0xff] }
0x1332   :  { %6266 = vmatprep.subr.bf16.mxu1 %v7297_v30  ;;  %6276 = vmatpush3.bf16.msra.mxu0 %v6275_v9  ;;  %v6279_v60 = vpack.c.bf16 %v5274_v7, %v5273_v49  ;;  %v6287_v30 = vpack.c.bf16 %v5278_v3, %v5277_v13 }
0x1333   :  { %6278 = vmatprep.subr.bf16.mxu0 %v6277_v6 }
0x1335   :  { %6268 = vmatpush1.bf16.msra.mxu1 %v7303_v28  ;;  %v5295_v28 = vld [vmem:[%s7650_s16 + $0xd0] sm:$0xff] }
0x1336   :  { %6280 = vmatpush3.bf16.msra.mxu0 %v6279_v60  ;;  %v6289_v38 = vpack.c.bf16 %v5296_v32, %v5295_v28 }
0x1337   :  { %6282 = vmatprep.subr.bf16.mxu0 %v6281_v54 }
0x1338   :  { %5567 = vmatmul.mubr.msk.f32.vlgmr.msra.gmra.mrb[60].mxu1 %vm93_vm0, %v5150_v55  ;;  %v5283_v55 = vld [vmem:[%s7650_s16 + $0x70] sm:$0xff]  ;;  %s5395_s16 = sshll.u32 %s6528_s15, 4  ;;  %s5396_s16 = int_to_ptr.vmem [resolvable:$true] %s5395_s16 }
0x1339   :  { %v6299_v62 = vpack.c.bf16 %v5284_v56, %v5283_v55  ;;  %s6450_s24 = scalar_lea.vmem %s5396_s16, 512  ;;  %p6455_p9 = scmp.lt.s32.totalorder %s5396_s16, %s5396_s16 }
0x133a   :  { %6284 = vmatpush3.bf16.msra.mxu0 %v6283_v17  ;;  %p6451_p8 = scmp.ne.s32.totalorder %s5396_s16, %s6450_s24  ;;  %p6456_p10 = scmp.lt.s32.totalorder %s6450_s24, %s6450_s24 }
0x133b   :  { %6286 = vmatprep.subr.bf16.mxu0 %v6285_v5 }
0x133c   :  { %p6457_p11 = por %p6456_p10, %p6455_p9 }
0x133e   :  { %6288 = vmatpush3.bf16.msra.mxu0 %v6287_v30  ;;  %p6458_p12 = pnand %p6457_p11, %p6451_p8 }
0x133f   :  { %6290 = vmatprep.subr.bf16.mxu0 %v6289_v38 }
0x1342   :  { %6292 = vmatpush3.bf16.msra.mxu0 %v6291_v45 }
0x1343   :  { %6294 = vmatprep.subr.bf16.mxu0 %v6293_v57 }
0x1346   :  { %6296 = vmatpush3.bf16.msra.mxu0 %v6295_v10 }
0x1347   :  { %6298 = vmatprep.subr.bf16.mxu0 %v6297_v8 }
0x134a   :  { %6300 = vmatpush3.bf16.msra.mxu0 %v6299_v62 }
0x138b   :  { %v2215_v36 = vpop.f32.mrb[28].mxu1 }
0x138c   :  { %v2217_v16 = vpop.f32.mrb[29].mxu1 }
0x138d   :  { %v2222_v14 = vcombine.low %v2215_v36, %v2217_v16 }
0x138f   :  { %v2229_v24 = vrot.slane %v2222_v14, %v7487_v33 }
0x1390   :  { %v2417_v50 = vpop.f32.mrb[20].mxu0 }
0x1391   :  { %v2419_v53 = vpop.f32.mrb[21].mxu0  ;;  %v2236_v39 = vrot.slane %v2229_v24, %v7487_v33 }
0x1392   :  { %v2424_v4 = vcombine.low %v2417_v50, %v2419_v53 }
0x1393   :  { %v2316_v21 = vpop.f32.mrb[30].mxu1  ;;  %v2238_v18 = vadd.f32 %v2236_v39, %v7525_v58 }
0x1394   :  { %v2318_v25 = vpop.f32.mrb[31].mxu1  ;;  %v2431_v46 = vrot.slane %v2424_v4, %v7487_v33 }
0x1395   :  { %v2323_v43 = vcombine.low %v2316_v21, %v2318_v25 }
0x1396   :  { %v2438_v31 = vrot.slane %v2431_v46, %v7487_v33 }
0x1397   :  { %v2330_v15 = vrot.slane %v2323_v43, %v7487_v33 }
0x1398   :  { %v2619_v22 = vpop.f32.mrb[22].mxu0 }
0x1399   :  { %v2337_v26 = vrot.slane %v2330_v15, %v7487_v33  ;;  %v2621_v44 = vpop.f32.mrb[23].mxu0 }
0x139a   :  { %v2626_v63 = vcombine.low %v2619_v22, %v2621_v44 }
0x139b   :  { %v2339_v48 = vadd.f32 %v2337_v26, %v2238_v18  ;;  %v2518_v9 = vpop.f32.mrb[32].mxu1 }
0x139c   :  { %v2520_v61 = vpop.f32.mrb[33].mxu1  ;;  %v2633_v49 = vrot.slane %v2626_v63, %v7487_v33 }
0x139d   :  { %v2440_v2 = vadd.f32 %v2438_v31, %v2339_v48  ;;  %v2525_v6 = vcombine.low %v2518_v9, %v2520_v61 }
0x139e   :  { %v2640_v35 = vrot.slane %v2633_v49, %v7487_v33 }
0x139f   :  { %v2532_v7 = vrot.slane %v2525_v6, %v7487_v33 }
0x13a0   :  { %v2821_v60 = vpop.f32.mrb[24].mxu0 }
0x13a1   :  { %v2539_v27 = vrot.slane %v2532_v7, %v7487_v33  ;;  %v2823_v20 = vpop.f32.mrb[25].mxu0 }
0x13a2   :  { %v2828_v11 = vcombine.low %v2821_v60, %v2823_v20 }
0x13a3   :  { %v2541_v12 = vadd.f32 %v2539_v27, %v2440_v2  ;;  %v2720_v54 = vpop.f32.mrb[34].mxu1 }
0x13a4   :  { %v2722_v19 = vpop.f32.mrb[35].mxu1  ;;  %v2835_v47 = vrot.slane %v2828_v11, %v7487_v33 }
0x13a5   :  { %v2642_v41 = vadd.f32 %v2640_v35, %v2541_v12  ;;  %v2727_v17 = vcombine.low %v2720_v54, %v2722_v19 }
0x13a6   :  { %v2842_v13 = vrot.slane %v2835_v47, %v7487_v33 }
0x13a7   :  { %v2734_v40 = vrot.slane %v2727_v17, %v7487_v33 }
0x13a8   :  { %v3023_v37 = vpop.f32.mrb[26].mxu0 }
0x13a9   :  { %v2741_v5 = vrot.slane %v2734_v40, %v7487_v33  ;;  %v3025_v3 = vpop.f32.mrb[27].mxu0 }
0x13aa   :  { %v3030_v30 = vcombine.low %v3023_v37, %v3025_v3 }
0x13ab   :  { %v2743_v36 = vadd.f32 %v2741_v5, %v2642_v41  ;;  %v2922_v16 = vpop.f32.mrb[36].mxu1 }
0x13ac   :  { %v2924_v28 = vpop.f32.mrb[37].mxu1  ;;  %v3037_v38 = vrot.slane %v3030_v30, %v7487_v33 }
0x13ad   :  { %v2844_v32 = vadd.f32 %v2842_v13, %v2743_v36  ;;  %v2929_v14 = vcombine.low %v2922_v16, %v2924_v28 }
0x13ae   :  { %v3044_v50 = vrot.slane %v3037_v38, %v7487_v33 }
0x13af   :  { %v2936_v42 = vrot.slane %v2929_v14, %v7487_v33 }
0x13b0   :  { %v3225_v1 = vpop.f32.mrb[28].mxu0 }
0x13b1   :  { %v2943_v45 = vrot.slane %v2936_v42, %v7487_v33  ;;  %v3227_v51 = vpop.f32.mrb[29].mxu0 }
0x13b2   :  { %v3232_v52 = vcombine.low %v3225_v1, %v3227_v51 }
0x13b3   :  { %v2945_v24 = vadd.f32 %v2943_v45, %v2844_v32  ;;  %v3124_v53 = vpop.f32.mrb[38].mxu1 }
0x13b4   :  { %v3126_v57 = vpop.f32.mrb[39].mxu1  ;;  %v3239_v4 = vrot.slane %v3232_v52, %v7487_v33 }
0x13b5   :  { %v3046_v59 = vadd.f32 %v3044_v50, %v2945_v24  ;;  %v3131_v0 = vcombine.low %v3124_v53, %v3126_v57 }
0x13b6   :  { %v3246_v29 = vrot.slane %v3239_v4, %v7487_v33 }
0x13b7   :  { %v3138_v10 = vrot.slane %v3131_v0, %v7487_v33 }
0x13b8   :  { %v3427_v21 = vpop.f32.mrb[30].mxu0 }
0x13b9   :  { %v3145_v25 = vrot.slane %v3138_v10, %v7487_v33  ;;  %v3429_v34 = vpop.f32.mrb[31].mxu0 }
0x13ba   :  { %v3434_v39 = vcombine.low %v3427_v21, %v3429_v34 }
0x13bb   :  { %v3147_v43 = vadd.f32 %v3145_v25, %v3046_v59  ;;  %v3326_v46 = vpop.f32.mrb[40].mxu1 }
0x13bc   :  { %v3328_v8 = vpop.f32.mrb[41].mxu1  ;;  %v3441_v62 = vrot.slane %v3434_v39, %v7487_v33 }
0x13bd   :  { %v3248_v55 = vadd.f32 %v3246_v29, %v3147_v43  ;;  %v3333_v56 = vcombine.low %v3326_v46, %v3328_v8 }
0x13be   :  { %v3448_v26 = vrot.slane %v3441_v62, %v7487_v33 }
0x13bf   :  { %v3340_v15 = vrot.slane %v3333_v56, %v7487_v33 }
0x13c0   :  { %v3629_v22 = vpop.f32.mrb[32].mxu0 }
0x13c1   :  { %v3347_v18 = vrot.slane %v3340_v15, %v7487_v33  ;;  %v3631_v31 = vpop.f32.mrb[33].mxu0 }
0x13c2   :  { %v3636_v44 = vcombine.low %v3629_v22, %v3631_v31 }
0x13c3   :  { %v3349_v63 = vadd.f32 %v3347_v18, %v3248_v55  ;;  %v3528_v48 = vpop.f32.mrb[42].mxu1 }
0x13c4   :  { %v3530_v9 = vpop.f32.mrb[43].mxu1  ;;  %v3643_v6 = vrot.slane %v3636_v44, %v7487_v33 }
0x13c5   :  { %v3450_v61 = vadd.f32 %v3448_v26, %v3349_v63  ;;  %v3535_v2 = vcombine.low %v3528_v48, %v3530_v9 }
0x13c6   :  { %v3650_v27 = vrot.slane %v3643_v6, %v7487_v33 }
0x13c7   :  { %v3542_v49 = vrot.slane %v3535_v2, %v7487_v33 }
0x13c8   :  { %v3824_v7 = vpop.f32.mrb[34].mxu0 }
0x13c9   :  { %v3549_v60 = vrot.slane %v3542_v49, %v7487_v33  ;;  %v3826_v35 = vpop.f32.mrb[35].mxu0 }
0x13ca   :  { %v3831_v20 = vcombine.low %v3824_v7, %v3826_v35 }
0x13cb   :  { %v3551_v11 = vadd.f32 %v3549_v60, %v3450_v61  ;;  %v3730_v12 = vpop.f32.mrb[44].mxu1 }
0x13cc   :  { %v3732_v54 = vpop.f32.mrb[45].mxu1  ;;  %v3838_v47 = vrot.slane %v3831_v20, %v7487_v33 }
0x13cd   :  { %v3652_v19 = vadd.f32 %v3650_v27, %v3551_v11  ;;  %v3737_v41 = vcombine.low %v3730_v12, %v3732_v54 }
0x13ce   :  { %v3845_v30 = vrot.slane %v3838_v47, %v7487_v33 }
0x13cf   :  { %v3744_v17 = vrot.slane %v3737_v41, %v7487_v33 }
0x13d0   :  { %v4010_v40 = vpop.f32.mrb[36].mxu0  ;;  %v3847_v14 = vadd.f32 %v3845_v30, %v7525_v58 }
0x13d1   :  { %v3751_v37 = vrot.slane %v3744_v17, %v7487_v33  ;;  %v4012_v5 = vpop.f32.mrb[37].mxu0 }
0x13d2   :  { %v4017_v13 = vcombine.low %v4010_v40, %v4012_v5 }
0x13d3   :  { %v7558_v3 = vadd.f32 %v3751_v37, %v3652_v19  ;;  %v3917_v36 = vpop.f32.mrb[46].mxu1 }
0x13d4   :  { %v3919_v16 = vpop.f32.mrb[47].mxu1  ;;  %v4024_v32 = vrot.slane %v4017_v13, %v7487_v33 }
0x13d5   :  { %v3924_v28 = vcombine.low %v3917_v36, %v3919_v16 }
0x13d6   :  { %v4031_v45 = vrot.slane %v4024_v32, %v7487_v33 }
0x13d7   :  { %v3931_v38 = vrot.slane %v3924_v28, %v7487_v33 }
0x13d8   :  { %v4196_v42 = vpop.f32.mrb[38].mxu0 }
0x13d9   :  { %v3938_v1 = vrot.slane %v3931_v38, %v7487_v33  ;;  %v4198_v50 = vpop.f32.mrb[39].mxu0 }
0x13da   :  { %v4203_v51 = vcombine.low %v4196_v42, %v4198_v50 }
0x13db   :  { %v3940_v52 = vadd.f32 %v3938_v1, %v3847_v14  ;;  %v4103_v24 = vpop.f32.mrb[48].mxu1 }
0x13dc   :  { %v4105_v53 = vpop.f32.mrb[49].mxu1  ;;  %v4210_v0 = vrot.slane %v4203_v51, %v7487_v33 }
0x13dd   :  { %v4033_v57 = vadd.f32 %v4031_v45, %v3940_v52  ;;  %v4110_v59 = vcombine.low %v4103_v24, %v4105_v53 }
0x13de   :  { %v4217_v21 = vrot.slane %v4210_v0, %v7487_v33 }
0x13df   :  { %v4117_v4 = vrot.slane %v4110_v59, %v7487_v33 }
0x13e0   :  { %v4382_v10 = vpop.f32.mrb[40].mxu0 }
0x13e1   :  { %v4124_v58 = vrot.slane %v4117_v4, %v7487_v33  ;;  %v4384_v25 = vpop.f32.mrb[41].mxu0 }
0x13e2   :  { %v4389_v29 = vcombine.low %v4382_v10, %v4384_v25 }
0x13e3   :  { %v4126_v34 = vadd.f32 %v4124_v58, %v4033_v57  ;;  %v4289_v39 = vpop.f32.mrb[50].mxu1 }
0x13e4   :  { %v4291_v43 = vpop.f32.mrb[51].mxu1  ;;  %v4396_v55 = vrot.slane %v4389_v29, %v7487_v33 }
0x13e5   :  { %v4219_v46 = vadd.f32 %v4217_v21, %v4126_v34  ;;  %v4296_v8 = vcombine.low %v4289_v39, %v4291_v43 }
0x13e6   :  { %v4403_v22 = vrot.slane %v4396_v55, %v7487_v33  ;;  %v5251_v55 = vsub.s32 1, %v7472_v23 }
0x13e7   :  { %v4303_v56 = vrot.slane %v4296_v8, %v7487_v33 }
0x13e8   :  { %v4568_v62 = vpop.f32.mrb[42].mxu0 }
0x13e9   :  { %v4310_v15 = vrot.slane %v4303_v56, %v7487_v33  ;;  %v4570_v18 = vpop.f32.mrb[43].mxu0  ;;  %v5247_v56 = vsub.s32 0, %v7472_v23 }
0x13ea   :  { %v4575_v26 = vcombine.low %v4568_v62, %v4570_v18 }
0x13eb   :  { %v4312_v31 = vadd.f32 %v4310_v15, %v4219_v46  ;;  %v4475_v44 = vpop.f32.mrb[52].mxu1  ;;  %v3754_v46 = vmax.f32 %v7558_v3, 0.0 }
0x13ec   :  { %v4477_v63 = vpop.f32.mrb[53].mxu1  ;;  %v4582_v61 = vrot.slane %v4575_v26, %v7487_v33 }
0x13ed   :  { %v4405_v48 = vadd.f32 %v4403_v22, %v4312_v31  ;;  %v4482_v9 = vcombine.low %v4475_v44, %v4477_v63  ;;  %v5252_v15 = vrot.slane %v3754_v46, %v5251_v55  ;;  %v5248_v18 = vrot.slane %v3754_v46, %v5247_v56 }
0x13ee   :  { %v4589_v7 = vrot.slane %v4582_v61, %v7487_v33 }
0x13ef   :  { %v4489_v2 = vrot.slane %v4482_v9, %v7487_v33 }
0x13f0   :  { %v4754_v6 = vpop.f32.mrb[44].mxu0 }
0x13f1   :  { %v4496_v49 = vrot.slane %v4489_v2, %v7487_v33  ;;  %v4756_v60 = vpop.f32.mrb[45].mxu0 }
0x13f2   :  { %v4761_v27 = vcombine.low %v4754_v6, %v4756_v60 }
0x13f3   :  { %v4498_v35 = vadd.f32 %v4496_v49, %v4405_v48  ;;  %v4661_v20 = vpop.f32.mrb[54].mxu1 }
0x13f4   :  { %v4663_v11 = vpop.f32.mrb[55].mxu1  ;;  %v4768_v19 = vrot.slane %v4761_v27, %v7487_v33 }
0x13f5   :  { %v4591_v12 = vadd.f32 %v4589_v7, %v4498_v35  ;;  %v4668_v54 = vcombine.low %v4661_v20, %v4663_v11 }
0x13f6   :  { %v4775_v40 = vrot.slane %v4768_v19, %v7487_v33 }
0x13f7   :  { %v4675_v41 = vrot.slane %v4668_v54, %v7487_v33 }
0x13f8   :  { %v4940_v17 = vpop.f32.mrb[46].mxu0 }
0x13f9   :  { %v4682_v47 = vrot.slane %v4675_v41, %v7487_v33  ;;  %v4942_v37 = vpop.f32.mrb[47].mxu0 }
0x13fa   :  { %v4947_v5 = vcombine.low %v4940_v17, %v4942_v37 }
0x13fb   :  { %v4684_v13 = vadd.f32 %v4682_v47, %v4591_v12  ;;  %v4847_v30 = vpop.f32.mrb[56].mxu1 }
0x13fc   :  { %v4849_v36 = vpop.f32.mrb[57].mxu1  ;;  %v4954_v32 = vrot.slane %v4947_v5, %v7487_v33 }
0x13fd   :  { %v4777_v16 = vadd.f32 %v4775_v40, %v4684_v13  ;;  %v4854_v28 = vcombine.low %v4847_v30, %v4849_v36 }
0x13fe   :  { %v4961_v1 = vrot.slane %v4954_v32, %v7487_v33 }
0x13ff   :  { %v4861_v14 = vrot.slane %v4854_v28, %v7487_v33 }
0x1400   :  { %v5126_v38 = vpop.f32.mrb[48].mxu0 }
0x1401   :  { %v4868_v42 = vrot.slane %v4861_v14, %v7487_v33  ;;  %v5128_v45 = vpop.f32.mrb[49].mxu0 }
0x1402   :  { %v5133_v50 = vcombine.low %v5126_v38, %v5128_v45 }
0x1403   :  { %v4870_v51 = vadd.f32 %v4868_v42, %v4777_v16  ;;  %v5033_v52 = vpop.f32.mrb[58].mxu1 }
0x1404   :  { %v5035_v24 = vpop.f32.mrb[59].mxu1  ;;  %v5140_v59 = vrot.slane %v5133_v50, %v7487_v33 }
0x1405   :  { %v4963_v53 = vadd.f32 %v4961_v1, %v4870_v51  ;;  %v5040_v57 = vcombine.low %v5033_v52, %v5035_v24 }
0x1406   :  { %v5147_v10 = vrot.slane %v5140_v59, %v7487_v33 }
0x1407   :  { %v5047_v0 = vrot.slane %v5040_v57, %v7487_v33 }
0x1409   :  { %v5054_v4 = vrot.slane %v5047_v0, %v7487_v33 }
0x140b   :  { %v5056_v58 = vadd.f32 %v5054_v4, %v4963_v53  ;;  %v5219_v21 = vpop.f32.mrb[60].mxu1 }
0x140c   :  { %v5221_v25 = vpop.f32.mrb[61].mxu1 }
0x140d   :  { %v5149_v29 = vadd.f32 %v5147_v10, %v5056_v58  ;;  %v5226_v34 = vcombine.low %v5219_v21, %v5221_v25 }
0x140f   :  { %v5233_v39 = vrot.slane %v5226_v34, %v7487_v33 }
0x1411   :  { %v5240_v43 = vrot.slane %v5233_v39, %v7487_v33 }
0x1413   :  { %v5242_v8 = vadd.f32 %v5240_v43, %v5149_v29 }
0x1415   :  { %v5243_v62 = vmax.f32 %v5242_v8, 0.0 }
0x1417   :  { %v5263_v22 = vrot.slane %v5243_v62, %v5251_v55  ;;  %v5259_v26 = vrot.slane %v5243_v62, %v5247_v56 }
0x1419   :  { %v5268_v31 = vsel %vm5266_vm8, %v5252_v15, %v5263_v22  ;;  %v5267_v44 = vsel %vm5266_vm8, %v5248_v18, %v5259_v26 }
0x141a   :  { %5372 = vmatprep.mubr.f32.mxu0 %v5268_v31 }
0x141b   :  { %5373 = vmatmul.mubr.f32.vlgmr.msra.gmra.mrb[50].mxu0 %v5267_v44 }
0x141c   :  { %6461 = shalt.err (!%p6458_p12)
}
0x141d   :  { %s6462_s27 = scalar_lea.hbm %s7653_s19, 512 }
0x141e   :  { %p6463_p13 = scmp.ne.s32.totalorder %s7653_s19, %s6462_s27  ;;  %p6466_p0 = scmp.lt.u32.totalorder %s6462_s27, %s7653_s19 }
0x1420   :  { %p6468_p1 = pnand %p6466_p0, %p6463_p13 }
0x1422   :  { %6471 = shalt.err (!%p6468_p1)
}
0x1423   :  { %s6529_s4 = smov 128   ;;  %s6530_s12 = smov 8  }
0x1424   :  { %5401 = dma.vmem_to_hbm [thread:$0]  %s5396_s16, 512, %s7653_s19, [#allocation7], %s6529_s4, %s6529_s4, %s6530_s12  }
0x1425   :  { %s6531_s30 = smov [#allocation8]  }
0x1426   :  { %s5407_s3 = sshll.u32 %s6531_s30, 4  ;;  %s5408_s3 = int_to_ptr.vmem [resolvable:$true] %s5407_s3 }
0x1427   :  { %s6472_s8 = scalar_lea.vmem %s5408_s3, 512  ;;  %p6477_p3 = scmp.lt.s32.totalorder %s5408_s3, %s5408_s3 }
0x1428   :  { %p6473_p2 = scmp.ne.s32.totalorder %s5408_s3, %s6472_s8  ;;  %p6478_p4 = scmp.lt.s32.totalorder %s6472_s8, %s6472_s8 }
0x142a   :  { %p6479_p5 = por %p6478_p4, %p6477_p3 }
0x142c   :  { %p6480_p6 = pnand %p6479_p5, %p6473_p2 }
0x142e   :  { %6483 = shalt.err (!%p6480_p6)
}
0x142f   :  { %s6484_s0 = scalar_lea.hbm %s7654_s20, 512 }
0x1430   :  { %p6485_p7 = scmp.ne.s32.totalorder %s7654_s20, %s6484_s0  ;;  %p6488_p8 = scmp.lt.u32.totalorder %s6484_s0, %s7654_s20 }
0x1432   :  { %p6490_p9 = pnand %p6488_p8, %p6485_p7 }
0x1434   :  { %6493 = shalt.err (!%p6490_p9)
}
0x1435   :  { %5413 = dma.vmem_to_hbm [thread:$0]  %s5408_s3, 512, %s7654_s20, [#allocation7], %s6529_s4, %s6529_s4, %s6530_s12   ;;  %vm5378_vm9 = vcmask 25600  }
0x1436   :  { %v5568_v33 = vld [vmem:[%s7651_s17] ss:$0 sm:$0xff]  ;;  %s6532_s15 = smov [#allocation4]  }
0x1437   :  { %s5386_s16 = sshll.u32 %s6532_s15, 4  ;;  %s5387_s16 = int_to_ptr.vmem [resolvable:$true] %s5386_s16 }
0x1438   :  { %s6494_s24 = scalar_lea.vmem %s5387_s16, 32  ;;  %p6499_p11 = scmp.lt.s32.totalorder %s5387_s16, %s5387_s16 }
0x1439   :  { %p6495_p10 = scmp.ne.s32.totalorder %s5387_s16, %s6494_s24  ;;  %p6500_p12 = scmp.lt.s32.totalorder %s6494_s24, %s6494_s24 }
0x143b   :  { %p6501_p13 = por %p6500_p12, %p6499_p11 }
0x143d   :  { %p6502_p0 = pnand %p6501_p13, %p6495_p10 }
0x14ee   :  { %v5706_v23 = vpop.f32.mrb[50].mxu0 }
0x14ef   :  { %v5707_v3 = vpop.f32.mrb[51].mxu0 }
0x14f0   :  { %v5708_v63 = vadd.f32 %v5707_v3, %v5706_v23 }
0x14f2   :  { %v5375_v48 = vadd.f32 %v5708_v63, %v5568_v33 }
0x14f4   :  { %5379 = vst.msk [vmem:[#allocation4] sm:$0x3] %vm5378_vm9, %v5375_v48 }
0x14f5   :  { %6505 = shalt.err (!%p6502_p0)
}
0x14f6   :  { %s6506_s26 = scalar_lea.hbm %s7652_s18, 32 }
0x14f7   :  { %p6507_p1 = scmp.ne.s32.totalorder %s7652_s18, %s6506_s26  ;;  %p6510_p2 = scmp.lt.u32.totalorder %s6506_s26, %s7652_s18 }
0x14f9   :  { %p6512_p3 = pnand %p6510_p2, %p6507_p1 }
0x14fb   :  { %6515 = shalt.err (!%p6512_p3)
}
0x14fc   :  { %5389 = dma.vmem_to_hbm [thread:$0]  %s5387_s16, 32, %s7652_s18, [#allocation5]  }
0x14fd   :  { %6518 = dma.done.wait [#allocation5], 32  }
0x14fe   :  { %6519 = vsyncadd [#allocation5], 4294967264 }
0x14ff   :  { %6520 = dma.done.wait [#allocation7], 1024  }
0x1500   :  { %6521 = vsyncadd [#allocation7], 4294966272 }
0x1501   :  { %5423 = vsyncpa [#allocation5], 1 }
0x1502   :  { %5424 = vsyncpa [#allocation7], 1 }
0x1503   :  { %5425 = vsyncmov [#allocation3] }
0x1506   :  { %s5426_s4 = vpop.sfrf %5425 }
0x1507   :  { %p5569_p4 = scmp.ne.s32.totalorder %s5426_s4, 0 }
0x1509   :  { %5430 = shalt.err (%p5569_p4)  }

</bundles_post_ra>
